<compile_context>
chip_gen: v7x
topology: tpu7x:2x2x1
jax: 0.10.0
libtpu: 0.0.40
codegen_flags: <defaults>
</compile_context>

<pallas_src>
import functools
import math

import jax
import jax.numpy as jnp
from jax import lax
from jax.experimental import pallas as pl
from jax.experimental.pallas import tpu as pltpu

SEQ_LEN = 20  # fixed by the module's x.contiguous().view(-1, 20, c*d)


# ----------------------------------------------------------------------------- kernel


def _gru_bidir_layer(xp_ref, whh_ref, bhn_ref, dst_ref, *, T, N, H, dual_store):
    """Fused fwd+bwd recurrence of one bidirectional GRU layer.

    xp_ref: (T*N, 6H) step-aligned gate inputs; row block s holds, in gate order
            [r_f | r_b | z_f | z_b | n_f | n_b], the input projections for the
            forward direction at time s and the backward direction at time T-1-s,
            with b_ih and b_hh(r,z) already folded in.
    whh_ref: (2H, 6H) block-diagonal recurrent weight (constant RHS across steps).
    bhn_ref: (1, 2H) = [b_hn_fwd | b_hn_bwd].
    dst_ref: if dual_store, a (T*N, 4H) "cat4" slab where row t ends up holding
             [h_f(t) | h_b(T-1-t) | h_f(T-1-t) | h_b(t)]; otherwise a (T*N, 2H)
             slab where row s holds the fused step output [h_f(s) | h_b(T-1-s)].
    """
    whh = whh_ref[...]                                   # (2H, 6H), loaded once
    bhn = jnp.broadcast_to(bhn_ref[...], (N, 2 * H))     # hoisted broadcast
    h = jnp.zeros((N, 2 * H), jnp.float32)               # [h_f | h_b]

    for s in range(T):                                   # fully unrolled, T=20
        rows = slice(s * N, (s + 1) * N)
        xp = xp_ref[rows, :]                             # (N, 6H) contiguous load
        # One MXU push per step, RHS constant across all steps.
        g = jnp.dot(h, whh, preferred_element_type=jnp.float32)       # (N, 6H)
        # One full-vreg sigmoid: lanes [0,4H) = [r_f | r_b | z_f | z_b].
        rz = jax.nn.sigmoid(xp[:, :4 * H] + g[:, :4 * H])
        r = rz[:, :2 * H]                                # [r_f | r_b]
        z = rz[:, 2 * H:]                                # [z_f | z_b]
        # One tanh over (N, 2H): lanes [4H,6H) = [n_f | n_b].
        n = jnp.tanh(xp[:, 4 * H:] + r * (g[:, 4 * H:] + bhn))
        h = (1.0 - z) * n + z * h
        dst_ref[rows, 0:2 * H] = h
        if dual_store:
            rrev = slice((T - 1 - s) * N, (T - s) * N)
            dst_ref[rrev, 2 * H:4 * H] = h


def _tce_kernel(x_ref,                       # (T*N, 2D)  [x(t) | x(T-1-t)]
                w0_ref, b0_ref,              # (2D, 6H), (1, 6H)
                whh0_ref, bhn0_ref,          # (2H, 6H), (1, 2H)
                w1_ref, b1_ref,              # (4H, 6H), (1, 6H)
                whh1_ref, bhn1_ref,          # (2H, 6H), (1, 2H)
                out_ref,                     # (T*N, 2H)  row s = [h_f(s)|h_b(T-1-s)]
                xp_ref,                      # scratch (T*N, 6H)
                h0_ref,                      # scratch (T*N, 4H) layer-0 output
                *, T, N, H):
    # ---- layer 0: ONE fused input-projection matmul (both directions), off the
    #      serial path.  Bias (with b_hh r/z folded) added once.
    xp_ref[...] = (jnp.dot(x_ref[...], w0_ref[...],
                           preferred_element_type=jnp.float32) + b0_ref[...])
    _gru_bidir_layer(xp_ref, whh0_ref, bhn0_ref, h0_ref,
                     T=T, N=N, H=H, dual_store=True)

    # ---- layer 1: fused projection from the VMEM-resident cat4 layer-0 output.
    xp_ref[...] = (jnp.dot(h0_ref[...], w1_ref[...],
                           preferred_element_type=jnp.float32) + b1_ref[...])
    _gru_bidir_layer(xp_ref, whh1_ref, bhn1_ref, out_ref,
                     T=T, N=N, H=H, dual_store=False)


# ----------------------------------------------------------------------------- host-side weight prep


def _prep_tce_params(params, D, H):
    """PyTorch-layout GRU params -> fused kernel layout.

    Gate/lane order everywhere: G6 = [r_f | r_b | z_f | z_b | n_f | n_b].
    Layer-0 projection consumes rows [x(t) | x(T-1-t)]      (2D wide).
    Layer-1 projection consumes cat4 rows
        [h_f(t) | h_b(T-1-t) | h_f(T-1-t) | h_b(t)]         (4H wide).
    Recurrent weight is block-diagonal over [h_f | h_b]     (2H wide).
    """
    f32 = jnp.float32
    Z_DH = jnp.zeros((D, H), f32)
    Z_HH = jnp.zeros((H, H), f32)

    def gates(w_t):  # (in, 3H) cols [r|z|n] -> three (in, H) blocks
        return w_t[:, :H], w_t[:, H:2 * H], w_t[:, 2 * H:]

    l0, l1 = params["l0"], params["l1"]

    # ---- layer 0 fused input projection (2D, 6H)
    rf, zf, nf = gates(l0["w_ih"].T.astype(f32))          # acts on x(t)
    rb, zb, nb = gates(l0["w_ih_rev"].T.astype(f32))      # acts on x(T-1-t)
    w0 = jnp.concatenate([
        jnp.concatenate([rf, Z_DH, zf, Z_DH, nf, Z_DH], axis=1),
        jnp.concatenate([Z_DH, rb, Z_DH, zb, Z_DH, nb], axis=1)], axis=0)

    # ---- layer 1 fused input projection (4H, 6H), input blocks A|B|C|D =
    #      [h_f(t) | h_b(T-1-t) | h_f(T-1-t) | h_b(t)]
    wf = l1["w_ih"].T.astype(f32)                         # (2H, 3H): rows [0:H)=h_f, [H:2H)=h_b
    wb = l1["w_ih_rev"].T.astype(f32)
    rfA, zfA, nfA = gates(wf[:H])                         # fwd gates, from h_f(t)   (block A)
    rfD, zfD, nfD = gates(wf[H:])                         # fwd gates, from h_b(t)   (block D)
    rbC, zbC, nbC = gates(wb[:H])                         # bwd gates, from h_f(T-1-t) (block C)
    rbB, zbB, nbB = gates(wb[H:])                         # bwd gates, from h_b(T-1-t) (block B)
    w1 = jnp.concatenate([
        jnp.concatenate([rfA, Z_HH, zfA, Z_HH, nfA, Z_HH], axis=1),   # A
        jnp.concatenate([Z_HH, rbB, Z_HH, zbB, Z_HH, nbB], axis=1),   # B
        jnp.concatenate([Z_HH, rbC, Z_HH, zbC, Z_HH, nbC], axis=1),   # C
        jnp.concatenate([rfD, Z_HH, zfD, Z_HH, nfD, Z_HH], axis=1),   # D
    ], axis=0)

    def rec_and_bias(lp):
        rF, zF, nF = gates(lp["w_hh"].T.astype(f32))
        rB, zB, nB = gates(lp["w_hh_rev"].T.astype(f32))
        whh = jnp.concatenate([
            jnp.concatenate([rF, Z_HH, zF, Z_HH, nF, Z_HH], axis=1),   # rows for h_f
            jnp.concatenate([Z_HH, rB, Z_HH, zB, Z_HH, nB], axis=1),   # rows for h_b
        ], axis=0)                                                     # (2H, 6H)
        bif, bhf = lp["b_ih"].astype(f32), lp["b_hh"].astype(f32)
        bib, bhb = lp["b_ih_rev"].astype(f32), lp["b_hh_rev"].astype(f32)
        b_in = jnp.concatenate([
            bif[:H] + bhf[:H], bib[:H] + bhb[:H],              # r_f, r_b (b_hr folded)
            bif[H:2 * H] + bhf[H:2 * H], bib[H:2 * H] + bhb[H:2 * H],  # z_f, z_b
            bif[2 * H:], bib[2 * H:]])[None, :]                # n_f, n_b (b_hn NOT folded)
        b_hn = jnp.concatenate([bhf[2 * H:], bhb[2 * H:]])[None, :]    # (1, 2H)
        return whh, b_in, b_hn

    whh0, b0, bhn0 = rec_and_bias(l0)
    whh1, b1, bhn1 = rec_and_bias(l1)
    return w0, b0, whh0, bhn0, w1, b1, whh1, bhn1


# ----------------------------------------------------------------------------- wrapper


def tce_forward(x, params):
    """Forward pass of TCE (eval mode).  x: (bs, d, c) with bs divisible by 20
    and c*d == dim1.  Returns (bs/20, 20, 2*dim2)."""
    bs, d, c = x.shape
    T = SEQ_LEN
    D = c * d
    x2 = x.reshape(-1, T, D)                              # == .contiguous().view(-1, 20, c*d)
    N = x2.shape[0]
    x_tm = jnp.transpose(x2, (1, 0, 2)).astype(jnp.float32)          # (T, N, D) time-major
    # Step-aligned input: row t carries both x(t) (fwd) and x(T-1-t) (bwd).
    x_cat = jnp.concatenate([x_tm, x_tm[::-1]], axis=-1).reshape(T * N, 2 * D)

    H = params["l0"]["w_hh"].shape[1]
    kparams = _prep_tce_params(params, D, H)

    vmem = pl.BlockSpec(memory_space=pltpu.MemorySpace.VMEM)
    out_flat = pl.pallas_call(
        functools.partial(_tce_kernel, T=T, N=N, H=H),
        out_shape=jax.ShapeDtypeStruct((T * N, 2 * H), jnp.float32),
        in_specs=[vmem] * 9,
        out_specs=vmem,
        scratch_shapes=[
            pltpu.VMEM((T * N, 6 * H), jnp.float32),   # fused step-aligned gate inputs
            pltpu.VMEM((T * N, 4 * H), jnp.float32),   # layer-0 output (cat4 layout)
        ],
    )(x_cat, *kparams)

    y = out_flat.reshape(T, N, 2 * H)
    # fwd half is natural time order; bwd half is step-aligned (time T-1-t at row t).
    out = jnp.concatenate([y[:, :, :H], y[::-1, :, H:]], axis=-1)     # (T, N, 2H)
    # self.dropout_1 and the GRU inter-layer dropout are identity in eval mode.
    return jnp.transpose(out, (1, 0, 2))                              # (N, 20, 2H)


# ----------------------------------------------------------------------------- params & reference


def init_tce_params(key, dim1, dim2):
    """Deterministic init mimicking PyTorch's GRU U(-1/sqrt(H), 1/sqrt(H))."""
    H = dim2
    bound = 1.0 / math.sqrt(H)
    keys = jax.random.split(key, 16)
    ki = 0
    params = {}
    for layer in range(2):
        in_size = dim1 if layer == 0 else 2 * H
        lp = {}
        for suffix in ("", "_rev"):
            lp["w_ih" + suffix] = jax.random.uniform(
                keys[ki], (3 * H, in_size), minval=-bound, maxval=bound); ki += 1
            lp["w_hh" + suffix] = jax.random.uniform(
                keys[ki], (3 * H, H), minval=-bound, maxval=bound); ki += 1
            lp["b_ih" + suffix] = jax.random.uniform(
                keys[ki], (3 * H,), minval=-bound, maxval=bound); ki += 1
            lp["b_hh" + suffix] = jax.random.uniform(
                keys[ki], (3 * H,), minval=-bound, maxval=bound); ki += 1
        params[f"l{layer}"] = lp
    return params


def _ref_gru_dir(x_tm, w_ih, w_hh, b_ih, b_hh):
    """Pure-JAX reference: one GRU direction, PyTorch gate math."""
    H = w_hh.shape[1]

    def cell(h, x_t):
        gi = x_t @ w_ih.T + b_ih
        gh = h @ w_hh.T + b_hh
        r = jax.nn.sigmoid(gi[:, :H] + gh[:, :H])
        z = jax.nn.sigmoid(gi[:, H:2 * H] + gh[:, H:2 * H])
        n = jnp.tanh(gi[:, 2 * H:] + r * gh[:, 2 * H:])
        h_new = (1.0 - z) * n + z * h
        return h_new, h_new

    h0 = jnp.zeros((x_tm.shape[1], H), jnp.float32)
    _, ys = lax.scan(cell, h0, x_tm)
    return ys


def tce_reference(x, params):
    bs, d, c = x.shape
    T = SEQ_LEN
    layer_in = jnp.transpose(x.reshape(-1, T, c * d), (1, 0, 2)).astype(jnp.float32)
    for layer in range(2):
        p = params[f"l{layer}"]
        f = _ref_gru_dir(layer_in, p["w_ih"], p["w_hh"], p["b_ih"], p["b_hh"])
        b = _ref_gru_dir(layer_in[::-1], p["w_ih_rev"], p["w_hh_rev"],
                         p["b_ih_rev"], p["b_hh_rev"])[::-1]
        layer_in = jnp.concatenate([f, b], axis=-1)
    return jnp.transpose(layer_in, (1, 0, 2))


# ----------------------------------------------------------------------------- main

if __name__ == "__main__":
    # Shapes consistent with the module's view(-1, 20, c*d):
    # bs must be a multiple of 20 and dim1 must equal c*d.
    bs, d, c = 160, 4, 8
    dim1 = c * d            # 32  (GRU input size)
    dim2 = 32               # hidden size

    key = jax.random.PRNGKey(0)
    k_x, k_p = jax.random.split(key)
    x = jax.random.normal(k_x, (bs, d, c), dtype=jnp.float32)
    params = init_tce_params(k_p, dim1, dim2)

    out = tce_forward(x, params)
    out = jax.block_until_ready(out)
    assert out.shape == (bs // SEQ_LEN, SEQ_LEN, 2 * dim2)

    ref = jax.block_until_ready(tce_reference(x, params))
    max_err = float(jnp.max(jnp.abs(out - ref)))
    assert max_err < 1e-4, f"mismatch vs pure-JAX reference: {max_err}"

    print("KERNEL_OK")
</pallas_src>

<mosaic_0001>
module attributes {stable_mosaic.version = 11 : i64} {
  func.func @_tce_kernel(%arg0: memref<160x64xf32, #tpu.memory_space<vmem>>, %arg1: memref<64x192xf32, #tpu.memory_space<vmem>>, %arg2: memref<1x192xf32, #tpu.memory_space<vmem>>, %arg3: memref<64x192xf32, #tpu.memory_space<vmem>>, %arg4: memref<1x64xf32, #tpu.memory_space<vmem>>, %arg5: memref<128x192xf32, #tpu.memory_space<vmem>>, %arg6: memref<1x192xf32, #tpu.memory_space<vmem>>, %arg7: memref<64x192xf32, #tpu.memory_space<vmem>>, %arg8: memref<1x64xf32, #tpu.memory_space<vmem>>, %arg9: memref<160x64xf32, #tpu.memory_space<vmem>>, %arg10: memref<160x192xf32, #tpu.memory_space<vmem>>, %arg11: memref<160x128xf32, #tpu.memory_space<vmem>>) attributes {dimension_semantics = [], scalar_prefetch = 0 : i64, scratch_operands = 2 : i64, tpu.core_type = #tpu.core_type<tc>} {
    %c0 = arith.constant 0 : index
    %c0_0 = arith.constant 0 : index
    %0 = vector.load %arg0[%c0, %c0_0] : memref<160x64xf32, #tpu.memory_space<vmem>>, vector<160x64xf32>
    %c0_1 = arith.constant 0 : index
    %c0_2 = arith.constant 0 : index
    %1 = vector.load %arg1[%c0_1, %c0_2] : memref<64x192xf32, #tpu.memory_space<vmem>>, vector<64x192xf32>
    %cst = arith.constant dense<0.000000e+00> : vector<160x192xf32>
    %2 = tpu.matmul %0, %1, %cst {dimension_numbers = #tpu.dot_dimension_numbers<[1], [0], [0], [1], [0, 0, 1, 1], [], []>} : vector<160x64xf32>, vector<64x192xf32>, vector<160x192xf32> -> vector<160x192xf32>
    %c0_3 = arith.constant 0 : index
    %c0_4 = arith.constant 0 : index
    %3 = vector.load %arg2[%c0_3, %c0_4] : memref<1x192xf32, #tpu.memory_space<vmem>>, vector<1x192xf32>
    %4 = vector.broadcast %3 : vector<1x192xf32> to vector<160x192xf32>
    %5 = arith.addf %2, %4 : vector<160x192xf32>
    %c0_5 = arith.constant 0 : index
    %c0_6 = arith.constant 0 : index
    %6 = vector.load %arg10[%c0_5, %c0_6] : memref<160x192xf32, #tpu.memory_space<vmem>>, vector<160x192xf32>
    tpu.vector_store %arg10[%c0_5, %c0_6], %5 {strides = array<i32>} : memref<160x192xf32, #tpu.memory_space<vmem>>, vector<160x192xf32>,
    %c0_7 = arith.constant 0 : index
    %c0_8 = arith.constant 0 : index
    %7 = vector.load %arg3[%c0_7, %c0_8] : memref<64x192xf32, #tpu.memory_space<vmem>>, vector<64x192xf32>
    %c0_9 = arith.constant 0 : index
    %c0_10 = arith.constant 0 : index
    %8 = vector.load %arg4[%c0_9, %c0_10] : memref<1x64xf32, #tpu.memory_space<vmem>>, vector<1x64xf32>
    %9 = vector.shape_cast %8 : vector<1x64xf32> to vector<1x64xf32>
    %10 = vector.broadcast %9 : vector<1x64xf32> to vector<8x64xf32>
    %cst_11 = arith.constant 0.000000e+00 : f32
    %11 = vector.broadcast %cst_11 : f32 to vector<8x64xf32>
    %c0_12 = arith.constant 0 : index
    %c0_13 = arith.constant 0 : index
    %12 = vector.load %arg10[%c0_12, %c0_13] : memref<160x192xf32, #tpu.memory_space<vmem>>, vector<8x192xf32>
    %cst_14 = arith.constant dense<0.000000e+00> : vector<8x192xf32>
    %13 = tpu.matmul %11, %7, %cst_14 {dimension_numbers = #tpu.dot_dimension_numbers<[1], [0], [0], [1], [0, 0, 1, 1], [], []>} : vector<8x64xf32>, vector<64x192xf32>, vector<8x192xf32> -> vector<8x192xf32>
    %14 = vector.extract_strided_slice %12 {offsets = [0, 0], sizes = [8, 128], strides = [1, 1]} : vector<8x192xf32> to vector<8x128xf32>
    %15 = vector.extract_strided_slice %13 {offsets = [0, 0], sizes = [8, 128], strides = [1, 1]} : vector<8x192xf32> to vector<8x128xf32>
    %16 = arith.addf %14, %15 : vector<8x128xf32>
    %17 = arith.negf %16 : vector<8x128xf32>
    %18 = math.exp %17 : vector<8x128xf32>
    %cst_15 = arith.constant 1.000000e+00 : f32
    %19 = vector.broadcast %cst_15 : f32 to vector<8x128xf32>
    %20 = arith.addf %19, %18 : vector<8x128xf32>
    %21 = arith.divf %19, %20 : vector<8x128xf32>
    %22 = vector.extract_strided_slice %21 {offsets = [0, 0], sizes = [8, 64], strides = [1, 1]} : vector<8x128xf32> to vector<8x64xf32>
    %23 = vector.extract_strided_slice %21 {offsets = [0, 64], sizes = [8, 64], strides = [1, 1]} : vector<8x128xf32> to vector<8x64xf32>
    %24 = vector.extract_strided_slice %12 {offsets = [0, 128], sizes = [8, 64], strides = [1, 1]} : vector<8x192xf32> to vector<8x64xf32>
    %25 = vector.extract_strided_slice %13 {offsets = [0, 128], sizes = [8, 64], strides = [1, 1]} : vector<8x192xf32> to vector<8x64xf32>
    %26 = arith.addf %25, %10 : vector<8x64xf32>
    %27 = arith.mulf %22, %26 : vector<8x64xf32>
    %28 = arith.addf %24, %27 : vector<8x64xf32>
    %29 = math.tanh %28 : vector<8x64xf32>
    %cst_16 = arith.constant 1.000000e+00 : f32
    %30 = vector.broadcast %cst_16 : f32 to vector<8x64xf32>
    %31 = arith.subf %30, %23 : vector<8x64xf32>
    %32 = arith.mulf %31, %29 : vector<8x64xf32>
    %33 = arith.mulf %23, %11 : vector<8x64xf32>
    %34 = arith.addf %32, %33 : vector<8x64xf32>
    %c0_17 = arith.constant 0 : index
    %c0_18 = arith.constant 0 : index
    %35 = vector.load %arg11[%c0_17, %c0_18] : memref<160x128xf32, #tpu.memory_space<vmem>>, vector<8x64xf32>
    tpu.vector_store %arg11[%c0_17, %c0_18], %34 {strides = array<i32>} : memref<160x128xf32, #tpu.memory_space<vmem>>, vector<8x64xf32>,
    %c152 = arith.constant 152 : index
    %c64 = arith.constant 64 : index
    %36 = vector.load %arg11[%c152, %c64] : memref<160x128xf32, #tpu.memory_space<vmem>>, vector<8x64xf32>
    tpu.vector_store %arg11[%c152, %c64], %34 {strides = array<i32>} : memref<160x128xf32, #tpu.memory_space<vmem>>, vector<8x64xf32>,
    %c8 = arith.constant 8 : index
    %c0_19 = arith.constant 0 : index
    %37 = vector.load %arg10[%c8, %c0_19] : memref<160x192xf32, #tpu.memory_space<vmem>>, vector<8x192xf32>
    %cst_20 = arith.constant dense<0.000000e+00> : vector<8x192xf32>
    %38 = tpu.matmul %34, %7, %cst_20 {dimension_numbers = #tpu.dot_dimension_numbers<[1], [0], [0], [1], [0, 0, 1, 1], [], []>} : vector<8x64xf32>, vector<64x192xf32>, vector<8x192xf32> -> vector<8x192xf32>
    %39 = vector.extract_strided_slice %37 {offsets = [0, 0], sizes = [8, 128], strides = [1, 1]} : vector<8x192xf32> to vector<8x128xf32>
    %40 = vector.extract_strided_slice %38 {offsets = [0, 0], sizes = [8, 128], strides = [1, 1]} : vector<8x192xf32> to vector<8x128xf32>
    %41 = arith.addf %39, %40 : vector<8x128xf32>
    %42 = arith.negf %41 : vector<8x128xf32>
    %43 = math.exp %42 : vector<8x128xf32>
    %cst_21 = arith.constant 1.000000e+00 : f32
    %44 = vector.broadcast %cst_21 : f32 to vector<8x128xf32>
    %45 = arith.addf %44, %43 : vector<8x128xf32>
    %46 = arith.divf %44, %45 : vector<8x128xf32>
    %47 = vector.extract_strided_slice %46 {offsets = [0, 0], sizes = [8, 64], strides = [1, 1]} : vector<8x128xf32> to vector<8x64xf32>
    %48 = vector.extract_strided_slice %46 {offsets = [0, 64], sizes = [8, 64], strides = [1, 1]} : vector<8x128xf32> to vector<8x64xf32>
    %49 = vector.extract_strided_slice %37 {offsets = [0, 128], sizes = [8, 64], strides = [1, 1]} : vector<8x192xf32> to vector<8x64xf32>
    %50 = vector.extract_strided_slice %38 {offsets = [0, 128], sizes = [8, 64], strides = [1, 1]} : vector<8x192xf32> to vector<8x64xf32>
    %51 = arith.addf %50, %10 : vector<8x64xf32>
    %52 = arith.mulf %47, %51 : vector<8x64xf32>
    %53 = arith.addf %49, %52 : vector<8x64xf32>
    %54 = math.tanh %53 : vector<8x64xf32>
    %cst_22 = arith.constant 1.000000e+00 : f32
    %55 = vector.broadcast %cst_22 : f32 to vector<8x64xf32>
    %56 = arith.subf %55, %48 : vector<8x64xf32>
    %57 = arith.mulf %56, %54 : vector<8x64xf32>
    %58 = arith.mulf %48, %34 : vector<8x64xf32>
    %59 = arith.addf %57, %58 : vector<8x64xf32>
    %c8_23 = arith.constant 8 : index
    %c0_24 = arith.constant 0 : index
    %60 = vector.load %arg11[%c8_23, %c0_24] : memref<160x128xf32, #tpu.memory_space<vmem>>, vector<8x64xf32>
    tpu.vector_store %arg11[%c8_23, %c0_24], %59 {strides = array<i32>} : memref<160x128xf32, #tpu.memory_space<vmem>>, vector<8x64xf32>,
    %c144 = arith.constant 144 : index
    %c64_25 = arith.constant 64 : index
    %61 = vector.load %arg11[%c144, %c64_25] : memref<160x128xf32, #tpu.memory_space<vmem>>, vector<8x64xf32>
    tpu.vector_store %arg11[%c144, %c64_25], %59 {strides = array<i32>} : memref<160x128xf32, #tpu.memory_space<vmem>>, vector<8x64xf32>,
    %c16 = arith.constant 16 : index
    %c0_26 = arith.constant 0 : index
    %62 = vector.load %arg10[%c16, %c0_26] : memref<160x192xf32, #tpu.memory_space<vmem>>, vector<8x192xf32>
    %cst_27 = arith.constant dense<0.000000e+00> : vector<8x192xf32>
    %63 = tpu.matmul %59, %7, %cst_27 {dimension_numbers = #tpu.dot_dimension_numbers<[1], [0], [0], [1], [0, 0, 1, 1], [], []>} : vector<8x64xf32>, vector<64x192xf32>, vector<8x192xf32> -> vector<8x192xf32>
    %64 = vector.extract_strided_slice %62 {offsets = [0, 0], sizes = [8, 128], strides = [1, 1]} : vector<8x192xf32> to vector<8x128xf32>
    %65 = vector.extract_strided_slice %63 {offsets = [0, 0], sizes = [8, 128], strides = [1, 1]} : vector<8x192xf32> to vector<8x128xf32>
    %66 = arith.addf %64, %65 : vector<8x128xf32>
    %67 = arith.negf %66 : vector<8x128xf32>
    %68 = math.exp %67 : vector<8x128xf32>
    %cst_28 = arith.constant 1.000000e+00 : f32
    %69 = vector.broadcast %cst_28 : f32 to vector<8x128xf32>
    %70 = arith.addf %69, %68 : vector<8x128xf32>
    %71 = arith.divf %69, %70 : vector<8x128xf32>
    %72 = vector.extract_strided_slice %71 {offsets = [0, 0], sizes = [8, 64], strides = [1, 1]} : vector<8x128xf32> to vector<8x64xf32>
    %73 = vector.extract_strided_slice %71 {offsets = [0, 64], sizes = [8, 64], strides = [1, 1]} : vector<8x128xf32> to vector<8x64xf32>
    %74 = vector.extract_strided_slice %62 {offsets = [0, 128], sizes = [8, 64], strides = [1, 1]} : vector<8x192xf32> to vector<8x64xf32>
    %75 = vector.extract_strided_slice %63 {offsets = [0, 128], sizes = [8, 64], strides = [1, 1]} : vector<8x192xf32> to vector<8x64xf32>
    %76 = arith.addf %75, %10 : vector<8x64xf32>
    %77 = arith.mulf %72, %76 : vector<8x64xf32>
    %78 = arith.addf %74, %77 : vector<8x64xf32>
    %79 = math.tanh %78 : vector<8x64xf32>
    %cst_29 = arith.constant 1.000000e+00 : f32
    %80 = vector.broadcast %cst_29 : f32 to vector<8x64xf32>
    %81 = arith.subf %80, %73 : vector<8x64xf32>
    %82 = arith.mulf %81, %79 : vector<8x64xf32>
    %83 = arith.mulf %73, %59 : vector<8x64xf32>
    %84 = arith.addf %82, %83 : vector<8x64xf32>
    %c16_30 = arith.constant 16 : index
    %c0_31 = arith.constant 0 : index
    %85 = vector.load %arg11[%c16_30, %c0_31] : memref<160x128xf32, #tpu.memory_space<vmem>>, vector<8x64xf32>
    tpu.vector_store %arg11[%c16_30, %c0_31], %84 {strides = array<i32>} : memref<160x128xf32, #tpu.memory_space<vmem>>, vector<8x64xf32>,
    %c136 = arith.constant 136 : index
    %c64_32 = arith.constant 64 : index
    %86 = vector.load %arg11[%c136, %c64_32] : memref<160x128xf32, #tpu.memory_space<vmem>>, vector<8x64xf32>
    tpu.vector_store %arg11[%c136, %c64_32], %84 {strides = array<i32>} : memref<160x128xf32, #tpu.memory_space<vmem>>, vector<8x64xf32>,
    %c24 = arith.constant 24 : index
    %c0_33 = arith.constant 0 : index
    %87 = vector.load %arg10[%c24, %c0_33] : memref<160x192xf32, #tpu.memory_space<vmem>>, vector<8x192xf32>
    %cst_34 = arith.constant dense<0.000000e+00> : vector<8x192xf32>
    %88 = tpu.matmul %84, %7, %cst_34 {dimension_numbers = #tpu.dot_dimension_numbers<[1], [0], [0], [1], [0, 0, 1, 1], [], []>} : vector<8x64xf32>, vector<64x192xf32>, vector<8x192xf32> -> vector<8x192xf32>
    %89 = vector.extract_strided_slice %87 {offsets = [0, 0], sizes = [8, 128], strides = [1, 1]} : vector<8x192xf32> to vector<8x128xf32>
    %90 = vector.extract_strided_slice %88 {offsets = [0, 0], sizes = [8, 128], strides = [1, 1]} : vector<8x192xf32> to vector<8x128xf32>
    %91 = arith.addf %89, %90 : vector<8x128xf32>
    %92 = arith.negf %91 : vector<8x128xf32>
    %93 = math.exp %92 : vector<8x128xf32>
    %cst_35 = arith.constant 1.000000e+00 : f32
    %94 = vector.broadcast %cst_35 : f32 to vector<8x128xf32>
    %95 = arith.addf %94, %93 : vector<8x128xf32>
    %96 = arith.divf %94, %95 : vector<8x128xf32>
    %97 = vector.extract_strided_slice %96 {offsets = [0, 0], sizes = [8, 64], strides = [1, 1]} : vector<8x128xf32> to vector<8x64xf32>
    %98 = vector.extract_strided_slice %96 {offsets = [0, 64], sizes = [8, 64], strides = [1, 1]} : vector<8x128xf32> to vector<8x64xf32>
    %99 = vector.extract_strided_slice %87 {offsets = [0, 128], sizes = [8, 64], strides = [1, 1]} : vector<8x192xf32> to vector<8x64xf32>
    %100 = vector.extract_strided_slice %88 {offsets = [0, 128], sizes = [8, 64], strides = [1, 1]} : vector<8x192xf32> to vector<8x64xf32>
    %101 = arith.addf %100, %10 : vector<8x64xf32>
    %102 = arith.mulf %97, %101 : vector<8x64xf32>
    %103 = arith.addf %99, %102 : vector<8x64xf32>
    %104 = math.tanh %103 : vector<8x64xf32>
    %cst_36 = arith.constant 1.000000e+00 : f32
    %105 = vector.broadcast %cst_36 : f32 to vector<8x64xf32>
    %106 = arith.subf %105, %98 : vector<8x64xf32>
    %107 = arith.mulf %106, %104 : vector<8x64xf32>
    %108 = arith.mulf %98, %84 : vector<8x64xf32>
    %109 = arith.addf %107, %108 : vector<8x64xf32>
    %c24_37 = arith.constant 24 : index
    %c0_38 = arith.constant 0 : index
    %110 = vector.load %arg11[%c24_37, %c0_38] : memref<160x128xf32, #tpu.memory_space<vmem>>, vector<8x64xf32>
    tpu.vector_store %arg11[%c24_37, %c0_38], %109 {strides = array<i32>} : memref<160x128xf32, #tpu.memory_space<vmem>>, vector<8x64xf32>,
    %c128 = arith.constant 128 : index
    %c64_39 = arith.constant 64 : index
    %111 = vector.load %arg11[%c128, %c64_39] : memref<160x128xf32, #tpu.memory_space<vmem>>, vector<8x64xf32>
    tpu.vector_store %arg11[%c128, %c64_39], %109 {strides = array<i32>} : memref<160x128xf32, #tpu.memory_space<vmem>>, vector<8x64xf32>,
    %c32 = arith.constant 32 : index
    %c0_40 = arith.constant 0 : index
    %112 = vector.load %arg10[%c32, %c0_40] : memref<160x192xf32, #tpu.memory_space<vmem>>, vector<8x192xf32>
    %cst_41 = arith.constant dense<0.000000e+00> : vector<8x192xf32>
    %113 = tpu.matmul %109, %7, %cst_41 {dimension_numbers = #tpu.dot_dimension_numbers<[1], [0], [0], [1], [0, 0, 1, 1], [], []>} : vector<8x64xf32>, vector<64x192xf32>, vector<8x192xf32> -> vector<8x192xf32>
    %114 = vector.extract_strided_slice %112 {offsets = [0, 0], sizes = [8, 128], strides = [1, 1]} : vector<8x192xf32> to vector<8x128xf32>
    %115 = vector.extract_strided_slice %113 {offsets = [0, 0], sizes = [8, 128], strides = [1, 1]} : vector<8x192xf32> to vector<8x128xf32>
    %116 = arith.addf %114, %115 : vector<8x128xf32>
    %117 = arith.negf %116 : vector<8x128xf32>
    %118 = math.exp %117 : vector<8x128xf32>
    %cst_42 = arith.constant 1.000000e+00 : f32
    %119 = vector.broadcast %cst_42 : f32 to vector<8x128xf32>
    %120 = arith.addf %119, %118 : vector<8x128xf32>
    %121 = arith.divf %119, %120 : vector<8x128xf32>
    %122 = vector.extract_strided_slice %121 {offsets = [0, 0], sizes = [8, 64], strides = [1, 1]} : vector<8x128xf32> to vector<8x64xf32>
    %123 = vector.extract_strided_slice %121 {offsets = [0, 64], sizes = [8, 64], strides = [1, 1]} : vector<8x128xf32> to vector<8x64xf32>
    %124 = vector.extract_strided_slice %112 {offsets = [0, 128], sizes = [8, 64], strides = [1, 1]} : vector<8x192xf32> to vector<8x64xf32>
    %125 = vector.extract_strided_slice %113 {offsets = [0, 128], sizes = [8, 64], strides = [1, 1]} : vector<8x192xf32> to vector<8x64xf32>
    %126 = arith.addf %125, %10 : vector<8x64xf32>
    %127 = arith.mulf %122, %126 : vector<8x64xf32>
    %128 = arith.addf %124, %127 : vector<8x64xf32>
    %129 = math.tanh %128 : vector<8x64xf32>
    %cst_43 = arith.constant 1.000000e+00 : f32
    %130 = vector.broadcast %cst_43 : f32 to vector<8x64xf32>
    %131 = arith.subf %130, %123 : vector<8x64xf32>
    %132 = arith.mulf %131, %129 : vector<8x64xf32>
    %133 = arith.mulf %123, %109 : vector<8x64xf32>
    %134 = arith.addf %132, %133 : vector<8x64xf32>
    %c32_44 = arith.constant 32 : index
    %c0_45 = arith.constant 0 : index
    %135 = vector.load %arg11[%c32_44, %c0_45] : memref<160x128xf32, #tpu.memory_space<vmem>>, vector<8x64xf32>
    tpu.vector_store %arg11[%c32_44, %c0_45], %134 {strides = array<i32>} : memref<160x128xf32, #tpu.memory_space<vmem>>, vector<8x64xf32>,
    %c120 = arith.constant 120 : index
    %c64_46 = arith.constant 64 : index
    %136 = vector.load %arg11[%c120, %c64_46] : memref<160x128xf32, #tpu.memory_space<vmem>>, vector<8x64xf32>
    tpu.vector_store %arg11[%c120, %c64_46], %134 {strides = array<i32>} : memref<160x128xf32, #tpu.memory_space<vmem>>, vector<8x64xf32>,
    %c40 = arith.constant 40 : index
    %c0_47 = arith.constant 0 : index
    %137 = vector.load %arg10[%c40, %c0_47] : memref<160x192xf32, #tpu.memory_space<vmem>>, vector<8x192xf32>
    %cst_48 = arith.constant dense<0.000000e+00> : vector<8x192xf32>
    %138 = tpu.matmul %134, %7, %cst_48 {dimension_numbers = #tpu.dot_dimension_numbers<[1], [0], [0], [1], [0, 0, 1, 1], [], []>} : vector<8x64xf32>, vector<64x192xf32>, vector<8x192xf32> -> vector<8x192xf32>
    %139 = vector.extract_strided_slice %137 {offsets = [0, 0], sizes = [8, 128], strides = [1, 1]} : vector<8x192xf32> to vector<8x128xf32>
    %140 = vector.extract_strided_slice %138 {offsets = [0, 0], sizes = [8, 128], strides = [1, 1]} : vector<8x192xf32> to vector<8x128xf32>
    %141 = arith.addf %139, %140 : vector<8x128xf32>
    %142 = arith.negf %141 : vector<8x128xf32>
    %143 = math.exp %142 : vector<8x128xf32>
    %cst_49 = arith.constant 1.000000e+00 : f32
    %144 = vector.broadcast %cst_49 : f32 to vector<8x128xf32>
    %145 = arith.addf %144, %143 : vector<8x128xf32>
    %146 = arith.divf %144, %145 : vector<8x128xf32>
    %147 = vector.extract_strided_slice %146 {offsets = [0, 0], sizes = [8, 64], strides = [1, 1]} : vector<8x128xf32> to vector<8x64xf32>
    %148 = vector.extract_strided_slice %146 {offsets = [0, 64], sizes = [8, 64], strides = [1, 1]} : vector<8x128xf32> to vector<8x64xf32>
    %149 = vector.extract_strided_slice %137 {offsets = [0, 128], sizes = [8, 64], strides = [1, 1]} : vector<8x192xf32> to vector<8x64xf32>
    %150 = vector.extract_strided_slice %138 {offsets = [0, 128], sizes = [8, 64], strides = [1, 1]} : vector<8x192xf32> to vector<8x64xf32>
    %151 = arith.addf %150, %10 : vector<8x64xf32>
    %152 = arith.mulf %147, %151 : vector<8x64xf32>
    %153 = arith.addf %149, %152 : vector<8x64xf32>
    %154 = math.tanh %153 : vector<8x64xf32>
    %cst_50 = arith.constant 1.000000e+00 : f32
    %155 = vector.broadcast %cst_50 : f32 to vector<8x64xf32>
    %156 = arith.subf %155, %148 : vector<8x64xf32>
    %157 = arith.mulf %156, %154 : vector<8x64xf32>
    %158 = arith.mulf %148, %134 : vector<8x64xf32>
    %159 = arith.addf %157, %158 : vector<8x64xf32>
    %c40_51 = arith.constant 40 : index
    %c0_52 = arith.constant 0 : index
    %160 = vector.load %arg11[%c40_51, %c0_52] : memref<160x128xf32, #tpu.memory_space<vmem>>, vector<8x64xf32>
    tpu.vector_store %arg11[%c40_51, %c0_52], %159 {strides = array<i32>} : memref<160x128xf32, #tpu.memory_space<vmem>>, vector<8x64xf32>,
    %c112 = arith.constant 112 : index
    %c64_53 = arith.constant 64 : index
    %161 = vector.load %arg11[%c112, %c64_53] : memref<160x128xf32, #tpu.memory_space<vmem>>, vector<8x64xf32>
    tpu.vector_store %arg11[%c112, %c64_53], %159 {strides = array<i32>} : memref<160x128xf32, #tpu.memory_space<vmem>>, vector<8x64xf32>,
    %c48 = arith.constant 48 : index
    %c0_54 = arith.constant 0 : index
    %162 = vector.load %arg10[%c48, %c0_54] : memref<160x192xf32, #tpu.memory_space<vmem>>, vector<8x192xf32>
    %cst_55 = arith.constant dense<0.000000e+00> : vector<8x192xf32>
    %163 = tpu.matmul %159, %7, %cst_55 {dimension_numbers = #tpu.dot_dimension_numbers<[1], [0], [0], [1], [0, 0, 1, 1], [], []>} : vector<8x64xf32>, vector<64x192xf32>, vector<8x192xf32> -> vector<8x192xf32>
    %164 = vector.extract_strided_slice %162 {offsets = [0, 0], sizes = [8, 128], strides = [1, 1]} : vector<8x192xf32> to vector<8x128xf32>
    %165 = vector.extract_strided_slice %163 {offsets = [0, 0], sizes = [8, 128], strides = [1, 1]} : vector<8x192xf32> to vector<8x128xf32>
    %166 = arith.addf %164, %165 : vector<8x128xf32>
    %167 = arith.negf %166 : vector<8x128xf32>
    %168 = math.exp %167 : vector<8x128xf32>
    %cst_56 = arith.constant 1.000000e+00 : f32
    %169 = vector.broadcast %cst_56 : f32 to vector<8x128xf32>
    %170 = arith.addf %169, %168 : vector<8x128xf32>
    %171 = arith.divf %169, %170 : vector<8x128xf32>
    %172 = vector.extract_strided_slice %171 {offsets = [0, 0], sizes = [8, 64], strides = [1, 1]} : vector<8x128xf32> to vector<8x64xf32>
    %173 = vector.extract_strided_slice %171 {offsets = [0, 64], sizes = [8, 64], strides = [1, 1]} : vector<8x128xf32> to vector<8x64xf32>
    %174 = vector.extract_strided_slice %162 {offsets = [0, 128], sizes = [8, 64], strides = [1, 1]} : vector<8x192xf32> to vector<8x64xf32>
    %175 = vector.extract_strided_slice %163 {offsets = [0, 128], sizes = [8, 64], strides = [1, 1]} : vector<8x192xf32> to vector<8x64xf32>
    %176 = arith.addf %175, %10 : vector<8x64xf32>
    %177 = arith.mulf %172, %176 : vector<8x64xf32>
    %178 = arith.addf %174, %177 : vector<8x64xf32>
    %179 = math.tanh %178 : vector<8x64xf32>
    %cst_57 = arith.constant 1.000000e+00 : f32
    %180 = vector.broadcast %cst_57 : f32 to vector<8x64xf32>
    %181 = arith.subf %180, %173 : vector<8x64xf32>
    %182 = arith.mulf %181, %179 : vector<8x64xf32>
    %183 = arith.mulf %173, %159 : vector<8x64xf32>
    %184 = arith.addf %182, %183 : vector<8x64xf32>
    %c48_58 = arith.constant 48 : index
    %c0_59 = arith.constant 0 : index
    %185 = vector.load %arg11[%c48_58, %c0_59] : memref<160x128xf32, #tpu.memory_space<vmem>>, vector<8x64xf32>
    tpu.vector_store %arg11[%c48_58, %c0_59], %184 {strides = array<i32>} : memref<160x128xf32, #tpu.memory_space<vmem>>, vector<8x64xf32>,
    %c104 = arith.constant 104 : index
    %c64_60 = arith.constant 64 : index
    %186 = vector.load %arg11[%c104, %c64_60] : memref<160x128xf32, #tpu.memory_space<vmem>>, vector<8x64xf32>
    tpu.vector_store %arg11[%c104, %c64_60], %184 {strides = array<i32>} : memref<160x128xf32, #tpu.memory_space<vmem>>, vector<8x64xf32>,
    %c56 = arith.constant 56 : index
    %c0_61 = arith.constant 0 : index
    %187 = vector.load %arg10[%c56, %c0_61] : memref<160x192xf32, #tpu.memory_space<vmem>>, vector<8x192xf32>
    %cst_62 = arith.constant dense<0.000000e+00> : vector<8x192xf32>
    %188 = tpu.matmul %184, %7, %cst_62 {dimension_numbers = #tpu.dot_dimension_numbers<[1], [0], [0], [1], [0, 0, 1, 1], [], []>} : vector<8x64xf32>, vector<64x192xf32>, vector<8x192xf32> -> vector<8x192xf32>
    %189 = vector.extract_strided_slice %187 {offsets = [0, 0], sizes = [8, 128], strides = [1, 1]} : vector<8x192xf32> to vector<8x128xf32>
    %190 = vector.extract_strided_slice %188 {offsets = [0, 0], sizes = [8, 128], strides = [1, 1]} : vector<8x192xf32> to vector<8x128xf32>
    %191 = arith.addf %189, %190 : vector<8x128xf32>
    %192 = arith.negf %191 : vector<8x128xf32>
    %193 = math.exp %192 : vector<8x128xf32>
    %cst_63 = arith.constant 1.000000e+00 : f32
    %194 = vector.broadcast %cst_63 : f32 to vector<8x128xf32>
    %195 = arith.addf %194, %193 : vector<8x128xf32>
    %196 = arith.divf %194, %195 : vector<8x128xf32>
    %197 = vector.extract_strided_slice %196 {offsets = [0, 0], sizes = [8, 64], strides = [1, 1]} : vector<8x128xf32> to vector<8x64xf32>
    %198 = vector.extract_strided_slice %196 {offsets = [0, 64], sizes = [8, 64], strides = [1, 1]} : vector<8x128xf32> to vector<8x64xf32>
    %199 = vector.extract_strided_slice %187 {offsets = [0, 128], sizes = [8, 64], strides = [1, 1]} : vector<8x192xf32> to vector<8x64xf32>
    %200 = vector.extract_strided_slice %188 {offsets = [0, 128], sizes = [8, 64], strides = [1, 1]} : vector<8x192xf32> to vector<8x64xf32>
    %201 = arith.addf %200, %10 : vector<8x64xf32>
    %202 = arith.mulf %197, %201 : vector<8x64xf32>
    %203 = arith.addf %199, %202 : vector<8x64xf32>
    %204 = math.tanh %203 : vector<8x64xf32>
    %cst_64 = arith.constant 1.000000e+00 : f32
    %205 = vector.broadcast %cst_64 : f32 to vector<8x64xf32>
    %206 = arith.subf %205, %198 : vector<8x64xf32>
    %207 = arith.mulf %206, %204 : vector<8x64xf32>
    %208 = arith.mulf %198, %184 : vector<8x64xf32>
    %209 = arith.addf %207, %208 : vector<8x64xf32>
    %c56_65 = arith.constant 56 : index
    %c0_66 = arith.constant 0 : index
    %210 = vector.load %arg11[%c56_65, %c0_66] : memref<160x128xf32, #tpu.memory_space<vmem>>, vector<8x64xf32>
    tpu.vector_store %arg11[%c56_65, %c0_66], %209 {strides = array<i32>} : memref<160x128xf32, #tpu.memory_space<vmem>>, vector<8x64xf32>,
    %c96 = arith.constant 96 : index
    %c64_67 = arith.constant 64 : index
    %211 = vector.load %arg11[%c96, %c64_67] : memref<160x128xf32, #tpu.memory_space<vmem>>, vector<8x64xf32>
    tpu.vector_store %arg11[%c96, %c64_67], %209 {strides = array<i32>} : memref<160x128xf32, #tpu.memory_space<vmem>>, vector<8x64xf32>,
    %c64_68 = arith.constant 64 : index
    %c0_69 = arith.constant 0 : index
    %212 = vector.load %arg10[%c64_68, %c0_69] : memref<160x192xf32, #tpu.memory_space<vmem>>, vector<8x192xf32>
    %cst_70 = arith.constant dense<0.000000e+00> : vector<8x192xf32>
    %213 = tpu.matmul %209, %7, %cst_70 {dimension_numbers = #tpu.dot_dimension_numbers<[1], [0], [0], [1], [0, 0, 1, 1], [], []>} : vector<8x64xf32>, vector<64x192xf32>, vector<8x192xf32> -> vector<8x192xf32>
    %214 = vector.extract_strided_slice %212 {offsets = [0, 0], sizes = [8, 128], strides = [1, 1]} : vector<8x192xf32> to vector<8x128xf32>
    %215 = vector.extract_strided_slice %213 {offsets = [0, 0], sizes = [8, 128], strides = [1, 1]} : vector<8x192xf32> to vector<8x128xf32>
    %216 = arith.addf %214, %215 : vector<8x128xf32>
    %217 = arith.negf %216 : vector<8x128xf32>
    %218 = math.exp %217 : vector<8x128xf32>
    %cst_71 = arith.constant 1.000000e+00 : f32
    %219 = vector.broadcast %cst_71 : f32 to vector<8x128xf32>
    %220 = arith.addf %219, %218 : vector<8x128xf32>
    %221 = arith.divf %219, %220 : vector<8x128xf32>
    %222 = vector.extract_strided_slice %221 {offsets = [0, 0], sizes = [8, 64], strides = [1, 1]} : vector<8x128xf32> to vector<8x64xf32>
    %223 = vector.extract_strided_slice %221 {offsets = [0, 64], sizes = [8, 64], strides = [1, 1]} : vector<8x128xf32> to vector<8x64xf32>
    %224 = vector.extract_strided_slice %212 {offsets = [0, 128], sizes = [8, 64], strides = [1, 1]} : vector<8x192xf32> to vector<8x64xf32>
    %225 = vector.extract_strided_slice %213 {offsets = [0, 128], sizes = [8, 64], strides = [1, 1]} : vector<8x192xf32> to vector<8x64xf32>
    %226 = arith.addf %225, %10 : vector<8x64xf32>
    %227 = arith.mulf %222, %226 : vector<8x64xf32>
    %228 = arith.addf %224, %227 : vector<8x64xf32>
    %229 = math.tanh %228 : vector<8x64xf32>
    %cst_72 = arith.constant 1.000000e+00 : f32
    %230 = vector.broadcast %cst_72 : f32 to vector<8x64xf32>
    %231 = arith.subf %230, %223 : vector<8x64xf32>
    %232 = arith.mulf %231, %229 : vector<8x64xf32>
    %233 = arith.mulf %223, %209 : vector<8x64xf32>
    %234 = arith.addf %232, %233 : vector<8x64xf32>
    %c64_73 = arith.constant 64 : index
    %c0_74 = arith.constant 0 : index
    %235 = vector.load %arg11[%c64_73, %c0_74] : memref<160x128xf32, #tpu.memory_space<vmem>>, vector<8x64xf32>
    tpu.vector_store %arg11[%c64_73, %c0_74], %234 {strides = array<i32>} : memref<160x128xf32, #tpu.memory_space<vmem>>, vector<8x64xf32>,
    %c88 = arith.constant 88 : index
    %c64_75 = arith.constant 64 : index
    %236 = vector.load %arg11[%c88, %c64_75] : memref<160x128xf32, #tpu.memory_space<vmem>>, vector<8x64xf32>
    tpu.vector_store %arg11[%c88, %c64_75], %234 {strides = array<i32>} : memref<160x128xf32, #tpu.memory_space<vmem>>, vector<8x64xf32>,
    %c72 = arith.constant 72 : index
    %c0_76 = arith.constant 0 : index
    %237 = vector.load %arg10[%c72, %c0_76] : memref<160x192xf32, #tpu.memory_space<vmem>>, vector<8x192xf32>
    %cst_77 = arith.constant dense<0.000000e+00> : vector<8x192xf32>
    %238 = tpu.matmul %234, %7, %cst_77 {dimension_numbers = #tpu.dot_dimension_numbers<[1], [0], [0], [1], [0, 0, 1, 1], [], []>} : vector<8x64xf32>, vector<64x192xf32>, vector<8x192xf32> -> vector<8x192xf32>
    %239 = vector.extract_strided_slice %237 {offsets = [0, 0], sizes = [8, 128], strides = [1, 1]} : vector<8x192xf32> to vector<8x128xf32>
    %240 = vector.extract_strided_slice %238 {offsets = [0, 0], sizes = [8, 128], strides = [1, 1]} : vector<8x192xf32> to vector<8x128xf32>
    %241 = arith.addf %239, %240 : vector<8x128xf32>
    %242 = arith.negf %241 : vector<8x128xf32>
    %243 = math.exp %242 : vector<8x128xf32>
    %cst_78 = arith.constant 1.000000e+00 : f32
    %244 = vector.broadcast %cst_78 : f32 to vector<8x128xf32>
    %245 = arith.addf %244, %243 : vector<8x128xf32>
    %246 = arith.divf %244, %245 : vector<8x128xf32>
    %247 = vector.extract_strided_slice %246 {offsets = [0, 0], sizes = [8, 64], strides = [1, 1]} : vector<8x128xf32> to vector<8x64xf32>
    %248 = vector.extract_strided_slice %246 {offsets = [0, 64], sizes = [8, 64], strides = [1, 1]} : vector<8x128xf32> to vector<8x64xf32>
    %249 = vector.extract_strided_slice %237 {offsets = [0, 128], sizes = [8, 64], strides = [1, 1]} : vector<8x192xf32> to vector<8x64xf32>
    %250 = vector.extract_strided_slice %238 {offsets = [0, 128], sizes = [8, 64], strides = [1, 1]} : vector<8x192xf32> to vector<8x64xf32>
    %251 = arith.addf %250, %10 : vector<8x64xf32>
    %252 = arith.mulf %247, %251 : vector<8x64xf32>
    %253 = arith.addf %249, %252 : vector<8x64xf32>
    %254 = math.tanh %253 : vector<8x64xf32>
    %cst_79 = arith.constant 1.000000e+00 : f32
    %255 = vector.broadcast %cst_79 : f32 to vector<8x64xf32>
    %256 = arith.subf %255, %248 : vector<8x64xf32>
    %257 = arith.mulf %256, %254 : vector<8x64xf32>
    %258 = arith.mulf %248, %234 : vector<8x64xf32>
    %259 = arith.addf %257, %258 : vector<8x64xf32>
    %c72_80 = arith.constant 72 : index
    %c0_81 = arith.constant 0 : index
    %260 = vector.load %arg11[%c72_80, %c0_81] : memref<160x128xf32, #tpu.memory_space<vmem>>, vector<8x64xf32>
    tpu.vector_store %arg11[%c72_80, %c0_81], %259 {strides = array<i32>} : memref<160x128xf32, #tpu.memory_space<vmem>>, vector<8x64xf32>,
    %c80 = arith.constant 80 : index
    %c64_82 = arith.constant 64 : index
    %261 = vector.load %arg11[%c80, %c64_82] : memref<160x128xf32, #tpu.memory_space<vmem>>, vector<8x64xf32>
    tpu.vector_store %arg11[%c80, %c64_82], %259 {strides = array<i32>} : memref<160x128xf32, #tpu.memory_space<vmem>>, vector<8x64xf32>,
    %c80_83 = arith.constant 80 : index
    %c0_84 = arith.constant 0 : index
    %262 = vector.load %arg10[%c80_83, %c0_84] : memref<160x192xf32, #tpu.memory_space<vmem>>, vector<8x192xf32>
    %cst_85 = arith.constant dense<0.000000e+00> : vector<8x192xf32>
    %263 = tpu.matmul %259, %7, %cst_85 {dimension_numbers = #tpu.dot_dimension_numbers<[1], [0], [0], [1], [0, 0, 1, 1], [], []>} : vector<8x64xf32>, vector<64x192xf32>, vector<8x192xf32> -> vector<8x192xf32>
    %264 = vector.extract_strided_slice %262 {offsets = [0, 0], sizes = [8, 128], strides = [1, 1]} : vector<8x192xf32> to vector<8x128xf32>
    %265 = vector.extract_strided_slice %263 {offsets = [0, 0], sizes = [8, 128], strides = [1, 1]} : vector<8x192xf32> to vector<8x128xf32>
    %266 = arith.addf %264, %265 : vector<8x128xf32>
    %267 = arith.negf %266 : vector<8x128xf32>
    %268 = math.exp %267 : vector<8x128xf32>
    %cst_86 = arith.constant 1.000000e+00 : f32
    %269 = vector.broadcast %cst_86 : f32 to vector<8x128xf32>
    %270 = arith.addf %269, %268 : vector<8x128xf32>
    %271 = arith.divf %269, %270 : vector<8x128xf32>
    %272 = vector.extract_strided_slice %271 {offsets = [0, 0], sizes = [8, 64], strides = [1, 1]} : vector<8x128xf32> to vector<8x64xf32>
    %273 = vector.extract_strided_slice %271 {offsets = [0, 64], sizes = [8, 64], strides = [1, 1]} : vector<8x128xf32> to vector<8x64xf32>
    %274 = vector.extract_strided_slice %262 {offsets = [0, 128], sizes = [8, 64], strides = [1, 1]} : vector<8x192xf32> to vector<8x64xf32>
    %275 = vector.extract_strided_slice %263 {offsets = [0, 128], sizes = [8, 64], strides = [1, 1]} : vector<8x192xf32> to vector<8x64xf32>
    %276 = arith.addf %275, %10 : vector<8x64xf32>
    %277 = arith.mulf %272, %276 : vector<8x64xf32>
    %278 = arith.addf %274, %277 : vector<8x64xf32>
    %279 = math.tanh %278 : vector<8x64xf32>
    %cst_87 = arith.constant 1.000000e+00 : f32
    %280 = vector.broadcast %cst_87 : f32 to vector<8x64xf32>
    %281 = arith.subf %280, %273 : vector<8x64xf32>
    %282 = arith.mulf %281, %279 : vector<8x64xf32>
    %283 = arith.mulf %273, %259 : vector<8x64xf32>
    %284 = arith.addf %282, %283 : vector<8x64xf32>
    %c80_88 = arith.constant 80 : index
    %c0_89 = arith.constant 0 : index
    %285 = vector.load %arg11[%c80_88, %c0_89] : memref<160x128xf32, #tpu.memory_space<vmem>>, vector<8x64xf32>
    tpu.vector_store %arg11[%c80_88, %c0_89], %284 {strides = array<i32>} : memref<160x128xf32, #tpu.memory_space<vmem>>, vector<8x64xf32>,
    %c72_90 = arith.constant 72 : index
    %c64_91 = arith.constant 64 : index
    %286 = vector.load %arg11[%c72_90, %c64_91] : memref<160x128xf32, #tpu.memory_space<vmem>>, vector<8x64xf32>
    tpu.vector_store %arg11[%c72_90, %c64_91], %284 {strides = array<i32>} : memref<160x128xf32, #tpu.memory_space<vmem>>, vector<8x64xf32>,
    %c88_92 = arith.constant 88 : index
    %c0_93 = arith.constant 0 : index
    %287 = vector.load %arg10[%c88_92, %c0_93] : memref<160x192xf32, #tpu.memory_space<vmem>>, vector<8x192xf32>
    %cst_94 = arith.constant dense<0.000000e+00> : vector<8x192xf32>
    %288 = tpu.matmul %284, %7, %cst_94 {dimension_numbers = #tpu.dot_dimension_numbers<[1], [0], [0], [1], [0, 0, 1, 1], [], []>} : vector<8x64xf32>, vector<64x192xf32>, vector<8x192xf32> -> vector<8x192xf32>
    %289 = vector.extract_strided_slice %287 {offsets = [0, 0], sizes = [8, 128], strides = [1, 1]} : vector<8x192xf32> to vector<8x128xf32>
    %290 = vector.extract_strided_slice %288 {offsets = [0, 0], sizes = [8, 128], strides = [1, 1]} : vector<8x192xf32> to vector<8x128xf32>
    %291 = arith.addf %289, %290 : vector<8x128xf32>
    %292 = arith.negf %291 : vector<8x128xf32>
    %293 = math.exp %292 : vector<8x128xf32>
    %cst_95 = arith.constant 1.000000e+00 : f32
    %294 = vector.broadcast %cst_95 : f32 to vector<8x128xf32>
    %295 = arith.addf %294, %293 : vector<8x128xf32>
    %296 = arith.divf %294, %295 : vector<8x128xf32>
    %297 = vector.extract_strided_slice %296 {offsets = [0, 0], sizes = [8, 64], strides = [1, 1]} : vector<8x128xf32> to vector<8x64xf32>
    %298 = vector.extract_strided_slice %296 {offsets = [0, 64], sizes = [8, 64], strides = [1, 1]} : vector<8x128xf32> to vector<8x64xf32>
    %299 = vector.extract_strided_slice %287 {offsets = [0, 128], sizes = [8, 64], strides = [1, 1]} : vector<8x192xf32> to vector<8x64xf32>
    %300 = vector.extract_strided_slice %288 {offsets = [0, 128], sizes = [8, 64], strides = [1, 1]} : vector<8x192xf32> to vector<8x64xf32>
    %301 = arith.addf %300, %10 : vector<8x64xf32>
    %302 = arith.mulf %297, %301 : vector<8x64xf32>
    %303 = arith.addf %299, %302 : vector<8x64xf32>
    %304 = math.tanh %303 : vector<8x64xf32>
    %cst_96 = arith.constant 1.000000e+00 : f32
    %305 = vector.broadcast %cst_96 : f32 to vector<8x64xf32>
    %306 = arith.subf %305, %298 : vector<8x64xf32>
    %307 = arith.mulf %306, %304 : vector<8x64xf32>
    %308 = arith.mulf %298, %284 : vector<8x64xf32>
    %309 = arith.addf %307, %308 : vector<8x64xf32>
    %c88_97 = arith.constant 88 : index
    %c0_98 = arith.constant 0 : index
    %310 = vector.load %arg11[%c88_97, %c0_98] : memref<160x128xf32, #tpu.memory_space<vmem>>, vector<8x64xf32>
    tpu.vector_store %arg11[%c88_97, %c0_98], %309 {strides = array<i32>} : memref<160x128xf32, #tpu.memory_space<vmem>>, vector<8x64xf32>,
    %c64_99 = arith.constant 64 : index
    %c64_100 = arith.constant 64 : index
    %311 = vector.load %arg11[%c64_99, %c64_100] : memref<160x128xf32, #tpu.memory_space<vmem>>, vector<8x64xf32>
    tpu.vector_store %arg11[%c64_99, %c64_100], %309 {strides = array<i32>} : memref<160x128xf32, #tpu.memory_space<vmem>>, vector<8x64xf32>,
    %c96_101 = arith.constant 96 : index
    %c0_102 = arith.constant 0 : index
    %312 = vector.load %arg10[%c96_101, %c0_102] : memref<160x192xf32, #tpu.memory_space<vmem>>, vector<8x192xf32>
    %cst_103 = arith.constant dense<0.000000e+00> : vector<8x192xf32>
    %313 = tpu.matmul %309, %7, %cst_103 {dimension_numbers = #tpu.dot_dimension_numbers<[1], [0], [0], [1], [0, 0, 1, 1], [], []>} : vector<8x64xf32>, vector<64x192xf32>, vector<8x192xf32> -> vector<8x192xf32>
    %314 = vector.extract_strided_slice %312 {offsets = [0, 0], sizes = [8, 128], strides = [1, 1]} : vector<8x192xf32> to vector<8x128xf32>
    %315 = vector.extract_strided_slice %313 {offsets = [0, 0], sizes = [8, 128], strides = [1, 1]} : vector<8x192xf32> to vector<8x128xf32>
    %316 = arith.addf %314, %315 : vector<8x128xf32>
    %317 = arith.negf %316 : vector<8x128xf32>
    %318 = math.exp %317 : vector<8x128xf32>
    %cst_104 = arith.constant 1.000000e+00 : f32
    %319 = vector.broadcast %cst_104 : f32 to vector<8x128xf32>
    %320 = arith.addf %319, %318 : vector<8x128xf32>
    %321 = arith.divf %319, %320 : vector<8x128xf32>
    %322 = vector.extract_strided_slice %321 {offsets = [0, 0], sizes = [8, 64], strides = [1, 1]} : vector<8x128xf32> to vector<8x64xf32>
    %323 = vector.extract_strided_slice %321 {offsets = [0, 64], sizes = [8, 64], strides = [1, 1]} : vector<8x128xf32> to vector<8x64xf32>
    %324 = vector.extract_strided_slice %312 {offsets = [0, 128], sizes = [8, 64], strides = [1, 1]} : vector<8x192xf32> to vector<8x64xf32>
    %325 = vector.extract_strided_slice %313 {offsets = [0, 128], sizes = [8, 64], strides = [1, 1]} : vector<8x192xf32> to vector<8x64xf32>
    %326 = arith.addf %325, %10 : vector<8x64xf32>
    %327 = arith.mulf %322, %326 : vector<8x64xf32>
    %328 = arith.addf %324, %327 : vector<8x64xf32>
    %329 = math.tanh %328 : vector<8x64xf32>
    %cst_105 = arith.constant 1.000000e+00 : f32
    %330 = vector.broadcast %cst_105 : f32 to vector<8x64xf32>
    %331 = arith.subf %330, %323 : vector<8x64xf32>
    %332 = arith.mulf %331, %329 : vector<8x64xf32>
    %333 = arith.mulf %323, %309 : vector<8x64xf32>
    %334 = arith.addf %332, %333 : vector<8x64xf32>
    %c96_106 = arith.constant 96 : index
    %c0_107 = arith.constant 0 : index
    %335 = vector.load %arg11[%c96_106, %c0_107] : memref<160x128xf32, #tpu.memory_space<vmem>>, vector<8x64xf32>
    tpu.vector_store %arg11[%c96_106, %c0_107], %334 {strides = array<i32>} : memref<160x128xf32, #tpu.memory_space<vmem>>, vector<8x64xf32>,
    %c56_108 = arith.constant 56 : index
    %c64_109 = arith.constant 64 : index
    %336 = vector.load %arg11[%c56_108, %c64_109] : memref<160x128xf32, #tpu.memory_space<vmem>>, vector<8x64xf32>
    tpu.vector_store %arg11[%c56_108, %c64_109], %334 {strides = array<i32>} : memref<160x128xf32, #tpu.memory_space<vmem>>, vector<8x64xf32>,
    %c104_110 = arith.constant 104 : index
    %c0_111 = arith.constant 0 : index
    %337 = vector.load %arg10[%c104_110, %c0_111] : memref<160x192xf32, #tpu.memory_space<vmem>>, vector<8x192xf32>
    %cst_112 = arith.constant dense<0.000000e+00> : vector<8x192xf32>
    %338 = tpu.matmul %334, %7, %cst_112 {dimension_numbers = #tpu.dot_dimension_numbers<[1], [0], [0], [1], [0, 0, 1, 1], [], []>} : vector<8x64xf32>, vector<64x192xf32>, vector<8x192xf32> -> vector<8x192xf32>
    %339 = vector.extract_strided_slice %337 {offsets = [0, 0], sizes = [8, 128], strides = [1, 1]} : vector<8x192xf32> to vector<8x128xf32>
    %340 = vector.extract_strided_slice %338 {offsets = [0, 0], sizes = [8, 128], strides = [1, 1]} : vector<8x192xf32> to vector<8x128xf32>
    %341 = arith.addf %339, %340 : vector<8x128xf32>
    %342 = arith.negf %341 : vector<8x128xf32>
    %343 = math.exp %342 : vector<8x128xf32>
    %cst_113 = arith.constant 1.000000e+00 : f32
    %344 = vector.broadcast %cst_113 : f32 to vector<8x128xf32>
    %345 = arith.addf %344, %343 : vector<8x128xf32>
    %346 = arith.divf %344, %345 : vector<8x128xf32>
    %347 = vector.extract_strided_slice %346 {offsets = [0, 0], sizes = [8, 64], strides = [1, 1]} : vector<8x128xf32> to vector<8x64xf32>
    %348 = vector.extract_strided_slice %346 {offsets = [0, 64], sizes = [8, 64], strides = [1, 1]} : vector<8x128xf32> to vector<8x64xf32>
    %349 = vector.extract_strided_slice %337 {offsets = [0, 128], sizes = [8, 64], strides = [1, 1]} : vector<8x192xf32> to vector<8x64xf32>
    %350 = vector.extract_strided_slice %338 {offsets = [0, 128], sizes = [8, 64], strides = [1, 1]} : vector<8x192xf32> to vector<8x64xf32>
    %351 = arith.addf %350, %10 : vector<8x64xf32>
    %352 = arith.mulf %347, %351 : vector<8x64xf32>
    %353 = arith.addf %349, %352 : vector<8x64xf32>
    %354 = math.tanh %353 : vector<8x64xf32>
    %cst_114 = arith.constant 1.000000e+00 : f32
    %355 = vector.broadcast %cst_114 : f32 to vector<8x64xf32>
    %356 = arith.subf %355, %348 : vector<8x64xf32>
    %357 = arith.mulf %356, %354 : vector<8x64xf32>
    %358 = arith.mulf %348, %334 : vector<8x64xf32>
    %359 = arith.addf %357, %358 : vector<8x64xf32>
    %c104_115 = arith.constant 104 : index
    %c0_116 = arith.constant 0 : index
    %360 = vector.load %arg11[%c104_115, %c0_116] : memref<160x128xf32, #tpu.memory_space<vmem>>, vector<8x64xf32>
    tpu.vector_store %arg11[%c104_115, %c0_116], %359 {strides = array<i32>} : memref<160x128xf32, #tpu.memory_space<vmem>>, vector<8x64xf32>,
    %c48_117 = arith.constant 48 : index
    %c64_118 = arith.constant 64 : index
    %361 = vector.load %arg11[%c48_117, %c64_118] : memref<160x128xf32, #tpu.memory_space<vmem>>, vector<8x64xf32>
    tpu.vector_store %arg11[%c48_117, %c64_118], %359 {strides = array<i32>} : memref<160x128xf32, #tpu.memory_space<vmem>>, vector<8x64xf32>,
    %c112_119 = arith.constant 112 : index
    %c0_120 = arith.constant 0 : index
    %362 = vector.load %arg10[%c112_119, %c0_120] : memref<160x192xf32, #tpu.memory_space<vmem>>, vector<8x192xf32>
    %cst_121 = arith.constant dense<0.000000e+00> : vector<8x192xf32>
    %363 = tpu.matmul %359, %7, %cst_121 {dimension_numbers = #tpu.dot_dimension_numbers<[1], [0], [0], [1], [0, 0, 1, 1], [], []>} : vector<8x64xf32>, vector<64x192xf32>, vector<8x192xf32> -> vector<8x192xf32>
    %364 = vector.extract_strided_slice %362 {offsets = [0, 0], sizes = [8, 128], strides = [1, 1]} : vector<8x192xf32> to vector<8x128xf32>
    %365 = vector.extract_strided_slice %363 {offsets = [0, 0], sizes = [8, 128], strides = [1, 1]} : vector<8x192xf32> to vector<8x128xf32>
    %366 = arith.addf %364, %365 : vector<8x128xf32>
    %367 = arith.negf %366 : vector<8x128xf32>
    %368 = math.exp %367 : vector<8x128xf32>
    %cst_122 = arith.constant 1.000000e+00 : f32
    %369 = vector.broadcast %cst_122 : f32 to vector<8x128xf32>
    %370 = arith.addf %369, %368 : vector<8x128xf32>
    %371 = arith.divf %369, %370 : vector<8x128xf32>
    %372 = vector.extract_strided_slice %371 {offsets = [0, 0], sizes = [8, 64], strides = [1, 1]} : vector<8x128xf32> to vector<8x64xf32>
    %373 = vector.extract_strided_slice %371 {offsets = [0, 64], sizes = [8, 64], strides = [1, 1]} : vector<8x128xf32> to vector<8x64xf32>
    %374 = vector.extract_strided_slice %362 {offsets = [0, 128], sizes = [8, 64], strides = [1, 1]} : vector<8x192xf32> to vector<8x64xf32>
    %375 = vector.extract_strided_slice %363 {offsets = [0, 128], sizes = [8, 64], strides = [1, 1]} : vector<8x192xf32> to vector<8x64xf32>
    %376 = arith.addf %375, %10 : vector<8x64xf32>
    %377 = arith.mulf %372, %376 : vector<8x64xf32>
    %378 = arith.addf %374, %377 : vector<8x64xf32>
    %379 = math.tanh %378 : vector<8x64xf32>
    %cst_123 = arith.constant 1.000000e+00 : f32
    %380 = vector.broadcast %cst_123 : f32 to vector<8x64xf32>
    %381 = arith.subf %380, %373 : vector<8x64xf32>
    %382 = arith.mulf %381, %379 : vector<8x64xf32>
    %383 = arith.mulf %373, %359 : vector<8x64xf32>
    %384 = arith.addf %382, %383 : vector<8x64xf32>
    %c112_124 = arith.constant 112 : index
    %c0_125 = arith.constant 0 : index
    %385 = vector.load %arg11[%c112_124, %c0_125] : memref<160x128xf32, #tpu.memory_space<vmem>>, vector<8x64xf32>
    tpu.vector_store %arg11[%c112_124, %c0_125], %384 {strides = array<i32>} : memref<160x128xf32, #tpu.memory_space<vmem>>, vector<8x64xf32>,
    %c40_126 = arith.constant 40 : index
    %c64_127 = arith.constant 64 : index
    %386 = vector.load %arg11[%c40_126, %c64_127] : memref<160x128xf32, #tpu.memory_space<vmem>>, vector<8x64xf32>
    tpu.vector_store %arg11[%c40_126, %c64_127], %384 {strides = array<i32>} : memref<160x128xf32, #tpu.memory_space<vmem>>, vector<8x64xf32>,
    %c120_128 = arith.constant 120 : index
    %c0_129 = arith.constant 0 : index
    %387 = vector.load %arg10[%c120_128, %c0_129] : memref<160x192xf32, #tpu.memory_space<vmem>>, vector<8x192xf32>
    %cst_130 = arith.constant dense<0.000000e+00> : vector<8x192xf32>
    %388 = tpu.matmul %384, %7, %cst_130 {dimension_numbers = #tpu.dot_dimension_numbers<[1], [0], [0], [1], [0, 0, 1, 1], [], []>} : vector<8x64xf32>, vector<64x192xf32>, vector<8x192xf32> -> vector<8x192xf32>
    %389 = vector.extract_strided_slice %387 {offsets = [0, 0], sizes = [8, 128], strides = [1, 1]} : vector<8x192xf32> to vector<8x128xf32>
    %390 = vector.extract_strided_slice %388 {offsets = [0, 0], sizes = [8, 128], strides = [1, 1]} : vector<8x192xf32> to vector<8x128xf32>
    %391 = arith.addf %389, %390 : vector<8x128xf32>
    %392 = arith.negf %391 : vector<8x128xf32>
    %393 = math.exp %392 : vector<8x128xf32>
    %cst_131 = arith.constant 1.000000e+00 : f32
    %394 = vector.broadcast %cst_131 : f32 to vector<8x128xf32>
    %395 = arith.addf %394, %393 : vector<8x128xf32>
    %396 = arith.divf %394, %395 : vector<8x128xf32>
    %397 = vector.extract_strided_slice %396 {offsets = [0, 0], sizes = [8, 64], strides = [1, 1]} : vector<8x128xf32> to vector<8x64xf32>
    %398 = vector.extract_strided_slice %396 {offsets = [0, 64], sizes = [8, 64], strides = [1, 1]} : vector<8x128xf32> to vector<8x64xf32>
    %399 = vector.extract_strided_slice %387 {offsets = [0, 128], sizes = [8, 64], strides = [1, 1]} : vector<8x192xf32> to vector<8x64xf32>
    %400 = vector.extract_strided_slice %388 {offsets = [0, 128], sizes = [8, 64], strides = [1, 1]} : vector<8x192xf32> to vector<8x64xf32>
    %401 = arith.addf %400, %10 : vector<8x64xf32>
    %402 = arith.mulf %397, %401 : vector<8x64xf32>
    %403 = arith.addf %399, %402 : vector<8x64xf32>
    %404 = math.tanh %403 : vector<8x64xf32>
    %cst_132 = arith.constant 1.000000e+00 : f32
    %405 = vector.broadcast %cst_132 : f32 to vector<8x64xf32>
    %406 = arith.subf %405, %398 : vector<8x64xf32>
    %407 = arith.mulf %406, %404 : vector<8x64xf32>
    %408 = arith.mulf %398, %384 : vector<8x64xf32>
    %409 = arith.addf %407, %408 : vector<8x64xf32>
    %c120_133 = arith.constant 120 : index
    %c0_134 = arith.constant 0 : index
    %410 = vector.load %arg11[%c120_133, %c0_134] : memref<160x128xf32, #tpu.memory_space<vmem>>, vector<8x64xf32>
    tpu.vector_store %arg11[%c120_133, %c0_134], %409 {strides = array<i32>} : memref<160x128xf32, #tpu.memory_space<vmem>>, vector<8x64xf32>,
    %c32_135 = arith.constant 32 : index
    %c64_136 = arith.constant 64 : index
    %411 = vector.load %arg11[%c32_135, %c64_136] : memref<160x128xf32, #tpu.memory_space<vmem>>, vector<8x64xf32>
    tpu.vector_store %arg11[%c32_135, %c64_136], %409 {strides = array<i32>} : memref<160x128xf32, #tpu.memory_space<vmem>>, vector<8x64xf32>,
    %c128_137 = arith.constant 128 : index
    %c0_138 = arith.constant 0 : index
    %412 = vector.load %arg10[%c128_137, %c0_138] : memref<160x192xf32, #tpu.memory_space<vmem>>, vector<8x192xf32>
    %cst_139 = arith.constant dense<0.000000e+00> : vector<8x192xf32>
    %413 = tpu.matmul %409, %7, %cst_139 {dimension_numbers = #tpu.dot_dimension_numbers<[1], [0], [0], [1], [0, 0, 1, 1], [], []>} : vector<8x64xf32>, vector<64x192xf32>, vector<8x192xf32> -> vector<8x192xf32>
    %414 = vector.extract_strided_slice %412 {offsets = [0, 0], sizes = [8, 128], strides = [1, 1]} : vector<8x192xf32> to vector<8x128xf32>
    %415 = vector.extract_strided_slice %413 {offsets = [0, 0], sizes = [8, 128], strides = [1, 1]} : vector<8x192xf32> to vector<8x128xf32>
    %416 = arith.addf %414, %415 : vector<8x128xf32>
    %417 = arith.negf %416 : vector<8x128xf32>
    %418 = math.exp %417 : vector<8x128xf32>
    %cst_140 = arith.constant 1.000000e+00 : f32
    %419 = vector.broadcast %cst_140 : f32 to vector<8x128xf32>
    %420 = arith.addf %419, %418 : vector<8x128xf32>
    %421 = arith.divf %419, %420 : vector<8x128xf32>
    %422 = vector.extract_strided_slice %421 {offsets = [0, 0], sizes = [8, 64], strides = [1, 1]} : vector<8x128xf32> to vector<8x64xf32>
    %423 = vector.extract_strided_slice %421 {offsets = [0, 64], sizes = [8, 64], strides = [1, 1]} : vector<8x128xf32> to vector<8x64xf32>
    %424 = vector.extract_strided_slice %412 {offsets = [0, 128], sizes = [8, 64], strides = [1, 1]} : vector<8x192xf32> to vector<8x64xf32>
    %425 = vector.extract_strided_slice %413 {offsets = [0, 128], sizes = [8, 64], strides = [1, 1]} : vector<8x192xf32> to vector<8x64xf32>
    %426 = arith.addf %425, %10 : vector<8x64xf32>
    %427 = arith.mulf %422, %426 : vector<8x64xf32>
    %428 = arith.addf %424, %427 : vector<8x64xf32>
    %429 = math.tanh %428 : vector<8x64xf32>
    %cst_141 = arith.constant 1.000000e+00 : f32
    %430 = vector.broadcast %cst_141 : f32 to vector<8x64xf32>
    %431 = arith.subf %430, %423 : vector<8x64xf32>
    %432 = arith.mulf %431, %429 : vector<8x64xf32>
    %433 = arith.mulf %423, %409 : vector<8x64xf32>
    %434 = arith.addf %432, %433 : vector<8x64xf32>
    %c128_142 = arith.constant 128 : index
    %c0_143 = arith.constant 0 : index
    %435 = vector.load %arg11[%c128_142, %c0_143] : memref<160x128xf32, #tpu.memory_space<vmem>>, vector<8x64xf32>
    tpu.vector_store %arg11[%c128_142, %c0_143], %434 {strides = array<i32>} : memref<160x128xf32, #tpu.memory_space<vmem>>, vector<8x64xf32>,
    %c24_144 = arith.constant 24 : index
    %c64_145 = arith.constant 64 : index
    %436 = vector.load %arg11[%c24_144, %c64_145] : memref<160x128xf32, #tpu.memory_space<vmem>>, vector<8x64xf32>
    tpu.vector_store %arg11[%c24_144, %c64_145], %434 {strides = array<i32>} : memref<160x128xf32, #tpu.memory_space<vmem>>, vector<8x64xf32>,
    %c136_146 = arith.constant 136 : index
    %c0_147 = arith.constant 0 : index
    %437 = vector.load %arg10[%c136_146, %c0_147] : memref<160x192xf32, #tpu.memory_space<vmem>>, vector<8x192xf32>
    %cst_148 = arith.constant dense<0.000000e+00> : vector<8x192xf32>
    %438 = tpu.matmul %434, %7, %cst_148 {dimension_numbers = #tpu.dot_dimension_numbers<[1], [0], [0], [1], [0, 0, 1, 1], [], []>} : vector<8x64xf32>, vector<64x192xf32>, vector<8x192xf32> -> vector<8x192xf32>
    %439 = vector.extract_strided_slice %437 {offsets = [0, 0], sizes = [8, 128], strides = [1, 1]} : vector<8x192xf32> to vector<8x128xf32>
    %440 = vector.extract_strided_slice %438 {offsets = [0, 0], sizes = [8, 128], strides = [1, 1]} : vector<8x192xf32> to vector<8x128xf32>
    %441 = arith.addf %439, %440 : vector<8x128xf32>
    %442 = arith.negf %441 : vector<8x128xf32>
    %443 = math.exp %442 : vector<8x128xf32>
    %cst_149 = arith.constant 1.000000e+00 : f32
    %444 = vector.broadcast %cst_149 : f32 to vector<8x128xf32>
    %445 = arith.addf %444, %443 : vector<8x128xf32>
    %446 = arith.divf %444, %445 : vector<8x128xf32>
    %447 = vector.extract_strided_slice %446 {offsets = [0, 0], sizes = [8, 64], strides = [1, 1]} : vector<8x128xf32> to vector<8x64xf32>
    %448 = vector.extract_strided_slice %446 {offsets = [0, 64], sizes = [8, 64], strides = [1, 1]} : vector<8x128xf32> to vector<8x64xf32>
    %449 = vector.extract_strided_slice %437 {offsets = [0, 128], sizes = [8, 64], strides = [1, 1]} : vector<8x192xf32> to vector<8x64xf32>
    %450 = vector.extract_strided_slice %438 {offsets = [0, 128], sizes = [8, 64], strides = [1, 1]} : vector<8x192xf32> to vector<8x64xf32>
    %451 = arith.addf %450, %10 : vector<8x64xf32>
    %452 = arith.mulf %447, %451 : vector<8x64xf32>
    %453 = arith.addf %449, %452 : vector<8x64xf32>
    %454 = math.tanh %453 : vector<8x64xf32>
    %cst_150 = arith.constant 1.000000e+00 : f32
    %455 = vector.broadcast %cst_150 : f32 to vector<8x64xf32>
    %456 = arith.subf %455, %448 : vector<8x64xf32>
    %457 = arith.mulf %456, %454 : vector<8x64xf32>
    %458 = arith.mulf %448, %434 : vector<8x64xf32>
    %459 = arith.addf %457, %458 : vector<8x64xf32>
    %c136_151 = arith.constant 136 : index
    %c0_152 = arith.constant 0 : index
    %460 = vector.load %arg11[%c136_151, %c0_152] : memref<160x128xf32, #tpu.memory_space<vmem>>, vector<8x64xf32>
    tpu.vector_store %arg11[%c136_151, %c0_152], %459 {strides = array<i32>} : memref<160x128xf32, #tpu.memory_space<vmem>>, vector<8x64xf32>,
    %c16_153 = arith.constant 16 : index
    %c64_154 = arith.constant 64 : index
    %461 = vector.load %arg11[%c16_153, %c64_154] : memref<160x128xf32, #tpu.memory_space<vmem>>, vector<8x64xf32>
    tpu.vector_store %arg11[%c16_153, %c64_154], %459 {strides = array<i32>} : memref<160x128xf32, #tpu.memory_space<vmem>>, vector<8x64xf32>,
    %c144_155 = arith.constant 144 : index
    %c0_156 = arith.constant 0 : index
    %462 = vector.load %arg10[%c144_155, %c0_156] : memref<160x192xf32, #tpu.memory_space<vmem>>, vector<8x192xf32>
    %cst_157 = arith.constant dense<0.000000e+00> : vector<8x192xf32>
    %463 = tpu.matmul %459, %7, %cst_157 {dimension_numbers = #tpu.dot_dimension_numbers<[1], [0], [0], [1], [0, 0, 1, 1], [], []>} : vector<8x64xf32>, vector<64x192xf32>, vector<8x192xf32> -> vector<8x192xf32>
    %464 = vector.extract_strided_slice %462 {offsets = [0, 0], sizes = [8, 128], strides = [1, 1]} : vector<8x192xf32> to vector<8x128xf32>
    %465 = vector.extract_strided_slice %463 {offsets = [0, 0], sizes = [8, 128], strides = [1, 1]} : vector<8x192xf32> to vector<8x128xf32>
    %466 = arith.addf %464, %465 : vector<8x128xf32>
    %467 = arith.negf %466 : vector<8x128xf32>
    %468 = math.exp %467 : vector<8x128xf32>
    %cst_158 = arith.constant 1.000000e+00 : f32
    %469 = vector.broadcast %cst_158 : f32 to vector<8x128xf32>
    %470 = arith.addf %469, %468 : vector<8x128xf32>
    %471 = arith.divf %469, %470 : vector<8x128xf32>
    %472 = vector.extract_strided_slice %471 {offsets = [0, 0], sizes = [8, 64], strides = [1, 1]} : vector<8x128xf32> to vector<8x64xf32>
    %473 = vector.extract_strided_slice %471 {offsets = [0, 64], sizes = [8, 64], strides = [1, 1]} : vector<8x128xf32> to vector<8x64xf32>
    %474 = vector.extract_strided_slice %462 {offsets = [0, 128], sizes = [8, 64], strides = [1, 1]} : vector<8x192xf32> to vector<8x64xf32>
    %475 = vector.extract_strided_slice %463 {offsets = [0, 128], sizes = [8, 64], strides = [1, 1]} : vector<8x192xf32> to vector<8x64xf32>
    %476 = arith.addf %475, %10 : vector<8x64xf32>
    %477 = arith.mulf %472, %476 : vector<8x64xf32>
    %478 = arith.addf %474, %477 : vector<8x64xf32>
    %479 = math.tanh %478 : vector<8x64xf32>
    %cst_159 = arith.constant 1.000000e+00 : f32
    %480 = vector.broadcast %cst_159 : f32 to vector<8x64xf32>
    %481 = arith.subf %480, %473 : vector<8x64xf32>
    %482 = arith.mulf %481, %479 : vector<8x64xf32>
    %483 = arith.mulf %473, %459 : vector<8x64xf32>
    %484 = arith.addf %482, %483 : vector<8x64xf32>
    %c144_160 = arith.constant 144 : index
    %c0_161 = arith.constant 0 : index
    %485 = vector.load %arg11[%c144_160, %c0_161] : memref<160x128xf32, #tpu.memory_space<vmem>>, vector<8x64xf32>
    tpu.vector_store %arg11[%c144_160, %c0_161], %484 {strides = array<i32>} : memref<160x128xf32, #tpu.memory_space<vmem>>, vector<8x64xf32>,
    %c8_162 = arith.constant 8 : index
    %c64_163 = arith.constant 64 : index
    %486 = vector.load %arg11[%c8_162, %c64_163] : memref<160x128xf32, #tpu.memory_space<vmem>>, vector<8x64xf32>
    tpu.vector_store %arg11[%c8_162, %c64_163], %484 {strides = array<i32>} : memref<160x128xf32, #tpu.memory_space<vmem>>, vector<8x64xf32>,
    %c152_164 = arith.constant 152 : index
    %c0_165 = arith.constant 0 : index
    %487 = vector.load %arg10[%c152_164, %c0_165] : memref<160x192xf32, #tpu.memory_space<vmem>>, vector<8x192xf32>
    %cst_166 = arith.constant dense<0.000000e+00> : vector<8x192xf32>
    %488 = tpu.matmul %484, %7, %cst_166 {dimension_numbers = #tpu.dot_dimension_numbers<[1], [0], [0], [1], [0, 0, 1, 1], [], []>} : vector<8x64xf32>, vector<64x192xf32>, vector<8x192xf32> -> vector<8x192xf32>
    %489 = vector.extract_strided_slice %487 {offsets = [0, 0], sizes = [8, 128], strides = [1, 1]} : vector<8x192xf32> to vector<8x128xf32>
    %490 = vector.extract_strided_slice %488 {offsets = [0, 0], sizes = [8, 128], strides = [1, 1]} : vector<8x192xf32> to vector<8x128xf32>
    %491 = arith.addf %489, %490 : vector<8x128xf32>
    %492 = arith.negf %491 : vector<8x128xf32>
    %493 = math.exp %492 : vector<8x128xf32>
    %cst_167 = arith.constant 1.000000e+00 : f32
    %494 = vector.broadcast %cst_167 : f32 to vector<8x128xf32>
    %495 = arith.addf %494, %493 : vector<8x128xf32>
    %496 = arith.divf %494, %495 : vector<8x128xf32>
    %497 = vector.extract_strided_slice %496 {offsets = [0, 0], sizes = [8, 64], strides = [1, 1]} : vector<8x128xf32> to vector<8x64xf32>
    %498 = vector.extract_strided_slice %496 {offsets = [0, 64], sizes = [8, 64], strides = [1, 1]} : vector<8x128xf32> to vector<8x64xf32>
    %499 = vector.extract_strided_slice %487 {offsets = [0, 128], sizes = [8, 64], strides = [1, 1]} : vector<8x192xf32> to vector<8x64xf32>
    %500 = vector.extract_strided_slice %488 {offsets = [0, 128], sizes = [8, 64], strides = [1, 1]} : vector<8x192xf32> to vector<8x64xf32>
    %501 = arith.addf %500, %10 : vector<8x64xf32>
    %502 = arith.mulf %497, %501 : vector<8x64xf32>
    %503 = arith.addf %499, %502 : vector<8x64xf32>
    %504 = math.tanh %503 : vector<8x64xf32>
    %cst_168 = arith.constant 1.000000e+00 : f32
    %505 = vector.broadcast %cst_168 : f32 to vector<8x64xf32>
    %506 = arith.subf %505, %498 : vector<8x64xf32>
    %507 = arith.mulf %506, %504 : vector<8x64xf32>
    %508 = arith.mulf %498, %484 : vector<8x64xf32>
    %509 = arith.addf %507, %508 : vector<8x64xf32>
    %c152_169 = arith.constant 152 : index
    %c0_170 = arith.constant 0 : index
    %510 = vector.load %arg11[%c152_169, %c0_170] : memref<160x128xf32, #tpu.memory_space<vmem>>, vector<8x64xf32>
    tpu.vector_store %arg11[%c152_169, %c0_170], %509 {strides = array<i32>} : memref<160x128xf32, #tpu.memory_space<vmem>>, vector<8x64xf32>,
    %c0_171 = arith.constant 0 : index
    %c64_172 = arith.constant 64 : index
    %511 = vector.load %arg11[%c0_171, %c64_172] : memref<160x128xf32, #tpu.memory_space<vmem>>, vector<8x64xf32>
    tpu.vector_store %arg11[%c0_171, %c64_172], %509 {strides = array<i32>} : memref<160x128xf32, #tpu.memory_space<vmem>>, vector<8x64xf32>,
    %c0_173 = arith.constant 0 : index
    %c0_174 = arith.constant 0 : index
    %512 = vector.load %arg11[%c0_173, %c0_174] : memref<160x128xf32, #tpu.memory_space<vmem>>, vector<160x128xf32>
    %c0_175 = arith.constant 0 : index
    %c0_176 = arith.constant 0 : index
    %513 = vector.load %arg5[%c0_175, %c0_176] : memref<128x192xf32, #tpu.memory_space<vmem>>, vector<128x192xf32>
    %cst_177 = arith.constant dense<0.000000e+00> : vector<160x192xf32>
    %514 = tpu.matmul %512, %513, %cst_177 {dimension_numbers = #tpu.dot_dimension_numbers<[1], [0], [0], [1], [0, 0, 1, 1], [], []>} : vector<160x128xf32>, vector<128x192xf32>, vector<160x192xf32> -> vector<160x192xf32>
    %c0_178 = arith.constant 0 : index
    %c0_179 = arith.constant 0 : index
    %515 = vector.load %arg6[%c0_178, %c0_179] : memref<1x192xf32, #tpu.memory_space<vmem>>, vector<1x192xf32>
    %516 = vector.broadcast %515 : vector<1x192xf32> to vector<160x192xf32>
    %517 = arith.addf %514, %516 : vector<160x192xf32>
    %c0_180 = arith.constant 0 : index
    %c0_181 = arith.constant 0 : index
    %518 = vector.load %arg10[%c0_180, %c0_181] : memref<160x192xf32, #tpu.memory_space<vmem>>, vector<160x192xf32>
    tpu.vector_store %arg10[%c0_180, %c0_181], %517 {strides = array<i32>} : memref<160x192xf32, #tpu.memory_space<vmem>>, vector<160x192xf32>,
    %c0_182 = arith.constant 0 : index
    %c0_183 = arith.constant 0 : index
    %519 = vector.load %arg7[%c0_182, %c0_183] : memref<64x192xf32, #tpu.memory_space<vmem>>, vector<64x192xf32>
    %c0_184 = arith.constant 0 : index
    %c0_185 = arith.constant 0 : index
    %520 = vector.load %arg8[%c0_184, %c0_185] : memref<1x64xf32, #tpu.memory_space<vmem>>, vector<1x64xf32>
    %521 = vector.shape_cast %520 : vector<1x64xf32> to vector<1x64xf32>
    %522 = vector.broadcast %521 : vector<1x64xf32> to vector<8x64xf32>
    %cst_186 = arith.constant 0.000000e+00 : f32
    %523 = vector.broadcast %cst_186 : f32 to vector<8x64xf32>
    %c0_187 = arith.constant 0 : index
    %c0_188 = arith.constant 0 : index
    %524 = vector.load %arg10[%c0_187, %c0_188] : memref<160x192xf32, #tpu.memory_space<vmem>>, vector<8x192xf32>
    %cst_189 = arith.constant dense<0.000000e+00> : vector<8x192xf32>
    %525 = tpu.matmul %523, %519, %cst_189 {dimension_numbers = #tpu.dot_dimension_numbers<[1], [0], [0], [1], [0, 0, 1, 1], [], []>} : vector<8x64xf32>, vector<64x192xf32>, vector<8x192xf32> -> vector<8x192xf32>
    %526 = vector.extract_strided_slice %524 {offsets = [0, 0], sizes = [8, 128], strides = [1, 1]} : vector<8x192xf32> to vector<8x128xf32>
    %527 = vector.extract_strided_slice %525 {offsets = [0, 0], sizes = [8, 128], strides = [1, 1]} : vector<8x192xf32> to vector<8x128xf32>
    %528 = arith.addf %526, %527 : vector<8x128xf32>
    %529 = arith.negf %528 : vector<8x128xf32>
    %530 = math.exp %529 : vector<8x128xf32>
    %cst_190 = arith.constant 1.000000e+00 : f32
    %531 = vector.broadcast %cst_190 : f32 to vector<8x128xf32>
    %532 = arith.addf %531, %530 : vector<8x128xf32>
    %533 = arith.divf %531, %532 : vector<8x128xf32>
    %534 = vector.extract_strided_slice %533 {offsets = [0, 0], sizes = [8, 64], strides = [1, 1]} : vector<8x128xf32> to vector<8x64xf32>
    %535 = vector.extract_strided_slice %533 {offsets = [0, 64], sizes = [8, 64], strides = [1, 1]} : vector<8x128xf32> to vector<8x64xf32>
    %536 = vector.extract_strided_slice %524 {offsets = [0, 128], sizes = [8, 64], strides = [1, 1]} : vector<8x192xf32> to vector<8x64xf32>
    %537 = vector.extract_strided_slice %525 {offsets = [0, 128], sizes = [8, 64], strides = [1, 1]} : vector<8x192xf32> to vector<8x64xf32>
    %538 = arith.addf %537, %522 : vector<8x64xf32>
    %539 = arith.mulf %534, %538 : vector<8x64xf32>
    %540 = arith.addf %536, %539 : vector<8x64xf32>
    %541 = math.tanh %540 : vector<8x64xf32>
    %cst_191 = arith.constant 1.000000e+00 : f32
    %542 = vector.broadcast %cst_191 : f32 to vector<8x64xf32>
    %543 = arith.subf %542, %535 : vector<8x64xf32>
    %544 = arith.mulf %543, %541 : vector<8x64xf32>
    %545 = arith.mulf %535, %523 : vector<8x64xf32>
    %546 = arith.addf %544, %545 : vector<8x64xf32>
    %c0_192 = arith.constant 0 : index
    %c0_193 = arith.constant 0 : index
    %547 = vector.load %arg9[%c0_192, %c0_193] : memref<160x64xf32, #tpu.memory_space<vmem>>, vector<8x64xf32>
    tpu.vector_store %arg9[%c0_192, %c0_193], %546 {strides = array<i32>} : memref<160x64xf32, #tpu.memory_space<vmem>>, vector<8x64xf32>,
    %c8_194 = arith.constant 8 : index
    %c0_195 = arith.constant 0 : index
    %548 = vector.load %arg10[%c8_194, %c0_195] : memref<160x192xf32, #tpu.memory_space<vmem>>, vector<8x192xf32>
    %cst_196 = arith.constant dense<0.000000e+00> : vector<8x192xf32>
    %549 = tpu.matmul %546, %519, %cst_196 {dimension_numbers = #tpu.dot_dimension_numbers<[1], [0], [0], [1], [0, 0, 1, 1], [], []>} : vector<8x64xf32>, vector<64x192xf32>, vector<8x192xf32> -> vector<8x192xf32>
    %550 = vector.extract_strided_slice %548 {offsets = [0, 0], sizes = [8, 128], strides = [1, 1]} : vector<8x192xf32> to vector<8x128xf32>
    %551 = vector.extract_strided_slice %549 {offsets = [0, 0], sizes = [8, 128], strides = [1, 1]} : vector<8x192xf32> to vector<8x128xf32>
    %552 = arith.addf %550, %551 : vector<8x128xf32>
    %553 = arith.negf %552 : vector<8x128xf32>
    %554 = math.exp %553 : vector<8x128xf32>
    %cst_197 = arith.constant 1.000000e+00 : f32
    %555 = vector.broadcast %cst_197 : f32 to vector<8x128xf32>
    %556 = arith.addf %555, %554 : vector<8x128xf32>
    %557 = arith.divf %555, %556 : vector<8x128xf32>
    %558 = vector.extract_strided_slice %557 {offsets = [0, 0], sizes = [8, 64], strides = [1, 1]} : vector<8x128xf32> to vector<8x64xf32>
    %559 = vector.extract_strided_slice %557 {offsets = [0, 64], sizes = [8, 64], strides = [1, 1]} : vector<8x128xf32> to vector<8x64xf32>
    %560 = vector.extract_strided_slice %548 {offsets = [0, 128], sizes = [8, 64], strides = [1, 1]} : vector<8x192xf32> to vector<8x64xf32>
    %561 = vector.extract_strided_slice %549 {offsets = [0, 128], sizes = [8, 64], strides = [1, 1]} : vector<8x192xf32> to vector<8x64xf32>
    %562 = arith.addf %561, %522 : vector<8x64xf32>
    %563 = arith.mulf %558, %562 : vector<8x64xf32>
    %564 = arith.addf %560, %563 : vector<8x64xf32>
    %565 = math.tanh %564 : vector<8x64xf32>
    %cst_198 = arith.constant 1.000000e+00 : f32
    %566 = vector.broadcast %cst_198 : f32 to vector<8x64xf32>
    %567 = arith.subf %566, %559 : vector<8x64xf32>
    %568 = arith.mulf %567, %565 : vector<8x64xf32>
    %569 = arith.mulf %559, %546 : vector<8x64xf32>
    %570 = arith.addf %568, %569 : vector<8x64xf32>
    %c8_199 = arith.constant 8 : index
    %c0_200 = arith.constant 0 : index
    %571 = vector.load %arg9[%c8_199, %c0_200] : memref<160x64xf32, #tpu.memory_space<vmem>>, vector<8x64xf32>
    tpu.vector_store %arg9[%c8_199, %c0_200], %570 {strides = array<i32>} : memref<160x64xf32, #tpu.memory_space<vmem>>, vector<8x64xf32>,
    %c16_201 = arith.constant 16 : index
    %c0_202 = arith.constant 0 : index
    %572 = vector.load %arg10[%c16_201, %c0_202] : memref<160x192xf32, #tpu.memory_space<vmem>>, vector<8x192xf32>
    %cst_203 = arith.constant dense<0.000000e+00> : vector<8x192xf32>
    %573 = tpu.matmul %570, %519, %cst_203 {dimension_numbers = #tpu.dot_dimension_numbers<[1], [0], [0], [1], [0, 0, 1, 1], [], []>} : vector<8x64xf32>, vector<64x192xf32>, vector<8x192xf32> -> vector<8x192xf32>
    %574 = vector.extract_strided_slice %572 {offsets = [0, 0], sizes = [8, 128], strides = [1, 1]} : vector<8x192xf32> to vector<8x128xf32>
    %575 = vector.extract_strided_slice %573 {offsets = [0, 0], sizes = [8, 128], strides = [1, 1]} : vector<8x192xf32> to vector<8x128xf32>
    %576 = arith.addf %574, %575 : vector<8x128xf32>
    %577 = arith.negf %576 : vector<8x128xf32>
    %578 = math.exp %577 : vector<8x128xf32>
    %cst_204 = arith.constant 1.000000e+00 : f32
    %579 = vector.broadcast %cst_204 : f32 to vector<8x128xf32>
    %580 = arith.addf %579, %578 : vector<8x128xf32>
    %581 = arith.divf %579, %580 : vector<8x128xf32>
    %582 = vector.extract_strided_slice %581 {offsets = [0, 0], sizes = [8, 64], strides = [1, 1]} : vector<8x128xf32> to vector<8x64xf32>
    %583 = vector.extract_strided_slice %581 {offsets = [0, 64], sizes = [8, 64], strides = [1, 1]} : vector<8x128xf32> to vector<8x64xf32>
    %584 = vector.extract_strided_slice %572 {offsets = [0, 128], sizes = [8, 64], strides = [1, 1]} : vector<8x192xf32> to vector<8x64xf32>
    %585 = vector.extract_strided_slice %573 {offsets = [0, 128], sizes = [8, 64], strides = [1, 1]} : vector<8x192xf32> to vector<8x64xf32>
    %586 = arith.addf %585, %522 : vector<8x64xf32>
    %587 = arith.mulf %582, %586 : vector<8x64xf32>
    %588 = arith.addf %584, %587 : vector<8x64xf32>
    %589 = math.tanh %588 : vector<8x64xf32>
    %cst_205 = arith.constant 1.000000e+00 : f32
    %590 = vector.broadcast %cst_205 : f32 to vector<8x64xf32>
    %591 = arith.subf %590, %583 : vector<8x64xf32>
    %592 = arith.mulf %591, %589 : vector<8x64xf32>
    %593 = arith.mulf %583, %570 : vector<8x64xf32>
    %594 = arith.addf %592, %593 : vector<8x64xf32>
    %c16_206 = arith.constant 16 : index
    %c0_207 = arith.constant 0 : index
    %595 = vector.load %arg9[%c16_206, %c0_207] : memref<160x64xf32, #tpu.memory_space<vmem>>, vector<8x64xf32>
    tpu.vector_store %arg9[%c16_206, %c0_207], %594 {strides = array<i32>} : memref<160x64xf32, #tpu.memory_space<vmem>>, vector<8x64xf32>,
    %c24_208 = arith.constant 24 : index
    %c0_209 = arith.constant 0 : index
    %596 = vector.load %arg10[%c24_208, %c0_209] : memref<160x192xf32, #tpu.memory_space<vmem>>, vector<8x192xf32>
    %cst_210 = arith.constant dense<0.000000e+00> : vector<8x192xf32>
    %597 = tpu.matmul %594, %519, %cst_210 {dimension_numbers = #tpu.dot_dimension_numbers<[1], [0], [0], [1], [0, 0, 1, 1], [], []>} : vector<8x64xf32>, vector<64x192xf32>, vector<8x192xf32> -> vector<8x192xf32>
    %598 = vector.extract_strided_slice %596 {offsets = [0, 0], sizes = [8, 128], strides = [1, 1]} : vector<8x192xf32> to vector<8x128xf32>
    %599 = vector.extract_strided_slice %597 {offsets = [0, 0], sizes = [8, 128], strides = [1, 1]} : vector<8x192xf32> to vector<8x128xf32>
    %600 = arith.addf %598, %599 : vector<8x128xf32>
    %601 = arith.negf %600 : vector<8x128xf32>
    %602 = math.exp %601 : vector<8x128xf32>
    %cst_211 = arith.constant 1.000000e+00 : f32
    %603 = vector.broadcast %cst_211 : f32 to vector<8x128xf32>
    %604 = arith.addf %603, %602 : vector<8x128xf32>
    %605 = arith.divf %603, %604 : vector<8x128xf32>
    %606 = vector.extract_strided_slice %605 {offsets = [0, 0], sizes = [8, 64], strides = [1, 1]} : vector<8x128xf32> to vector<8x64xf32>
    %607 = vector.extract_strided_slice %605 {offsets = [0, 64], sizes = [8, 64], strides = [1, 1]} : vector<8x128xf32> to vector<8x64xf32>
    %608 = vector.extract_strided_slice %596 {offsets = [0, 128], sizes = [8, 64], strides = [1, 1]} : vector<8x192xf32> to vector<8x64xf32>
    %609 = vector.extract_strided_slice %597 {offsets = [0, 128], sizes = [8, 64], strides = [1, 1]} : vector<8x192xf32> to vector<8x64xf32>
    %610 = arith.addf %609, %522 : vector<8x64xf32>
    %611 = arith.mulf %606, %610 : vector<8x64xf32>
    %612 = arith.addf %608, %611 : vector<8x64xf32>
    %613 = math.tanh %612 : vector<8x64xf32>
    %cst_212 = arith.constant 1.000000e+00 : f32
    %614 = vector.broadcast %cst_212 : f32 to vector<8x64xf32>
    %615 = arith.subf %614, %607 : vector<8x64xf32>
    %616 = arith.mulf %615, %613 : vector<8x64xf32>
    %617 = arith.mulf %607, %594 : vector<8x64xf32>
    %618 = arith.addf %616, %617 : vector<8x64xf32>
    %c24_213 = arith.constant 24 : index
    %c0_214 = arith.constant 0 : index
    %619 = vector.load %arg9[%c24_213, %c0_214] : memref<160x64xf32, #tpu.memory_space<vmem>>, vector<8x64xf32>
    tpu.vector_store %arg9[%c24_213, %c0_214], %618 {strides = array<i32>} : memref<160x64xf32, #tpu.memory_space<vmem>>, vector<8x64xf32>,
    %c32_215 = arith.constant 32 : index
    %c0_216 = arith.constant 0 : index
    %620 = vector.load %arg10[%c32_215, %c0_216] : memref<160x192xf32, #tpu.memory_space<vmem>>, vector<8x192xf32>
    %cst_217 = arith.constant dense<0.000000e+00> : vector<8x192xf32>
    %621 = tpu.matmul %618, %519, %cst_217 {dimension_numbers = #tpu.dot_dimension_numbers<[1], [0], [0], [1], [0, 0, 1, 1], [], []>} : vector<8x64xf32>, vector<64x192xf32>, vector<8x192xf32> -> vector<8x192xf32>
    %622 = vector.extract_strided_slice %620 {offsets = [0, 0], sizes = [8, 128], strides = [1, 1]} : vector<8x192xf32> to vector<8x128xf32>
    %623 = vector.extract_strided_slice %621 {offsets = [0, 0], sizes = [8, 128], strides = [1, 1]} : vector<8x192xf32> to vector<8x128xf32>
    %624 = arith.addf %622, %623 : vector<8x128xf32>
    %625 = arith.negf %624 : vector<8x128xf32>
    %626 = math.exp %625 : vector<8x128xf32>
    %cst_218 = arith.constant 1.000000e+00 : f32
    %627 = vector.broadcast %cst_218 : f32 to vector<8x128xf32>
    %628 = arith.addf %627, %626 : vector<8x128xf32>
    %629 = arith.divf %627, %628 : vector<8x128xf32>
    %630 = vector.extract_strided_slice %629 {offsets = [0, 0], sizes = [8, 64], strides = [1, 1]} : vector<8x128xf32> to vector<8x64xf32>
    %631 = vector.extract_strided_slice %629 {offsets = [0, 64], sizes = [8, 64], strides = [1, 1]} : vector<8x128xf32> to vector<8x64xf32>
    %632 = vector.extract_strided_slice %620 {offsets = [0, 128], sizes = [8, 64], strides = [1, 1]} : vector<8x192xf32> to vector<8x64xf32>
    %633 = vector.extract_strided_slice %621 {offsets = [0, 128], sizes = [8, 64], strides = [1, 1]} : vector<8x192xf32> to vector<8x64xf32>
    %634 = arith.addf %633, %522 : vector<8x64xf32>
    %635 = arith.mulf %630, %634 : vector<8x64xf32>
    %636 = arith.addf %632, %635 : vector<8x64xf32>
    %637 = math.tanh %636 : vector<8x64xf32>
    %cst_219 = arith.constant 1.000000e+00 : f32
    %638 = vector.broadcast %cst_219 : f32 to vector<8x64xf32>
    %639 = arith.subf %638, %631 : vector<8x64xf32>
    %640 = arith.mulf %639, %637 : vector<8x64xf32>
    %641 = arith.mulf %631, %618 : vector<8x64xf32>
    %642 = arith.addf %640, %641 : vector<8x64xf32>
    %c32_220 = arith.constant 32 : index
    %c0_221 = arith.constant 0 : index
    %643 = vector.load %arg9[%c32_220, %c0_221] : memref<160x64xf32, #tpu.memory_space<vmem>>, vector<8x64xf32>
    tpu.vector_store %arg9[%c32_220, %c0_221], %642 {strides = array<i32>} : memref<160x64xf32, #tpu.memory_space<vmem>>, vector<8x64xf32>,
    %c40_222 = arith.constant 40 : index
    %c0_223 = arith.constant 0 : index
    %644 = vector.load %arg10[%c40_222, %c0_223] : memref<160x192xf32, #tpu.memory_space<vmem>>, vector<8x192xf32>
    %cst_224 = arith.constant dense<0.000000e+00> : vector<8x192xf32>
    %645 = tpu.matmul %642, %519, %cst_224 {dimension_numbers = #tpu.dot_dimension_numbers<[1], [0], [0], [1], [0, 0, 1, 1], [], []>} : vector<8x64xf32>, vector<64x192xf32>, vector<8x192xf32> -> vector<8x192xf32>
    %646 = vector.extract_strided_slice %644 {offsets = [0, 0], sizes = [8, 128], strides = [1, 1]} : vector<8x192xf32> to vector<8x128xf32>
    %647 = vector.extract_strided_slice %645 {offsets = [0, 0], sizes = [8, 128], strides = [1, 1]} : vector<8x192xf32> to vector<8x128xf32>
    %648 = arith.addf %646, %647 : vector<8x128xf32>
    %649 = arith.negf %648 : vector<8x128xf32>
    %650 = math.exp %649 : vector<8x128xf32>
    %cst_225 = arith.constant 1.000000e+00 : f32
    %651 = vector.broadcast %cst_225 : f32 to vector<8x128xf32>
    %652 = arith.addf %651, %650 : vector<8x128xf32>
    %653 = arith.divf %651, %652 : vector<8x128xf32>
    %654 = vector.extract_strided_slice %653 {offsets = [0, 0], sizes = [8, 64], strides = [1, 1]} : vector<8x128xf32> to vector<8x64xf32>
    %655 = vector.extract_strided_slice %653 {offsets = [0, 64], sizes = [8, 64], strides = [1, 1]} : vector<8x128xf32> to vector<8x64xf32>
    %656 = vector.extract_strided_slice %644 {offsets = [0, 128], sizes = [8, 64], strides = [1, 1]} : vector<8x192xf32> to vector<8x64xf32>
    %657 = vector.extract_strided_slice %645 {offsets = [0, 128], sizes = [8, 64], strides = [1, 1]} : vector<8x192xf32> to vector<8x64xf32>
    %658 = arith.addf %657, %522 : vector<8x64xf32>
    %659 = arith.mulf %654, %658 : vector<8x64xf32>
    %660 = arith.addf %656, %659 : vector<8x64xf32>
    %661 = math.tanh %660 : vector<8x64xf32>
    %cst_226 = arith.constant 1.000000e+00 : f32
    %662 = vector.broadcast %cst_226 : f32 to vector<8x64xf32>
    %663 = arith.subf %662, %655 : vector<8x64xf32>
    %664 = arith.mulf %663, %661 : vector<8x64xf32>
    %665 = arith.mulf %655, %642 : vector<8x64xf32>
    %666 = arith.addf %664, %665 : vector<8x64xf32>
    %c40_227 = arith.constant 40 : index
    %c0_228 = arith.constant 0 : index
    %667 = vector.load %arg9[%c40_227, %c0_228] : memref<160x64xf32, #tpu.memory_space<vmem>>, vector<8x64xf32>
    tpu.vector_store %arg9[%c40_227, %c0_228], %666 {strides = array<i32>} : memref<160x64xf32, #tpu.memory_space<vmem>>, vector<8x64xf32>,
    %c48_229 = arith.constant 48 : index
    %c0_230 = arith.constant 0 : index
    %668 = vector.load %arg10[%c48_229, %c0_230] : memref<160x192xf32, #tpu.memory_space<vmem>>, vector<8x192xf32>
    %cst_231 = arith.constant dense<0.000000e+00> : vector<8x192xf32>
    %669 = tpu.matmul %666, %519, %cst_231 {dimension_numbers = #tpu.dot_dimension_numbers<[1], [0], [0], [1], [0, 0, 1, 1], [], []>} : vector<8x64xf32>, vector<64x192xf32>, vector<8x192xf32> -> vector<8x192xf32>
    %670 = vector.extract_strided_slice %668 {offsets = [0, 0], sizes = [8, 128], strides = [1, 1]} : vector<8x192xf32> to vector<8x128xf32>
    %671 = vector.extract_strided_slice %669 {offsets = [0, 0], sizes = [8, 128], strides = [1, 1]} : vector<8x192xf32> to vector<8x128xf32>
    %672 = arith.addf %670, %671 : vector<8x128xf32>
    %673 = arith.negf %672 : vector<8x128xf32>
    %674 = math.exp %673 : vector<8x128xf32>
    %cst_232 = arith.constant 1.000000e+00 : f32
    %675 = vector.broadcast %cst_232 : f32 to vector<8x128xf32>
    %676 = arith.addf %675, %674 : vector<8x128xf32>
    %677 = arith.divf %675, %676 : vector<8x128xf32>
    %678 = vector.extract_strided_slice %677 {offsets = [0, 0], sizes = [8, 64], strides = [1, 1]} : vector<8x128xf32> to vector<8x64xf32>
    %679 = vector.extract_strided_slice %677 {offsets = [0, 64], sizes = [8, 64], strides = [1, 1]} : vector<8x128xf32> to vector<8x64xf32>
    %680 = vector.extract_strided_slice %668 {offsets = [0, 128], sizes = [8, 64], strides = [1, 1]} : vector<8x192xf32> to vector<8x64xf32>
    %681 = vector.extract_strided_slice %669 {offsets = [0, 128], sizes = [8, 64], strides = [1, 1]} : vector<8x192xf32> to vector<8x64xf32>
    %682 = arith.addf %681, %522 : vector<8x64xf32>
    %683 = arith.mulf %678, %682 : vector<8x64xf32>
    %684 = arith.addf %680, %683 : vector<8x64xf32>
    %685 = math.tanh %684 : vector<8x64xf32>
    %cst_233 = arith.constant 1.000000e+00 : f32
    %686 = vector.broadcast %cst_233 : f32 to vector<8x64xf32>
    %687 = arith.subf %686, %679 : vector<8x64xf32>
    %688 = arith.mulf %687, %685 : vector<8x64xf32>
    %689 = arith.mulf %679, %666 : vector<8x64xf32>
    %690 = arith.addf %688, %689 : vector<8x64xf32>
    %c48_234 = arith.constant 48 : index
    %c0_235 = arith.constant 0 : index
    %691 = vector.load %arg9[%c48_234, %c0_235] : memref<160x64xf32, #tpu.memory_space<vmem>>, vector<8x64xf32>
    tpu.vector_store %arg9[%c48_234, %c0_235], %690 {strides = array<i32>} : memref<160x64xf32, #tpu.memory_space<vmem>>, vector<8x64xf32>,
    %c56_236 = arith.constant 56 : index
    %c0_237 = arith.constant 0 : index
    %692 = vector.load %arg10[%c56_236, %c0_237] : memref<160x192xf32, #tpu.memory_space<vmem>>, vector<8x192xf32>
    %cst_238 = arith.constant dense<0.000000e+00> : vector<8x192xf32>
    %693 = tpu.matmul %690, %519, %cst_238 {dimension_numbers = #tpu.dot_dimension_numbers<[1], [0], [0], [1], [0, 0, 1, 1], [], []>} : vector<8x64xf32>, vector<64x192xf32>, vector<8x192xf32> -> vector<8x192xf32>
    %694 = vector.extract_strided_slice %692 {offsets = [0, 0], sizes = [8, 128], strides = [1, 1]} : vector<8x192xf32> to vector<8x128xf32>
    %695 = vector.extract_strided_slice %693 {offsets = [0, 0], sizes = [8, 128], strides = [1, 1]} : vector<8x192xf32> to vector<8x128xf32>
    %696 = arith.addf %694, %695 : vector<8x128xf32>
    %697 = arith.negf %696 : vector<8x128xf32>
    %698 = math.exp %697 : vector<8x128xf32>
    %cst_239 = arith.constant 1.000000e+00 : f32
    %699 = vector.broadcast %cst_239 : f32 to vector<8x128xf32>
    %700 = arith.addf %699, %698 : vector<8x128xf32>
    %701 = arith.divf %699, %700 : vector<8x128xf32>
    %702 = vector.extract_strided_slice %701 {offsets = [0, 0], sizes = [8, 64], strides = [1, 1]} : vector<8x128xf32> to vector<8x64xf32>
    %703 = vector.extract_strided_slice %701 {offsets = [0, 64], sizes = [8, 64], strides = [1, 1]} : vector<8x128xf32> to vector<8x64xf32>
    %704 = vector.extract_strided_slice %692 {offsets = [0, 128], sizes = [8, 64], strides = [1, 1]} : vector<8x192xf32> to vector<8x64xf32>
    %705 = vector.extract_strided_slice %693 {offsets = [0, 128], sizes = [8, 64], strides = [1, 1]} : vector<8x192xf32> to vector<8x64xf32>
    %706 = arith.addf %705, %522 : vector<8x64xf32>
    %707 = arith.mulf %702, %706 : vector<8x64xf32>
    %708 = arith.addf %704, %707 : vector<8x64xf32>
    %709 = math.tanh %708 : vector<8x64xf32>
    %cst_240 = arith.constant 1.000000e+00 : f32
    %710 = vector.broadcast %cst_240 : f32 to vector<8x64xf32>
    %711 = arith.subf %710, %703 : vector<8x64xf32>
    %712 = arith.mulf %711, %709 : vector<8x64xf32>
    %713 = arith.mulf %703, %690 : vector<8x64xf32>
    %714 = arith.addf %712, %713 : vector<8x64xf32>
    %c56_241 = arith.constant 56 : index
    %c0_242 = arith.constant 0 : index
    %715 = vector.load %arg9[%c56_241, %c0_242] : memref<160x64xf32, #tpu.memory_space<vmem>>, vector<8x64xf32>
    tpu.vector_store %arg9[%c56_241, %c0_242], %714 {strides = array<i32>} : memref<160x64xf32, #tpu.memory_space<vmem>>, vector<8x64xf32>,
    %c64_243 = arith.constant 64 : index
    %c0_244 = arith.constant 0 : index
    %716 = vector.load %arg10[%c64_243, %c0_244] : memref<160x192xf32, #tpu.memory_space<vmem>>, vector<8x192xf32>
    %cst_245 = arith.constant dense<0.000000e+00> : vector<8x192xf32>
    %717 = tpu.matmul %714, %519, %cst_245 {dimension_numbers = #tpu.dot_dimension_numbers<[1], [0], [0], [1], [0, 0, 1, 1], [], []>} : vector<8x64xf32>, vector<64x192xf32>, vector<8x192xf32> -> vector<8x192xf32>
    %718 = vector.extract_strided_slice %716 {offsets = [0, 0], sizes = [8, 128], strides = [1, 1]} : vector<8x192xf32> to vector<8x128xf32>
    %719 = vector.extract_strided_slice %717 {offsets = [0, 0], sizes = [8, 128], strides = [1, 1]} : vector<8x192xf32> to vector<8x128xf32>
    %720 = arith.addf %718, %719 : vector<8x128xf32>
    %721 = arith.negf %720 : vector<8x128xf32>
    %722 = math.exp %721 : vector<8x128xf32>
    %cst_246 = arith.constant 1.000000e+00 : f32
    %723 = vector.broadcast %cst_246 : f32 to vector<8x128xf32>
    %724 = arith.addf %723, %722 : vector<8x128xf32>
    %725 = arith.divf %723, %724 : vector<8x128xf32>
    %726 = vector.extract_strided_slice %725 {offsets = [0, 0], sizes = [8, 64], strides = [1, 1]} : vector<8x128xf32> to vector<8x64xf32>
    %727 = vector.extract_strided_slice %725 {offsets = [0, 64], sizes = [8, 64], strides = [1, 1]} : vector<8x128xf32> to vector<8x64xf32>
    %728 = vector.extract_strided_slice %716 {offsets = [0, 128], sizes = [8, 64], strides = [1, 1]} : vector<8x192xf32> to vector<8x64xf32>
    %729 = vector.extract_strided_slice %717 {offsets = [0, 128], sizes = [8, 64], strides = [1, 1]} : vector<8x192xf32> to vector<8x64xf32>
    %730 = arith.addf %729, %522 : vector<8x64xf32>
    %731 = arith.mulf %726, %730 : vector<8x64xf32>
    %732 = arith.addf %728, %731 : vector<8x64xf32>
    %733 = math.tanh %732 : vector<8x64xf32>
    %cst_247 = arith.constant 1.000000e+00 : f32
    %734 = vector.broadcast %cst_247 : f32 to vector<8x64xf32>
    %735 = arith.subf %734, %727 : vector<8x64xf32>
    %736 = arith.mulf %735, %733 : vector<8x64xf32>
    %737 = arith.mulf %727, %714 : vector<8x64xf32>
    %738 = arith.addf %736, %737 : vector<8x64xf32>
    %c64_248 = arith.constant 64 : index
    %c0_249 = arith.constant 0 : index
    %739 = vector.load %arg9[%c64_248, %c0_249] : memref<160x64xf32, #tpu.memory_space<vmem>>, vector<8x64xf32>
    tpu.vector_store %arg9[%c64_248, %c0_249], %738 {strides = array<i32>} : memref<160x64xf32, #tpu.memory_space<vmem>>, vector<8x64xf32>,
    %c72_250 = arith.constant 72 : index
    %c0_251 = arith.constant 0 : index
    %740 = vector.load %arg10[%c72_250, %c0_251] : memref<160x192xf32, #tpu.memory_space<vmem>>, vector<8x192xf32>
    %cst_252 = arith.constant dense<0.000000e+00> : vector<8x192xf32>
    %741 = tpu.matmul %738, %519, %cst_252 {dimension_numbers = #tpu.dot_dimension_numbers<[1], [0], [0], [1], [0, 0, 1, 1], [], []>} : vector<8x64xf32>, vector<64x192xf32>, vector<8x192xf32> -> vector<8x192xf32>
    %742 = vector.extract_strided_slice %740 {offsets = [0, 0], sizes = [8, 128], strides = [1, 1]} : vector<8x192xf32> to vector<8x128xf32>
    %743 = vector.extract_strided_slice %741 {offsets = [0, 0], sizes = [8, 128], strides = [1, 1]} : vector<8x192xf32> to vector<8x128xf32>
    %744 = arith.addf %742, %743 : vector<8x128xf32>
    %745 = arith.negf %744 : vector<8x128xf32>
    %746 = math.exp %745 : vector<8x128xf32>
    %cst_253 = arith.constant 1.000000e+00 : f32
    %747 = vector.broadcast %cst_253 : f32 to vector<8x128xf32>
    %748 = arith.addf %747, %746 : vector<8x128xf32>
    %749 = arith.divf %747, %748 : vector<8x128xf32>
    %750 = vector.extract_strided_slice %749 {offsets = [0, 0], sizes = [8, 64], strides = [1, 1]} : vector<8x128xf32> to vector<8x64xf32>
    %751 = vector.extract_strided_slice %749 {offsets = [0, 64], sizes = [8, 64], strides = [1, 1]} : vector<8x128xf32> to vector<8x64xf32>
    %752 = vector.extract_strided_slice %740 {offsets = [0, 128], sizes = [8, 64], strides = [1, 1]} : vector<8x192xf32> to vector<8x64xf32>
    %753 = vector.extract_strided_slice %741 {offsets = [0, 128], sizes = [8, 64], strides = [1, 1]} : vector<8x192xf32> to vector<8x64xf32>
    %754 = arith.addf %753, %522 : vector<8x64xf32>
    %755 = arith.mulf %750, %754 : vector<8x64xf32>
    %756 = arith.addf %752, %755 : vector<8x64xf32>
    %757 = math.tanh %756 : vector<8x64xf32>
    %cst_254 = arith.constant 1.000000e+00 : f32
    %758 = vector.broadcast %cst_254 : f32 to vector<8x64xf32>
    %759 = arith.subf %758, %751 : vector<8x64xf32>
    %760 = arith.mulf %759, %757 : vector<8x64xf32>
    %761 = arith.mulf %751, %738 : vector<8x64xf32>
    %762 = arith.addf %760, %761 : vector<8x64xf32>
    %c72_255 = arith.constant 72 : index
    %c0_256 = arith.constant 0 : index
    %763 = vector.load %arg9[%c72_255, %c0_256] : memref<160x64xf32, #tpu.memory_space<vmem>>, vector<8x64xf32>
    tpu.vector_store %arg9[%c72_255, %c0_256], %762 {strides = array<i32>} : memref<160x64xf32, #tpu.memory_space<vmem>>, vector<8x64xf32>,
    %c80_257 = arith.constant 80 : index
    %c0_258 = arith.constant 0 : index
    %764 = vector.load %arg10[%c80_257, %c0_258] : memref<160x192xf32, #tpu.memory_space<vmem>>, vector<8x192xf32>
    %cst_259 = arith.constant dense<0.000000e+00> : vector<8x192xf32>
    %765 = tpu.matmul %762, %519, %cst_259 {dimension_numbers = #tpu.dot_dimension_numbers<[1], [0], [0], [1], [0, 0, 1, 1], [], []>} : vector<8x64xf32>, vector<64x192xf32>, vector<8x192xf32> -> vector<8x192xf32>
    %766 = vector.extract_strided_slice %764 {offsets = [0, 0], sizes = [8, 128], strides = [1, 1]} : vector<8x192xf32> to vector<8x128xf32>
    %767 = vector.extract_strided_slice %765 {offsets = [0, 0], sizes = [8, 128], strides = [1, 1]} : vector<8x192xf32> to vector<8x128xf32>
    %768 = arith.addf %766, %767 : vector<8x128xf32>
    %769 = arith.negf %768 : vector<8x128xf32>
    %770 = math.exp %769 : vector<8x128xf32>
    %cst_260 = arith.constant 1.000000e+00 : f32
    %771 = vector.broadcast %cst_260 : f32 to vector<8x128xf32>
    %772 = arith.addf %771, %770 : vector<8x128xf32>
    %773 = arith.divf %771, %772 : vector<8x128xf32>
    %774 = vector.extract_strided_slice %773 {offsets = [0, 0], sizes = [8, 64], strides = [1, 1]} : vector<8x128xf32> to vector<8x64xf32>
    %775 = vector.extract_strided_slice %773 {offsets = [0, 64], sizes = [8, 64], strides = [1, 1]} : vector<8x128xf32> to vector<8x64xf32>
    %776 = vector.extract_strided_slice %764 {offsets = [0, 128], sizes = [8, 64], strides = [1, 1]} : vector<8x192xf32> to vector<8x64xf32>
    %777 = vector.extract_strided_slice %765 {offsets = [0, 128], sizes = [8, 64], strides = [1, 1]} : vector<8x192xf32> to vector<8x64xf32>
    %778 = arith.addf %777, %522 : vector<8x64xf32>
    %779 = arith.mulf %774, %778 : vector<8x64xf32>
    %780 = arith.addf %776, %779 : vector<8x64xf32>
    %781 = math.tanh %780 : vector<8x64xf32>
    %cst_261 = arith.constant 1.000000e+00 : f32
    %782 = vector.broadcast %cst_261 : f32 to vector<8x64xf32>
    %783 = arith.subf %782, %775 : vector<8x64xf32>
    %784 = arith.mulf %783, %781 : vector<8x64xf32>
    %785 = arith.mulf %775, %762 : vector<8x64xf32>
    %786 = arith.addf %784, %785 : vector<8x64xf32>
    %c80_262 = arith.constant 80 : index
    %c0_263 = arith.constant 0 : index
    %787 = vector.load %arg9[%c80_262, %c0_263] : memref<160x64xf32, #tpu.memory_space<vmem>>, vector<8x64xf32>
    tpu.vector_store %arg9[%c80_262, %c0_263], %786 {strides = array<i32>} : memref<160x64xf32, #tpu.memory_space<vmem>>, vector<8x64xf32>,
    %c88_264 = arith.constant 88 : index
    %c0_265 = arith.constant 0 : index
    %788 = vector.load %arg10[%c88_264, %c0_265] : memref<160x192xf32, #tpu.memory_space<vmem>>, vector<8x192xf32>
    %cst_266 = arith.constant dense<0.000000e+00> : vector<8x192xf32>
    %789 = tpu.matmul %786, %519, %cst_266 {dimension_numbers = #tpu.dot_dimension_numbers<[1], [0], [0], [1], [0, 0, 1, 1], [], []>} : vector<8x64xf32>, vector<64x192xf32>, vector<8x192xf32> -> vector<8x192xf32>
    %790 = vector.extract_strided_slice %788 {offsets = [0, 0], sizes = [8, 128], strides = [1, 1]} : vector<8x192xf32> to vector<8x128xf32>
    %791 = vector.extract_strided_slice %789 {offsets = [0, 0], sizes = [8, 128], strides = [1, 1]} : vector<8x192xf32> to vector<8x128xf32>
    %792 = arith.addf %790, %791 : vector<8x128xf32>
    %793 = arith.negf %792 : vector<8x128xf32>
    %794 = math.exp %793 : vector<8x128xf32>
    %cst_267 = arith.constant 1.000000e+00 : f32
    %795 = vector.broadcast %cst_267 : f32 to vector<8x128xf32>
    %796 = arith.addf %795, %794 : vector<8x128xf32>
    %797 = arith.divf %795, %796 : vector<8x128xf32>
    %798 = vector.extract_strided_slice %797 {offsets = [0, 0], sizes = [8, 64], strides = [1, 1]} : vector<8x128xf32> to vector<8x64xf32>
    %799 = vector.extract_strided_slice %797 {offsets = [0, 64], sizes = [8, 64], strides = [1, 1]} : vector<8x128xf32> to vector<8x64xf32>
    %800 = vector.extract_strided_slice %788 {offsets = [0, 128], sizes = [8, 64], strides = [1, 1]} : vector<8x192xf32> to vector<8x64xf32>
    %801 = vector.extract_strided_slice %789 {offsets = [0, 128], sizes = [8, 64], strides = [1, 1]} : vector<8x192xf32> to vector<8x64xf32>
    %802 = arith.addf %801, %522 : vector<8x64xf32>
    %803 = arith.mulf %798, %802 : vector<8x64xf32>
    %804 = arith.addf %800, %803 : vector<8x64xf32>
    %805 = math.tanh %804 : vector<8x64xf32>
    %cst_268 = arith.constant 1.000000e+00 : f32
    %806 = vector.broadcast %cst_268 : f32 to vector<8x64xf32>
    %807 = arith.subf %806, %799 : vector<8x64xf32>
    %808 = arith.mulf %807, %805 : vector<8x64xf32>
    %809 = arith.mulf %799, %786 : vector<8x64xf32>
    %810 = arith.addf %808, %809 : vector<8x64xf32>
    %c88_269 = arith.constant 88 : index
    %c0_270 = arith.constant 0 : index
    %811 = vector.load %arg9[%c88_269, %c0_270] : memref<160x64xf32, #tpu.memory_space<vmem>>, vector<8x64xf32>
    tpu.vector_store %arg9[%c88_269, %c0_270], %810 {strides = array<i32>} : memref<160x64xf32, #tpu.memory_space<vmem>>, vector<8x64xf32>,
    %c96_271 = arith.constant 96 : index
    %c0_272 = arith.constant 0 : index
    %812 = vector.load %arg10[%c96_271, %c0_272] : memref<160x192xf32, #tpu.memory_space<vmem>>, vector<8x192xf32>
    %cst_273 = arith.constant dense<0.000000e+00> : vector<8x192xf32>
    %813 = tpu.matmul %810, %519, %cst_273 {dimension_numbers = #tpu.dot_dimension_numbers<[1], [0], [0], [1], [0, 0, 1, 1], [], []>} : vector<8x64xf32>, vector<64x192xf32>, vector<8x192xf32> -> vector<8x192xf32>
    %814 = vector.extract_strided_slice %812 {offsets = [0, 0], sizes = [8, 128], strides = [1, 1]} : vector<8x192xf32> to vector<8x128xf32>
    %815 = vector.extract_strided_slice %813 {offsets = [0, 0], sizes = [8, 128], strides = [1, 1]} : vector<8x192xf32> to vector<8x128xf32>
    %816 = arith.addf %814, %815 : vector<8x128xf32>
    %817 = arith.negf %816 : vector<8x128xf32>
    %818 = math.exp %817 : vector<8x128xf32>
    %cst_274 = arith.constant 1.000000e+00 : f32
    %819 = vector.broadcast %cst_274 : f32 to vector<8x128xf32>
    %820 = arith.addf %819, %818 : vector<8x128xf32>
    %821 = arith.divf %819, %820 : vector<8x128xf32>
    %822 = vector.extract_strided_slice %821 {offsets = [0, 0], sizes = [8, 64], strides = [1, 1]} : vector<8x128xf32> to vector<8x64xf32>
    %823 = vector.extract_strided_slice %821 {offsets = [0, 64], sizes = [8, 64], strides = [1, 1]} : vector<8x128xf32> to vector<8x64xf32>
    %824 = vector.extract_strided_slice %812 {offsets = [0, 128], sizes = [8, 64], strides = [1, 1]} : vector<8x192xf32> to vector<8x64xf32>
    %825 = vector.extract_strided_slice %813 {offsets = [0, 128], sizes = [8, 64], strides = [1, 1]} : vector<8x192xf32> to vector<8x64xf32>
    %826 = arith.addf %825, %522 : vector<8x64xf32>
    %827 = arith.mulf %822, %826 : vector<8x64xf32>
    %828 = arith.addf %824, %827 : vector<8x64xf32>
    %829 = math.tanh %828 : vector<8x64xf32>
    %cst_275 = arith.constant 1.000000e+00 : f32
    %830 = vector.broadcast %cst_275 : f32 to vector<8x64xf32>
    %831 = arith.subf %830, %823 : vector<8x64xf32>
    %832 = arith.mulf %831, %829 : vector<8x64xf32>
    %833 = arith.mulf %823, %810 : vector<8x64xf32>
    %834 = arith.addf %832, %833 : vector<8x64xf32>
    %c96_276 = arith.constant 96 : index
    %c0_277 = arith.constant 0 : index
    %835 = vector.load %arg9[%c96_276, %c0_277] : memref<160x64xf32, #tpu.memory_space<vmem>>, vector<8x64xf32>
    tpu.vector_store %arg9[%c96_276, %c0_277], %834 {strides = array<i32>} : memref<160x64xf32, #tpu.memory_space<vmem>>, vector<8x64xf32>,
    %c104_278 = arith.constant 104 : index
    %c0_279 = arith.constant 0 : index
    %836 = vector.load %arg10[%c104_278, %c0_279] : memref<160x192xf32, #tpu.memory_space<vmem>>, vector<8x192xf32>
    %cst_280 = arith.constant dense<0.000000e+00> : vector<8x192xf32>
    %837 = tpu.matmul %834, %519, %cst_280 {dimension_numbers = #tpu.dot_dimension_numbers<[1], [0], [0], [1], [0, 0, 1, 1], [], []>} : vector<8x64xf32>, vector<64x192xf32>, vector<8x192xf32> -> vector<8x192xf32>
    %838 = vector.extract_strided_slice %836 {offsets = [0, 0], sizes = [8, 128], strides = [1, 1]} : vector<8x192xf32> to vector<8x128xf32>
    %839 = vector.extract_strided_slice %837 {offsets = [0, 0], sizes = [8, 128], strides = [1, 1]} : vector<8x192xf32> to vector<8x128xf32>
    %840 = arith.addf %838, %839 : vector<8x128xf32>
    %841 = arith.negf %840 : vector<8x128xf32>
    %842 = math.exp %841 : vector<8x128xf32>
    %cst_281 = arith.constant 1.000000e+00 : f32
    %843 = vector.broadcast %cst_281 : f32 to vector<8x128xf32>
    %844 = arith.addf %843, %842 : vector<8x128xf32>
    %845 = arith.divf %843, %844 : vector<8x128xf32>
    %846 = vector.extract_strided_slice %845 {offsets = [0, 0], sizes = [8, 64], strides = [1, 1]} : vector<8x128xf32> to vector<8x64xf32>
    %847 = vector.extract_strided_slice %845 {offsets = [0, 64], sizes = [8, 64], strides = [1, 1]} : vector<8x128xf32> to vector<8x64xf32>
    %848 = vector.extract_strided_slice %836 {offsets = [0, 128], sizes = [8, 64], strides = [1, 1]} : vector<8x192xf32> to vector<8x64xf32>
    %849 = vector.extract_strided_slice %837 {offsets = [0, 128], sizes = [8, 64], strides = [1, 1]} : vector<8x192xf32> to vector<8x64xf32>
    %850 = arith.addf %849, %522 : vector<8x64xf32>
    %851 = arith.mulf %846, %850 : vector<8x64xf32>
    %852 = arith.addf %848, %851 : vector<8x64xf32>
    %853 = math.tanh %852 : vector<8x64xf32>
    %cst_282 = arith.constant 1.000000e+00 : f32
    %854 = vector.broadcast %cst_282 : f32 to vector<8x64xf32>
    %855 = arith.subf %854, %847 : vector<8x64xf32>
    %856 = arith.mulf %855, %853 : vector<8x64xf32>
    %857 = arith.mulf %847, %834 : vector<8x64xf32>
    %858 = arith.addf %856, %857 : vector<8x64xf32>
    %c104_283 = arith.constant 104 : index
    %c0_284 = arith.constant 0 : index
    %859 = vector.load %arg9[%c104_283, %c0_284] : memref<160x64xf32, #tpu.memory_space<vmem>>, vector<8x64xf32>
    tpu.vector_store %arg9[%c104_283, %c0_284], %858 {strides = array<i32>} : memref<160x64xf32, #tpu.memory_space<vmem>>, vector<8x64xf32>,
    %c112_285 = arith.constant 112 : index
    %c0_286 = arith.constant 0 : index
    %860 = vector.load %arg10[%c112_285, %c0_286] : memref<160x192xf32, #tpu.memory_space<vmem>>, vector<8x192xf32>
    %cst_287 = arith.constant dense<0.000000e+00> : vector<8x192xf32>
    %861 = tpu.matmul %858, %519, %cst_287 {dimension_numbers = #tpu.dot_dimension_numbers<[1], [0], [0], [1], [0, 0, 1, 1], [], []>} : vector<8x64xf32>, vector<64x192xf32>, vector<8x192xf32> -> vector<8x192xf32>
    %862 = vector.extract_strided_slice %860 {offsets = [0, 0], sizes = [8, 128], strides = [1, 1]} : vector<8x192xf32> to vector<8x128xf32>
    %863 = vector.extract_strided_slice %861 {offsets = [0, 0], sizes = [8, 128], strides = [1, 1]} : vector<8x192xf32> to vector<8x128xf32>
    %864 = arith.addf %862, %863 : vector<8x128xf32>
    %865 = arith.negf %864 : vector<8x128xf32>
    %866 = math.exp %865 : vector<8x128xf32>
    %cst_288 = arith.constant 1.000000e+00 : f32
    %867 = vector.broadcast %cst_288 : f32 to vector<8x128xf32>
    %868 = arith.addf %867, %866 : vector<8x128xf32>
    %869 = arith.divf %867, %868 : vector<8x128xf32>
    %870 = vector.extract_strided_slice %869 {offsets = [0, 0], sizes = [8, 64], strides = [1, 1]} : vector<8x128xf32> to vector<8x64xf32>
    %871 = vector.extract_strided_slice %869 {offsets = [0, 64], sizes = [8, 64], strides = [1, 1]} : vector<8x128xf32> to vector<8x64xf32>
    %872 = vector.extract_strided_slice %860 {offsets = [0, 128], sizes = [8, 64], strides = [1, 1]} : vector<8x192xf32> to vector<8x64xf32>
    %873 = vector.extract_strided_slice %861 {offsets = [0, 128], sizes = [8, 64], strides = [1, 1]} : vector<8x192xf32> to vector<8x64xf32>
    %874 = arith.addf %873, %522 : vector<8x64xf32>
    %875 = arith.mulf %870, %874 : vector<8x64xf32>
    %876 = arith.addf %872, %875 : vector<8x64xf32>
    %877 = math.tanh %876 : vector<8x64xf32>
    %cst_289 = arith.constant 1.000000e+00 : f32
    %878 = vector.broadcast %cst_289 : f32 to vector<8x64xf32>
    %879 = arith.subf %878, %871 : vector<8x64xf32>
    %880 = arith.mulf %879, %877 : vector<8x64xf32>
    %881 = arith.mulf %871, %858 : vector<8x64xf32>
    %882 = arith.addf %880, %881 : vector<8x64xf32>
    %c112_290 = arith.constant 112 : index
    %c0_291 = arith.constant 0 : index
    %883 = vector.load %arg9[%c112_290, %c0_291] : memref<160x64xf32, #tpu.memory_space<vmem>>, vector<8x64xf32>
    tpu.vector_store %arg9[%c112_290, %c0_291], %882 {strides = array<i32>} : memref<160x64xf32, #tpu.memory_space<vmem>>, vector<8x64xf32>,
    %c120_292 = arith.constant 120 : index
    %c0_293 = arith.constant 0 : index
    %884 = vector.load %arg10[%c120_292, %c0_293] : memref<160x192xf32, #tpu.memory_space<vmem>>, vector<8x192xf32>
    %cst_294 = arith.constant dense<0.000000e+00> : vector<8x192xf32>
    %885 = tpu.matmul %882, %519, %cst_294 {dimension_numbers = #tpu.dot_dimension_numbers<[1], [0], [0], [1], [0, 0, 1, 1], [], []>} : vector<8x64xf32>, vector<64x192xf32>, vector<8x192xf32> -> vector<8x192xf32>
    %886 = vector.extract_strided_slice %884 {offsets = [0, 0], sizes = [8, 128], strides = [1, 1]} : vector<8x192xf32> to vector<8x128xf32>
    %887 = vector.extract_strided_slice %885 {offsets = [0, 0], sizes = [8, 128], strides = [1, 1]} : vector<8x192xf32> to vector<8x128xf32>
    %888 = arith.addf %886, %887 : vector<8x128xf32>
    %889 = arith.negf %888 : vector<8x128xf32>
    %890 = math.exp %889 : vector<8x128xf32>
    %cst_295 = arith.constant 1.000000e+00 : f32
    %891 = vector.broadcast %cst_295 : f32 to vector<8x128xf32>
    %892 = arith.addf %891, %890 : vector<8x128xf32>
    %893 = arith.divf %891, %892 : vector<8x128xf32>
    %894 = vector.extract_strided_slice %893 {offsets = [0, 0], sizes = [8, 64], strides = [1, 1]} : vector<8x128xf32> to vector<8x64xf32>
    %895 = vector.extract_strided_slice %893 {offsets = [0, 64], sizes = [8, 64], strides = [1, 1]} : vector<8x128xf32> to vector<8x64xf32>
    %896 = vector.extract_strided_slice %884 {offsets = [0, 128], sizes = [8, 64], strides = [1, 1]} : vector<8x192xf32> to vector<8x64xf32>
    %897 = vector.extract_strided_slice %885 {offsets = [0, 128], sizes = [8, 64], strides = [1, 1]} : vector<8x192xf32> to vector<8x64xf32>
    %898 = arith.addf %897, %522 : vector<8x64xf32>
    %899 = arith.mulf %894, %898 : vector<8x64xf32>
    %900 = arith.addf %896, %899 : vector<8x64xf32>
    %901 = math.tanh %900 : vector<8x64xf32>
    %cst_296 = arith.constant 1.000000e+00 : f32
    %902 = vector.broadcast %cst_296 : f32 to vector<8x64xf32>
    %903 = arith.subf %902, %895 : vector<8x64xf32>
    %904 = arith.mulf %903, %901 : vector<8x64xf32>
    %905 = arith.mulf %895, %882 : vector<8x64xf32>
    %906 = arith.addf %904, %905 : vector<8x64xf32>
    %c120_297 = arith.constant 120 : index
    %c0_298 = arith.constant 0 : index
    %907 = vector.load %arg9[%c120_297, %c0_298] : memref<160x64xf32, #tpu.memory_space<vmem>>, vector<8x64xf32>
    tpu.vector_store %arg9[%c120_297, %c0_298], %906 {strides = array<i32>} : memref<160x64xf32, #tpu.memory_space<vmem>>, vector<8x64xf32>,
    %c128_299 = arith.constant 128 : index
    %c0_300 = arith.constant 0 : index
    %908 = vector.load %arg10[%c128_299, %c0_300] : memref<160x192xf32, #tpu.memory_space<vmem>>, vector<8x192xf32>
    %cst_301 = arith.constant dense<0.000000e+00> : vector<8x192xf32>
    %909 = tpu.matmul %906, %519, %cst_301 {dimension_numbers = #tpu.dot_dimension_numbers<[1], [0], [0], [1], [0, 0, 1, 1], [], []>} : vector<8x64xf32>, vector<64x192xf32>, vector<8x192xf32> -> vector<8x192xf32>
    %910 = vector.extract_strided_slice %908 {offsets = [0, 0], sizes = [8, 128], strides = [1, 1]} : vector<8x192xf32> to vector<8x128xf32>
    %911 = vector.extract_strided_slice %909 {offsets = [0, 0], sizes = [8, 128], strides = [1, 1]} : vector<8x192xf32> to vector<8x128xf32>
    %912 = arith.addf %910, %911 : vector<8x128xf32>
    %913 = arith.negf %912 : vector<8x128xf32>
    %914 = math.exp %913 : vector<8x128xf32>
    %cst_302 = arith.constant 1.000000e+00 : f32
    %915 = vector.broadcast %cst_302 : f32 to vector<8x128xf32>
    %916 = arith.addf %915, %914 : vector<8x128xf32>
    %917 = arith.divf %915, %916 : vector<8x128xf32>
    %918 = vector.extract_strided_slice %917 {offsets = [0, 0], sizes = [8, 64], strides = [1, 1]} : vector<8x128xf32> to vector<8x64xf32>
    %919 = vector.extract_strided_slice %917 {offsets = [0, 64], sizes = [8, 64], strides = [1, 1]} : vector<8x128xf32> to vector<8x64xf32>
    %920 = vector.extract_strided_slice %908 {offsets = [0, 128], sizes = [8, 64], strides = [1, 1]} : vector<8x192xf32> to vector<8x64xf32>
    %921 = vector.extract_strided_slice %909 {offsets = [0, 128], sizes = [8, 64], strides = [1, 1]} : vector<8x192xf32> to vector<8x64xf32>
    %922 = arith.addf %921, %522 : vector<8x64xf32>
    %923 = arith.mulf %918, %922 : vector<8x64xf32>
    %924 = arith.addf %920, %923 : vector<8x64xf32>
    %925 = math.tanh %924 : vector<8x64xf32>
    %cst_303 = arith.constant 1.000000e+00 : f32
    %926 = vector.broadcast %cst_303 : f32 to vector<8x64xf32>
    %927 = arith.subf %926, %919 : vector<8x64xf32>
    %928 = arith.mulf %927, %925 : vector<8x64xf32>
    %929 = arith.mulf %919, %906 : vector<8x64xf32>
    %930 = arith.addf %928, %929 : vector<8x64xf32>
    %c128_304 = arith.constant 128 : index
    %c0_305 = arith.constant 0 : index
    %931 = vector.load %arg9[%c128_304, %c0_305] : memref<160x64xf32, #tpu.memory_space<vmem>>, vector<8x64xf32>
    tpu.vector_store %arg9[%c128_304, %c0_305], %930 {strides = array<i32>} : memref<160x64xf32, #tpu.memory_space<vmem>>, vector<8x64xf32>,
    %c136_306 = arith.constant 136 : index
    %c0_307 = arith.constant 0 : index
    %932 = vector.load %arg10[%c136_306, %c0_307] : memref<160x192xf32, #tpu.memory_space<vmem>>, vector<8x192xf32>
    %cst_308 = arith.constant dense<0.000000e+00> : vector<8x192xf32>
    %933 = tpu.matmul %930, %519, %cst_308 {dimension_numbers = #tpu.dot_dimension_numbers<[1], [0], [0], [1], [0, 0, 1, 1], [], []>} : vector<8x64xf32>, vector<64x192xf32>, vector<8x192xf32> -> vector<8x192xf32>
    %934 = vector.extract_strided_slice %932 {offsets = [0, 0], sizes = [8, 128], strides = [1, 1]} : vector<8x192xf32> to vector<8x128xf32>
    %935 = vector.extract_strided_slice %933 {offsets = [0, 0], sizes = [8, 128], strides = [1, 1]} : vector<8x192xf32> to vector<8x128xf32>
    %936 = arith.addf %934, %935 : vector<8x128xf32>
    %937 = arith.negf %936 : vector<8x128xf32>
    %938 = math.exp %937 : vector<8x128xf32>
    %cst_309 = arith.constant 1.000000e+00 : f32
    %939 = vector.broadcast %cst_309 : f32 to vector<8x128xf32>
    %940 = arith.addf %939, %938 : vector<8x128xf32>
    %941 = arith.divf %939, %940 : vector<8x128xf32>
    %942 = vector.extract_strided_slice %941 {offsets = [0, 0], sizes = [8, 64], strides = [1, 1]} : vector<8x128xf32> to vector<8x64xf32>
    %943 = vector.extract_strided_slice %941 {offsets = [0, 64], sizes = [8, 64], strides = [1, 1]} : vector<8x128xf32> to vector<8x64xf32>
    %944 = vector.extract_strided_slice %932 {offsets = [0, 128], sizes = [8, 64], strides = [1, 1]} : vector<8x192xf32> to vector<8x64xf32>
    %945 = vector.extract_strided_slice %933 {offsets = [0, 128], sizes = [8, 64], strides = [1, 1]} : vector<8x192xf32> to vector<8x64xf32>
    %946 = arith.addf %945, %522 : vector<8x64xf32>
    %947 = arith.mulf %942, %946 : vector<8x64xf32>
    %948 = arith.addf %944, %947 : vector<8x64xf32>
    %949 = math.tanh %948 : vector<8x64xf32>
    %cst_310 = arith.constant 1.000000e+00 : f32
    %950 = vector.broadcast %cst_310 : f32 to vector<8x64xf32>
    %951 = arith.subf %950, %943 : vector<8x64xf32>
    %952 = arith.mulf %951, %949 : vector<8x64xf32>
    %953 = arith.mulf %943, %930 : vector<8x64xf32>
    %954 = arith.addf %952, %953 : vector<8x64xf32>
    %c136_311 = arith.constant 136 : index
    %c0_312 = arith.constant 0 : index
    %955 = vector.load %arg9[%c136_311, %c0_312] : memref<160x64xf32, #tpu.memory_space<vmem>>, vector<8x64xf32>
    tpu.vector_store %arg9[%c136_311, %c0_312], %954 {strides = array<i32>} : memref<160x64xf32, #tpu.memory_space<vmem>>, vector<8x64xf32>,
    %c144_313 = arith.constant 144 : index
    %c0_314 = arith.constant 0 : index
    %956 = vector.load %arg10[%c144_313, %c0_314] : memref<160x192xf32, #tpu.memory_space<vmem>>, vector<8x192xf32>
    %cst_315 = arith.constant dense<0.000000e+00> : vector<8x192xf32>
    %957 = tpu.matmul %954, %519, %cst_315 {dimension_numbers = #tpu.dot_dimension_numbers<[1], [0], [0], [1], [0, 0, 1, 1], [], []>} : vector<8x64xf32>, vector<64x192xf32>, vector<8x192xf32> -> vector<8x192xf32>
    %958 = vector.extract_strided_slice %956 {offsets = [0, 0], sizes = [8, 128], strides = [1, 1]} : vector<8x192xf32> to vector<8x128xf32>
    %959 = vector.extract_strided_slice %957 {offsets = [0, 0], sizes = [8, 128], strides = [1, 1]} : vector<8x192xf32> to vector<8x128xf32>
    %960 = arith.addf %958, %959 : vector<8x128xf32>
    %961 = arith.negf %960 : vector<8x128xf32>
    %962 = math.exp %961 : vector<8x128xf32>
    %cst_316 = arith.constant 1.000000e+00 : f32
    %963 = vector.broadcast %cst_316 : f32 to vector<8x128xf32>
    %964 = arith.addf %963, %962 : vector<8x128xf32>
    %965 = arith.divf %963, %964 : vector<8x128xf32>
    %966 = vector.extract_strided_slice %965 {offsets = [0, 0], sizes = [8, 64], strides = [1, 1]} : vector<8x128xf32> to vector<8x64xf32>
    %967 = vector.extract_strided_slice %965 {offsets = [0, 64], sizes = [8, 64], strides = [1, 1]} : vector<8x128xf32> to vector<8x64xf32>
    %968 = vector.extract_strided_slice %956 {offsets = [0, 128], sizes = [8, 64], strides = [1, 1]} : vector<8x192xf32> to vector<8x64xf32>
    %969 = vector.extract_strided_slice %957 {offsets = [0, 128], sizes = [8, 64], strides = [1, 1]} : vector<8x192xf32> to vector<8x64xf32>
    %970 = arith.addf %969, %522 : vector<8x64xf32>
    %971 = arith.mulf %966, %970 : vector<8x64xf32>
    %972 = arith.addf %968, %971 : vector<8x64xf32>
    %973 = math.tanh %972 : vector<8x64xf32>
    %cst_317 = arith.constant 1.000000e+00 : f32
    %974 = vector.broadcast %cst_317 : f32 to vector<8x64xf32>
    %975 = arith.subf %974, %967 : vector<8x64xf32>
    %976 = arith.mulf %975, %973 : vector<8x64xf32>
    %977 = arith.mulf %967, %954 : vector<8x64xf32>
    %978 = arith.addf %976, %977 : vector<8x64xf32>
    %c144_318 = arith.constant 144 : index
    %c0_319 = arith.constant 0 : index
    %979 = vector.load %arg9[%c144_318, %c0_319] : memref<160x64xf32, #tpu.memory_space<vmem>>, vector<8x64xf32>
    tpu.vector_store %arg9[%c144_318, %c0_319], %978 {strides = array<i32>} : memref<160x64xf32, #tpu.memory_space<vmem>>, vector<8x64xf32>,
    %c152_320 = arith.constant 152 : index
    %c0_321 = arith.constant 0 : index
    %980 = vector.load %arg10[%c152_320, %c0_321] : memref<160x192xf32, #tpu.memory_space<vmem>>, vector<8x192xf32>
    %cst_322 = arith.constant dense<0.000000e+00> : vector<8x192xf32>
    %981 = tpu.matmul %978, %519, %cst_322 {dimension_numbers = #tpu.dot_dimension_numbers<[1], [0], [0], [1], [0, 0, 1, 1], [], []>} : vector<8x64xf32>, vector<64x192xf32>, vector<8x192xf32> -> vector<8x192xf32>
    %982 = vector.extract_strided_slice %980 {offsets = [0, 0], sizes = [8, 128], strides = [1, 1]} : vector<8x192xf32> to vector<8x128xf32>
    %983 = vector.extract_strided_slice %981 {offsets = [0, 0], sizes = [8, 128], strides = [1, 1]} : vector<8x192xf32> to vector<8x128xf32>
    %984 = arith.addf %982, %983 : vector<8x128xf32>
    %985 = arith.negf %984 : vector<8x128xf32>
    %986 = math.exp %985 : vector<8x128xf32>
    %cst_323 = arith.constant 1.000000e+00 : f32
    %987 = vector.broadcast %cst_323 : f32 to vector<8x128xf32>
    %988 = arith.addf %987, %986 : vector<8x128xf32>
    %989 = arith.divf %987, %988 : vector<8x128xf32>
    %990 = vector.extract_strided_slice %989 {offsets = [0, 0], sizes = [8, 64], strides = [1, 1]} : vector<8x128xf32> to vector<8x64xf32>
    %991 = vector.extract_strided_slice %989 {offsets = [0, 64], sizes = [8, 64], strides = [1, 1]} : vector<8x128xf32> to vector<8x64xf32>
    %992 = vector.extract_strided_slice %980 {offsets = [0, 128], sizes = [8, 64], strides = [1, 1]} : vector<8x192xf32> to vector<8x64xf32>
    %993 = vector.extract_strided_slice %981 {offsets = [0, 128], sizes = [8, 64], strides = [1, 1]} : vector<8x192xf32> to vector<8x64xf32>
    %994 = arith.addf %993, %522 : vector<8x64xf32>
    %995 = arith.mulf %990, %994 : vector<8x64xf32>
    %996 = arith.addf %992, %995 : vector<8x64xf32>
    %997 = math.tanh %996 : vector<8x64xf32>
    %cst_324 = arith.constant 1.000000e+00 : f32
    %998 = vector.broadcast %cst_324 : f32 to vector<8x64xf32>
    %999 = arith.subf %998, %991 : vector<8x64xf32>
    %1000 = arith.mulf %999, %997 : vector<8x64xf32>
    %1001 = arith.mulf %991, %978 : vector<8x64xf32>
    %1002 = arith.addf %1000, %1001 : vector<8x64xf32>
    %c152_325 = arith.constant 152 : index
    %c0_326 = arith.constant 0 : index
    %1003 = vector.load %arg9[%c152_325, %c0_326] : memref<160x64xf32, #tpu.memory_space<vmem>>, vector<8x64xf32>
    tpu.vector_store %arg9[%c152_325, %c0_326], %1002 {strides = array<i32>} : memref<160x64xf32, #tpu.memory_space<vmem>>, vector<8x64xf32>,
    return
  }
}

</mosaic_0001>

<bundles_post_ra>
// kernel: tpu_custom_call.1
= control target key start
LH: loop header
LB: loop body
LE: loop exit
PB: predicated region body
PF: predicated region fallthrough
CT: control target
= control target key end

     0   :  { %v5718_v3 = vmov 0.0   ;;  %vm80_vm0 = vcmask 523264   ;;  %v70_v50 = vlaneseq  ;;  %s5719_s15 = smov 64   ;;  %vm489_vm1 = vcmask 1048064   ;;  %s7087_s1 = inlined_call_operand.vmem [shape: f32[64,192], index: 1, kind: input, shape index: {}]   ;;  %s7088_s3 = inlined_call_operand.vmem [shape: f32[64,192], index: 3, kind: input, shape index: {}]   ;;  %s7089_s0 = inlined_call_operand.vmem [shape: f32[160,64], index: 0, kind: input, shape index: {}]   ;;  %s7090_s2 = inlined_call_operand.vmem [shape: f32[1,192], index: 2, kind: input, shape index: {}]   ;;  %s7091_s4 = inlined_call_operand.vmem [shape: f32[1,64], index: 4, kind: input, shape index: {}]   ;;  %s7092_s5 = inlined_call_operand.vmem [shape: f32[128,192], index: 5, kind: input, shape index: {}]   ;;  %s7093_s7 = inlined_call_operand.vmem [shape: f32[64,192], index: 7, kind: input, shape index: {}]   ;;  %s7094_s6 = inlined_call_operand.vmem [shape: f32[1,192], index: 6, kind: input, shape index: {}]   ;;  %s7095_s8 = inlined_call_operand.vmem [shape: f32[1,64], index: 8, kind: input, shape index: {}]   ;;  %s7096_s9 = inlined_call_operand.vmem [shape: f32[160,64], index: 9, kind: output, shape index: {}]  }
   0x1   :  { %v53_v0 = vld [vmem:[%s7087_s1 + $0x8] sm:$0xff]  ;;  %v55_v1 = vld [vmem:[%s7087_s1 + $0x18] sm:$0xff]  ;;  %v52_v2 = vld [vmem:[%s7087_s1] sm:$0xff]  ;;  %205 = vmatprep.mubr.f32.mxu0 %v5718_v3  ;;  %458 = vmatprep.mubr.f32.mxu1 %v5718_v3 }
   0x2   :  { %v4785_v4 = vpack.c.bf16 %v55_v1, %v53_v0  ;;  %v54_v5 = vld [vmem:[%s7087_s1 + $0x10] sm:$0xff]  ;;  %v57_v6 = vld [vmem:[%s7087_s1 + $0x28] sm:$0xff]  ;;  %v59_v7 = vld [vmem:[%s7087_s1 + $0x38] sm:$0xff]  ;;  %v5917_v51 = vshrl.u32 %v70_v50, 7 }
   0x3   :  { %v4787_v8 = vpack.c.bf16 %v54_v5, %v52_v2  ;;  %v4789_v9 = vpack.c.bf16 %v59_v7, %v57_v6  ;;  %v56_v10 = vld [vmem:[%s7087_s1 + $0x20] sm:$0xff]  ;;  %v58_v11 = vld [vmem:[%s7087_s1 + $0x30] sm:$0xff]  ;;  %v61_v12 = vld [vmem:[%s7087_s1 + $0x48] sm:$0xff] }
   0x4   :  { %4786 = vmatprep.subr.bf16.mxu0 %v4785_v4  ;;  %v63_v13 = vld [vmem:[%s7087_s1 + $0x58] sm:$0xff]  ;;  %v4791_v14 = vpack.c.bf16 %v58_v11, %v56_v10  ;;  %v367_v15 = vld [vmem:[%s7088_s3 + $0x8] sm:$0xff]  ;;  %v366_v17 = vld [vmem:[%s7088_s3] sm:$0xff]  ;;  %v72_v52 = vsub.s32 0, %v5917_v51  ;;  %v76_v54 = vsub.s32 1, %v5917_v51 }
   0x5   :  { %4788 = vmatpush1.bf16.msra.mxu0 %v4787_v8  ;;  %v369_v16 = vld [vmem:[%s7088_s3 + $0x18] sm:$0xff]  ;;  %v4793_v18 = vpack.c.bf16 %v63_v13, %v61_v12  ;;  %v60_v19 = vld [vmem:[%s7087_s1 + $0x40] sm:$0xff]  ;;  %v62_v20 = vld [vmem:[%s7087_s1 + $0x50] sm:$0xff] }
   0x6   :  { %4790 = vmatprep.subr.bf16.mxu0 %v4789_v9  ;;  %v5817_v21 = vpack.c.bf16 %v369_v16, %v367_v15  ;;  %v368_v22 = vld [vmem:[%s7088_s3 + $0x10] sm:$0xff]  ;;  %v65_v24 = vld [vmem:[%s7087_s1 + $0x68] sm:$0xff]  ;;  %v67_v25 = vld [vmem:[%s7087_s1 + $0x78] sm:$0xff]  ;;  %v4795_v30 = vpack.c.bf16 %v62_v20, %v60_v19 }
   0x7   :  { %v5822_v23 = vpack.c.bf16 %v368_v22, %v366_v17  ;;  %v371_v26 = vld [vmem:[%s7088_s3 + $0x28] sm:$0xff]  ;;  %v373_v27 = vld [vmem:[%s7088_s3 + $0x38] sm:$0xff]  ;;  %v370_v28 = vld [vmem:[%s7088_s3 + $0x20] sm:$0xff]  ;;  %v4797_v36 = vpack.c.bf16 %v67_v25, %v65_v24 }
   0x8   :  { %4802 = vmatprep.subr.bf16.mxu1 %v5817_v21  ;;  %v372_v29 = vld [vmem:[%s7088_s3 + $0x30] sm:$0xff]  ;;  %v64_v31 = vld [vmem:[%s7087_s1 + $0x60] sm:$0xff]  ;;  %v5847_v32 = vpack.c.bf16 %v373_v27, %v371_v26  ;;  %v375_v34 = vld [vmem:[%s7088_s3 + $0x48] sm:$0xff] }
   0x9   :  { %4792 = vmatpush1.bf16.msra.mxu0 %v4791_v14  ;;  %4804 = vmatpush1.bf16.msra.mxu1 %v5822_v23  ;;  %v5849_v33 = vpack.c.bf16 %v372_v29, %v370_v28  ;;  %v377_v35 = vld [vmem:[%s7088_s3 + $0x58] sm:$0xff]  ;;  %v66_v37 = vld [vmem:[%s7087_s1 + $0x70] sm:$0xff]  ;;  %v374_v39 = vld [vmem:[%s7088_s3 + $0x40] sm:$0xff] }
   0xa   :  { %4794 = vmatprep.subr.bf16.mxu0 %v4793_v18  ;;  %v5860_v38 = vpack.c.bf16 %v377_v35, %v375_v34  ;;  %v376_v40 = vld [vmem:[%s7088_s3 + $0x50] sm:$0xff]  ;;  %4806 = vmatprep.subr.bf16.mxu1 %v5847_v32  ;;  %v379_v41 = vld [vmem:[%s7088_s3 + $0x68] sm:$0xff]  ;;  %v381_v42 = vld [vmem:[%s7088_s3 + $0x78] sm:$0xff]  ;;  %v4799_v43 = vpack.c.bf16 %v66_v37, %v64_v31 }
   0xb   :  { %v5876_v44 = vpack.c.bf16 %v376_v40, %v374_v39  ;;  %v5879_v45 = vpack.c.bf16 %v381_v42, %v379_v41  ;;  %v378_v46 = vld [vmem:[%s7088_s3 + $0x60] sm:$0xff]  ;;  %v380_v47 = vld [vmem:[%s7088_s3 + $0x70] sm:$0xff]  ;;  %v33_v10 = vld [vmem:[%s7089_s0 + $0x8] sm:$0xff] }
   0xc   :  { %v32_v48 = vld [vmem:[%s7089_s0] sm:$0xff]  ;;  %v5891_v49 = vpack.c.bf16 %v380_v47, %v378_v46  ;;  %v34_v37 = vld [vmem:[%s7089_s0 + $0x10] sm:$0xff] }
   0xd   :  { %4796 = vmatpush1.bf16.msra.mxu0 %v4795_v30  ;;  %4808 = vmatpush1.bf16.msra.mxu1 %v5849_v33  ;;  %v68_v53 = vld [vmem:[%s7090_s2] sm:$0x3] }
   0xe   :  { %4798 = vmatprep.subr.bf16.mxu0 %v4797_v36  ;;  %4810 = vmatprep.subr.bf16.mxu1 %v5860_v38  ;;  %v5926_v55 = vrot.slane %v68_v53, %v72_v52  ;;  %v5930_v56 = vrot.slane %v68_v53, %v76_v54  ;;  %v5938_v4 = vld [vmem:[%s7091_s4] ss:$0 sm:$0xff] }
  0x11   :  { %4800 = vmatpush1.bf16.msra.mxu0 %v4799_v43  ;;  %4812 = vmatpush1.bf16.msra.mxu1 %v5876_v44 }
  0x12   :  { %4814 = vmatprep.subr.bf16.mxu1 %v5879_v45  ;;  %4882 = vmatprep.subr.bf16.mxu0 %v5817_v21 }
  0x14   :  { %4685 = vmatmul.mubr.msk.f32.vlgmr.msra.gmra.mrb[0].mxu0 %vm80_vm0, %v32_v48 }
  0x15   :  { %4816 = vmatpush1.bf16.msra.mxu1 %v5891_v49  ;;  %211 = vmatprep.mubr.f32.mxu0 %v5718_v3 }
  0x16   :  { %4818 = vmatprep.subr.bf16.mxu1 %v5817_v21  ;;  %4884 = vmatpush1.bf16.msra.mxu0 %v5822_v23 }
  0x17   :  { %4886 = vmatprep.subr.bf16.mxu0 %v5847_v32 }
  0x18   :  { %459 = vmatmul.mubr.f32.vlgmr.msra.gmra.mrb[0].mxu1 %v5718_v3  ;;  %4686 = vmatmul.mubr.msk.f32.gmra.mrb[2].mxu0 %vm80_vm0, %v33_v10 }
  0x19   :  { %4820 = vmatpush1.bf16.msra.mxu1 %v5822_v23  ;;  %559 = vmatprep.mubr.f32.mxu1 %v5718_v3 }
  0x1a   :  { %4822 = vmatprep.subr.bf16.mxu1 %v5847_v32  ;;  %4888 = vmatpush1.bf16.msra.mxu0 %v5849_v33 }
  0x1b   :  { %4890 = vmatprep.subr.bf16.mxu0 %v5860_v38  ;;  %217 = vmatprep.mubr.f32.mxu0 %v5718_v3 }
  0x1c   :  { %4687 = vmatmul.mubr.msk.f32.gmra.mrb[4].mxu0 %vm80_vm0, %v34_v37 }
  0x1d   :  { %4824 = vmatpush1.bf16.msra.mxu1 %v5849_v33  ;;  %223 = vmatprep.mubr.f32.mxu0 %v5718_v3 }
  0x1e   :  { %4826 = vmatprep.subr.bf16.mxu1 %v5860_v38  ;;  %4892 = vmatpush1.bf16.msra.mxu0 %v5876_v44 }
  0x1f   :  { %4894 = vmatprep.subr.bf16.mxu0 %v5879_v45 }
  0x21   :  { %4828 = vmatpush1.bf16.msra.mxu1 %v5876_v44 }
  0x22   :  { %4830 = vmatprep.subr.bf16.mxu1 %v5879_v45  ;;  %4896 = vmatpush1.bf16.msra.mxu0 %v5891_v49 }
  0x23   :  { %4914 = vmatprep.subr.bf16.mxu0 %v5817_v21 }
  0x25   :  { %4832 = vmatpush1.bf16.msra.mxu1 %v5891_v49 }
  0x26   :  { %4834 = vmatprep.subr.bf16.mxu1 %v5817_v21 }
  0xe7   :  { %v207_v57 = vpop.f32.mrb[0].mxu0 }
  0xe8   :  { %v208_v58 = vadd.f32 %v207_v57, %v5926_v55  ;;  %v209_v59 = vpop.f32.mrb[1].mxu0 }
  0xe9   :  { %v210_v60 = vadd.f32 %v209_v59, %v5930_v56 }
  0xeb   :  { %327 = vst.msk [vmem:[#allocation2 + $0x8] sm:$0xff] %vm80_vm0, %v210_v60  ;;  %v460_v61 = vpop.f32.mrb[0].mxu1  ;;  %v213_v17 = vpop.f32.mrb[2].mxu0 }
  0xec   :  { %v465_v62 = vadd.f32 %v460_v61, %v208_v58  ;;  %v462_v63 = vpop.f32.mrb[1].mxu1  ;;  %v215_v18 = vpop.f32.mrb[3].mxu0  ;;  %v214_v22 = vadd.f32 %v213_v17, %v5926_v55 }
  0xed   :  { %v472_v5 = vadd.f32 %v5938_v4, %v462_v63  ;;  %v216_v19 = vadd.f32 %v215_v18, %v5930_v56 }
  0xee   :  { %v4706_v0 = vmul.f32 -1.442695, %v465_v62 }
  0xef   :  { %329 = vst.msk [vmem:[#allocation2 + $0x18] sm:$0xff] %vm80_vm0, %v216_v19  ;;  %v219_v47 = vpop.f32.mrb[4].mxu0 }
  0xf0   :  { %5475 = vpow2.f32 %v4706_v0  ;;  %v221_v48 = vpop.f32.mrb[5].mxu0  ;;  %v220_v57 = vadd.f32 %v219_v47, %v5926_v55 }
  0xf1   :  { %v222_v50 = vadd.f32 %v221_v48, %v5930_v56 }
  0xf2   :  { %v390_v8 = vld [vmem:[#allocation2 + $0x8] sm:$0xff] }
  0xf3   :  { %331 = vst.msk [vmem:[#allocation2 + $0x28] sm:$0xff] %vm80_vm0, %v222_v50 }
  0xf6   :  { %v492_v35 = vld [vmem:[#allocation2 + $0x18] sm:$0xff] }
  0xfa   :  { %v5476_v1 = vpop.eup %5475 }
  0xfb   :  { %v469_v2 = vadd.f32 1.0, %v5476_v1 }
  0xfd   :  { %5477 = vrcp.f32 %v469_v2 }
 0x107   :  { %v5478_v6 = vpop.eup %5477 }
 0x108   :  { %v473_v7 = vmul.f32 %v5478_v6, %v472_v5  ;;  %v476_v12 = vsub.f32 1.0, %v5478_v6  ;;  %v482_v14 = vmul.f32 0.0, %v5478_v6  ;;  %v592_v5 = vld [vmem:[#allocation2 + $0x28] sm:$0xff] }
 0x10a   :  { %v474_v9 = vadd.f32 %v473_v7, %v390_v8  ;;  %v35_v7 = vld [vmem:[%s7089_s0 + $0x18] sm:$0xff] }
 0x10b   :  { %4688 = vmatmul.mubr.msk.f32.gmra.mrb[6].mxu0 %vm80_vm0, %v35_v7 }
 0x10c   :  { %5479 = vtanh.f32 %v474_v9  ;;  %229 = vmatprep.mubr.f32.mxu0 %v5718_v3 }
 0x116   :  { %v5480_v11 = vpop.eup %5479 }
 0x117   :  { %478 = vrot.lane.b32.xlu0 %v5480_v11, %s5719_s15 }
 0x189   :  { %v479_v13 = vpop.permute.xlu0 %478 }
 0x18a   :  { %v481_v15 = vmul.f32 %v479_v13, %v476_v12 }
 0x18c   :  { %v483_v16 = vadd.f32 %v482_v14, %v481_v15 }
 0x18e   :  { %485 = vrot.lane.b32.xlu0 %v483_v16, %s5719_s15  ;;  %490 = vst.msk [vmem:[#allocation3 + $0x98] sm:$0xff] %vm489_vm1, %v483_v16 }
 0x1de   :  { %v225_v14 = vpop.f32.mrb[6].mxu0 }
 0x1df   :  { %v227_v15 = vpop.f32.mrb[7].mxu0  ;;  %v226_v18 = vadd.f32 %v225_v14, %v5926_v55  ;;  %v46_v14 = vld [vmem:[%s7089_s0 + $0x70] sm:$0xff] }
 0x200   :  { %v486_v20 = vpop.permute.xlu0 %485 }
 0x201   :  { %488 = vst.msk [vmem:[#allocation3] sm:$0xff] %vm80_vm0, %v486_v20  ;;  %4707 = vmatmul.mubr.msk.f32.vlgmr.msra.gmra.mrb[2].mxu1 %vm80_vm0, %v486_v20 }
 0x202   :  { %4836 = vmatpush1.bf16.msra.mxu1 %v5822_v23  ;;  %659 = vmatprep.mubr.f32.mxu1 %v5718_v3 }
 0x203   :  { %4838 = vmatprep.subr.bf16.mxu1 %v5847_v32 }
 0x206   :  { %4840 = vmatpush1.bf16.msra.mxu1 %v5849_v33 }
 0x207   :  { %4842 = vmatprep.subr.bf16.mxu1 %v5860_v38 }
 0x20a   :  { %4844 = vmatpush1.bf16.msra.mxu1 %v5876_v44 }
 0x20b   :  { %4846 = vmatprep.subr.bf16.mxu1 %v5879_v45 }
 0x20e   :  { %4848 = vmatpush1.bf16.msra.mxu1 %v5891_v49 }
 0x20f   :  { %4850 = vmatprep.subr.bf16.mxu1 %v5817_v21 }
 0x2d4   :  { %v561_v24 = vpop.f32.mrb[2].mxu1 }
 0x2d5   :  { %v566_v25 = vadd.f32 %v561_v24, %v214_v22  ;;  %v563_v26 = vpop.f32.mrb[3].mxu1 }
 0x2d6   :  { %v573_v30 = vadd.f32 %v5938_v4, %v563_v26 }
 0x2d7   :  { %v4708_v27 = vmul.f32 -1.442695, %v566_v25 }
 0x2d9   :  { %5481 = vpow2.f32 %v4708_v27 }
 0x2e3   :  { %v5482_v28 = vpop.eup %5481 }
 0x2e4   :  { %v570_v29 = vadd.f32 1.0, %v5482_v28 }
 0x2e6   :  { %5483 = vrcp.f32 %v570_v29 }
 0x2f0   :  { %v5484_v31 = vpop.eup %5483 }
 0x2f1   :  { %v574_v34 = vmul.f32 %v5484_v31, %v573_v30  ;;  %v577_v40 = vsub.f32 1.0, %v5484_v31  ;;  %v583_v42 = vmul.f32 %v5484_v31, %v483_v16  ;;  %v228_v16 = vadd.f32 %v227_v15, %v5930_v56  ;;  %v47_v15 = vld [vmem:[%s7089_s0 + $0x78] sm:$0xff] }
 0x2f3   :  { %v575_v36 = vadd.f32 %v574_v34, %v492_v35  ;;  %333 = vst.msk [vmem:[#allocation2 + $0x38] sm:$0xff] %vm80_vm0, %v228_v16  ;;  %v36_v34 = vld [vmem:[%s7089_s0 + $0x20] sm:$0xff] }
 0x2f4   :  { %4689 = vmatmul.mubr.msk.f32.gmra.mrb[8].mxu0 %vm80_vm0, %v36_v34  ;;  %v48_v16 = vld [vmem:[%s7089_s0 + $0x80] sm:$0xff] }
 0x2f5   :  { %5485 = vtanh.f32 %v575_v36  ;;  %235 = vmatprep.mubr.f32.mxu0 %v5718_v3 }
 0x2fa   :  { %v692_v30 = vld [vmem:[#allocation2 + $0x38] sm:$0xff] }
 0x2ff   :  { %v5486_v39 = vpop.eup %5485 }
 0x300   :  { %579 = vrot.lane.b32.xlu1 %v5486_v39, %s5719_s15 }
 0x372   :  { %v580_v41 = vpop.permute.xlu1 %579 }
 0x373   :  { %v582_v43 = vmul.f32 %v580_v41, %v577_v40 }
 0x375   :  { %v584_v46 = vadd.f32 %v583_v42, %v582_v43 }
 0x377   :  { %586 = vrot.lane.b32.xlu1 %v584_v46, %s5719_s15  ;;  %590 = vst.msk [vmem:[#allocation3 + $0x90] sm:$0xff] %vm489_vm1, %v584_v46 }
 0x3c7   :  { %v231_v42 = vpop.f32.mrb[8].mxu0 }
 0x3c8   :  { %v233_v43 = vpop.f32.mrb[9].mxu0  ;;  %v232_v48 = vadd.f32 %v231_v42, %v5926_v55 }
 0x3e9   :  { %v587_v53 = vpop.permute.xlu1 %586 }
 0x3ea   :  { %589 = vst.msk [vmem:[#allocation3 + $0x8] sm:$0xff] %vm80_vm0, %v587_v53  ;;  %4709 = vmatmul.mubr.msk.f32.vlgmr.msra.gmra.mrb[4].mxu1 %vm80_vm0, %v587_v53 }
 0x3eb   :  { %4852 = vmatpush1.bf16.msra.mxu1 %v5822_v23  ;;  %759 = vmatprep.mubr.f32.mxu1 %v5718_v3 }
 0x3ec   :  { %4854 = vmatprep.subr.bf16.mxu1 %v5847_v32 }
 0x3ef   :  { %4856 = vmatpush1.bf16.msra.mxu1 %v5849_v33 }
 0x3f0   :  { %4858 = vmatprep.subr.bf16.mxu1 %v5860_v38 }
 0x3f3   :  { %4860 = vmatpush1.bf16.msra.mxu1 %v5876_v44 }
 0x3f4   :  { %4862 = vmatprep.subr.bf16.mxu1 %v5879_v45 }
 0x3f7   :  { %4864 = vmatpush1.bf16.msra.mxu1 %v5891_v49 }
 0x3f8   :  { %4866 = vmatprep.subr.bf16.mxu1 %v5817_v21 }
 0x4bd   :  { %v661_v58 = vpop.f32.mrb[4].mxu1 }
 0x4be   :  { %v666_v59 = vadd.f32 %v661_v58, %v220_v57  ;;  %v663_v60 = vpop.f32.mrb[5].mxu1 }
 0x4bf   :  { %v673_v0 = vadd.f32 %v5938_v4, %v663_v60 }
 0x4c0   :  { %v4710_v61 = vmul.f32 -1.442695, %v666_v59 }
 0x4c2   :  { %5487 = vpow2.f32 %v4710_v61 }
 0x4cc   :  { %v5488_v62 = vpop.eup %5487 }
 0x4cd   :  { %v670_v63 = vadd.f32 1.0, %v5488_v62 }
 0x4cf   :  { %5489 = vrcp.f32 %v670_v63 }
 0x4d9   :  { %v5490_v1 = vpop.eup %5489 }
 0x4da   :  { %v674_v2 = vmul.f32 %v5490_v1, %v673_v0  ;;  %v677_v9 = vsub.f32 1.0, %v5490_v1  ;;  %v683_v11 = vmul.f32 %v5490_v1, %v584_v46  ;;  %v234_v46 = vadd.f32 %v233_v43, %v5930_v56 }
 0x4dc   :  { %v675_v6 = vadd.f32 %v674_v2, %v592_v5  ;;  %335 = vst.msk [vmem:[#allocation2 + $0x48] sm:$0xff] %vm80_vm0, %v234_v46  ;;  %v37_v2 = vld [vmem:[%s7089_s0 + $0x28] sm:$0xff]  ;;  %v38_v5 = vld [vmem:[%s7089_s0 + $0x30] sm:$0xff] }
 0x4dd   :  { %4690 = vmatmul.mubr.msk.f32.gmra.mrb[10].mxu0 %vm80_vm0, %v37_v2 }
 0x4de   :  { %5491 = vtanh.f32 %v675_v6  ;;  %241 = vmatprep.mubr.f32.mxu0 %v5718_v3  ;;  %v39_v6 = vld [vmem:[%s7089_s0 + $0x38] sm:$0xff] }
 0x4e1   :  { %4691 = vmatmul.mubr.msk.f32.gmra.mrb[12].mxu0 %vm80_vm0, %v38_v5 }
 0x4e2   :  { %247 = vmatprep.mubr.f32.mxu0 %v5718_v3 }
 0x4e3   :  { %v792_v0 = vld [vmem:[#allocation2 + $0x48] sm:$0xff] }
 0x4e5   :  { %4692 = vmatmul.mubr.msk.f32.gmra.mrb[14].mxu0 %vm80_vm0, %v39_v6 }
 0x4e6   :  { %253 = vmatprep.mubr.f32.mxu0 %v5718_v3 }
 0x4e8   :  { %v5492_v8 = vpop.eup %5491 }
 0x4e9   :  { %679 = vrot.lane.b32.xlu0 %v5492_v8, %s5719_s15  ;;  %v40_v8 = vld [vmem:[%s7089_s0 + $0x40] sm:$0xff] }
 0x4ea   :  { %4693 = vmatmul.mubr.msk.f32.gmra.mrb[16].mxu0 %vm80_vm0, %v40_v8 }
 0x4eb   :  { %259 = vmatprep.mubr.f32.mxu0 %v5718_v3 }
 0x55b   :  { %v680_v10 = vpop.permute.xlu0 %679 }
 0x55c   :  { %v682_v12 = vmul.f32 %v680_v10, %v677_v9  ;;  %v41_v9 = vld [vmem:[%s7089_s0 + $0x48] sm:$0xff]  ;;  %v42_v10 = vld [vmem:[%s7089_s0 + $0x50] sm:$0xff] }
 0x55d   :  { %4694 = vmatmul.mubr.msk.f32.gmra.mrb[18].mxu0 %vm80_vm0, %v41_v9 }
 0x55e   :  { %v684_v13 = vadd.f32 %v683_v11, %v682_v12  ;;  %265 = vmatprep.mubr.f32.mxu0 %v5718_v3  ;;  %v43_v11 = vld [vmem:[%s7089_s0 + $0x58] sm:$0xff]  ;;  %v44_v12 = vld [vmem:[%s7089_s0 + $0x60] sm:$0xff] }
 0x560   :  { %686 = vrot.lane.b32.xlu1 %v684_v13, %s5719_s15  ;;  %690 = vst.msk [vmem:[#allocation3 + $0x88] sm:$0xff] %vm489_vm1, %v684_v13 }
 0x561   :  { %4695 = vmatmul.mubr.msk.f32.gmra.mrb[20].mxu0 %vm80_vm0, %v42_v10 }
 0x562   :  { %271 = vmatprep.mubr.f32.mxu0 %v5718_v3 }
 0x565   :  { %4696 = vmatmul.mubr.msk.f32.gmra.mrb[22].mxu0 %vm80_vm0, %v43_v11 }
 0x566   :  { %277 = vmatprep.mubr.f32.mxu0 %v5718_v3 }
 0x569   :  { %4697 = vmatmul.mubr.msk.f32.gmra.mrb[24].mxu0 %vm80_vm0, %v44_v12 }
 0x56a   :  { %283 = vmatprep.mubr.f32.mxu0 %v5718_v3 }
 0x5d2   :  { %v687_v17 = vpop.permute.xlu1 %686 }
 0x5d3   :  { %689 = vst.msk [vmem:[#allocation3 + $0x10] sm:$0xff] %vm80_vm0, %v687_v17  ;;  %4711 = vmatmul.mubr.msk.f32.vlgmr.msra.gmra.mrb[6].mxu1 %vm80_vm0, %v687_v17  ;;  %v49_v17 = vld [vmem:[%s7089_s0 + $0x88] sm:$0xff] }
 0x5d4   :  { %4868 = vmatpush1.bf16.msra.mxu1 %v5822_v23  ;;  %859 = vmatprep.mubr.f32.mxu1 %v5718_v3 }
 0x5d5   :  { %4870 = vmatprep.subr.bf16.mxu1 %v5847_v32 }
 0x5d8   :  { %4872 = vmatpush1.bf16.msra.mxu1 %v5849_v33 }
 0x5d9   :  { %4874 = vmatprep.subr.bf16.mxu1 %v5860_v38 }
 0x5dc   :  { %4876 = vmatpush1.bf16.msra.mxu1 %v5876_v44 }
 0x5dd   :  { %4878 = vmatprep.subr.bf16.mxu1 %v5879_v45 }
 0x5e0   :  { %4880 = vmatpush1.bf16.msra.mxu1 %v5891_v49 }
 0x5e1   :  { %4898 = vmatprep.subr.bf16.mxu1 %v5817_v21 }
 0x6a6   :  { %v761_v19 = vpop.f32.mrb[6].mxu1 }
 0x6a7   :  { %v766_v20 = vadd.f32 %v761_v19, %v226_v18  ;;  %v763_v22 = vpop.f32.mrb[7].mxu1  ;;  %v50_v18 = vld [vmem:[%s7089_s0 + $0x90] sm:$0xff]  ;;  %v51_v19 = vld [vmem:[%s7089_s0 + $0x98] sm:$0xff] }
 0x6a8   :  { %v773_v27 = vadd.f32 %v5938_v4, %v763_v22 }
 0x6a9   :  { %v4712_v24 = vmul.f32 -1.442695, %v766_v20 }
 0x6ab   :  { %5493 = vpow2.f32 %v4712_v24 }
 0x6b5   :  { %v5494_v25 = vpop.eup %5493 }
 0x6b6   :  { %v770_v26 = vadd.f32 1.0, %v5494_v25 }
 0x6b8   :  { %5495 = vrcp.f32 %v770_v26 }
 0x6c2   :  { %v5496_v28 = vpop.eup %5495 }
 0x6c3   :  { %v774_v29 = vmul.f32 %v5496_v28, %v773_v27  ;;  %v777_v36 = vsub.f32 1.0, %v5496_v28  ;;  %v783_v39 = vmul.f32 %v5496_v28, %v684_v13  ;;  %v45_v13 = vld [vmem:[%s7089_s0 + $0x68] sm:$0xff]  ;;  %v6120_v27 = vpop.f32.mrb[10].mxu0 }
 0x6c4   :  { %4698 = vmatmul.mubr.msk.f32.gmra.mrb[26].mxu0 %vm80_vm0, %v45_v13  ;;  %v239_v28 = vpop.f32.mrb[11].mxu0 }
 0x6c5   :  { %v775_v31 = vadd.f32 %v774_v29, %v692_v30  ;;  %289 = vmatprep.mubr.f32.mxu0 %v5718_v3  ;;  %v240_v29 = vadd.f32 %v239_v28, %v5930_v56  ;;  %v6124_v30 = vpop.f32.mrb[12].mxu0 }
 0x6c7   :  { %5497 = vtanh.f32 %v775_v31  ;;  %337 = vst.msk [vmem:[#allocation2 + $0x58] sm:$0xff] %vm80_vm0, %v240_v29  ;;  %v245_v31 = vpop.f32.mrb[13].mxu0 }
 0x6c8   :  { %4699 = vmatmul.mubr.msk.f32.gmra.mrb[28].mxu0 %vm80_vm0, %v46_v14  ;;  %v246_v34 = vadd.f32 %v245_v31, %v5930_v56 }
 0x6c9   :  { %295 = vmatprep.mubr.f32.mxu0 %v5718_v3 }
 0x6ca   :  { %339 = vst.msk [vmem:[#allocation2 + $0x68] sm:$0xff] %vm80_vm0, %v246_v34 }
 0x6cc   :  { %4700 = vmatmul.mubr.msk.f32.gmra.mrb[30].mxu0 %vm80_vm0, %v47_v15 }
 0x6cd   :  { %301 = vmatprep.mubr.f32.mxu0 %v5718_v3 }
 0x6d0   :  { %4701 = vmatmul.mubr.msk.f32.gmra.mrb[32].mxu0 %vm80_vm0, %v48_v16 }
 0x6d1   :  { %v5498_v35 = vpop.eup %5497  ;;  %307 = vmatprep.mubr.f32.mxu0 %v5718_v3 }
 0x6d2   :  { %779 = vrot.lane.b32.xlu0 %v5498_v35, %s5719_s15  ;;  %v6128_v35 = vpop.f32.mrb[14].mxu0 }
 0x6d4   :  { %4702 = vmatmul.mubr.msk.f32.gmra.mrb[34].mxu0 %vm80_vm0, %v49_v17 }
 0x6d5   :  { %313 = vmatprep.mubr.f32.mxu0 %v5718_v3 }
 0x6d8   :  { %4703 = vmatmul.mubr.msk.f32.gmra.mrb[36].mxu0 %vm80_vm0, %v50_v18 }
 0x6d9   :  { %319 = vmatprep.mubr.f32.mxu0 %v5718_v3 }
 0x6dc   :  { %4704 = vmatmul.mubr.msk.f32.gmra.mrb[38].mxu0 %vm80_vm0, %v51_v19 }
 0x6dd   :  { %959 = vmatprep.mubr.f32.mxu0 %v5718_v3 }
 0x744   :  { %v780_v37 = vpop.permute.xlu0 %779 }
 0x745   :  { %v782_v40 = vmul.f32 %v780_v37, %v777_v36  ;;  %v251_v36 = vpop.f32.mrb[15].mxu0 }
 0x746   :  { %v252_v37 = vadd.f32 %v251_v36, %v5930_v56 }
 0x747   :  { %v6016_v41 = vadd.f32 %v783_v39, %v782_v40  ;;  %v6132_v39 = vpop.f32.mrb[16].mxu0 }
 0x748   :  { %341 = vst.msk [vmem:[#allocation2 + $0x78] sm:$0xff] %vm80_vm0, %v252_v37  ;;  %v257_v40 = vpop.f32.mrb[17].mxu0 }
 0x749   :  { %786 = vrot.lane.b32.xlu1 %v6016_v41, %s5719_s15  ;;  %790 = vst.msk [vmem:[#allocation3 + $0x80] sm:$0xff] %vm489_vm1, %v6016_v41  ;;  %v6136_v42 = vpop.f32.mrb[18].mxu0 }
 0x74a   :  { %v263_v43 = vpop.f32.mrb[19].mxu0 }
 0x74b   :  { %v264_v46 = vadd.f32 %v263_v43, %v5930_v56  ;;  %v892_v43 = vld [vmem:[#allocation2 + $0x58] sm:$0xff] }
 0x74d   :  { %345 = vst.msk [vmem:[#allocation2 + $0x98] sm:$0xff] %vm80_vm0, %v264_v46 }
 0x7bb   :  { %v787_v47 = vpop.permute.xlu1 %786 }
 0x7bc   :  { %789 = vst.msk [vmem:[#allocation3 + $0x18] sm:$0xff] %vm80_vm0, %v787_v47  ;;  %4713 = vmatmul.mubr.msk.f32.vlgmr.msra.gmra.mrb[8].mxu1 %vm80_vm0, %v787_v47  ;;  %v6140_v47 = vpop.f32.mrb[20].mxu0 }
 0x7bd   :  { %4900 = vmatpush1.bf16.msra.mxu1 %v5822_v23  ;;  %1059 = vmatprep.mubr.f32.mxu1 %v5718_v3 }
 0x7be   :  { %4902 = vmatprep.subr.bf16.mxu1 %v5847_v32 }
 0x7c1   :  { %4904 = vmatpush1.bf16.msra.mxu1 %v5849_v33 }
 0x7c2   :  { %4906 = vmatprep.subr.bf16.mxu1 %v5860_v38 }
 0x7c5   :  { %4908 = vmatpush1.bf16.msra.mxu1 %v5876_v44 }
 0x7c6   :  { %4910 = vmatprep.subr.bf16.mxu1 %v5879_v45 }
 0x7c9   :  { %4912 = vmatpush1.bf16.msra.mxu1 %v5891_v49 }
 0x7ca   :  { %4930 = vmatprep.subr.bf16.mxu1 %v5817_v21 }
 0x88f   :  { %v861_v50 = vpop.f32.mrb[8].mxu1 }
 0x890   :  { %v866_v53 = vadd.f32 %v861_v50, %v232_v48  ;;  %v863_v57 = vpop.f32.mrb[9].mxu1  ;;  %v269_v48 = vpop.f32.mrb[21].mxu0 }
 0x891   :  { %v873_v61 = vadd.f32 %v5938_v4, %v863_v57  ;;  %v270_v50 = vadd.f32 %v269_v48, %v5930_v56 }
 0x892   :  { %v4714_v58 = vmul.f32 -1.442695, %v866_v53  ;;  %v6144_v53 = vpop.f32.mrb[22].mxu0 }
 0x893   :  { %347 = vst.msk [vmem:[#allocation2 + $0xa8] sm:$0xff] %vm80_vm0, %v270_v50  ;;  %v275_v57 = vpop.f32.mrb[23].mxu0 }
 0x894   :  { %5499 = vpow2.f32 %v4714_v58  ;;  %v276_v58 = vadd.f32 %v275_v57, %v5930_v56 }
 0x896   :  { %349 = vst.msk [vmem:[#allocation2 + $0xb8] sm:$0xff] %vm80_vm0, %v276_v58 }
 0x89e   :  { %v5500_v59 = vpop.eup %5499 }
 0x89f   :  { %v870_v60 = vadd.f32 1.0, %v5500_v59  ;;  %v6148_v59 = vpop.f32.mrb[24].mxu0 }
 0x8a1   :  { %5501 = vrcp.f32 %v870_v60  ;;  %v281_v60 = vpop.f32.mrb[25].mxu0 }
 0x8ab   :  { %v5502_v62 = vpop.eup %5501 }
 0x8ac   :  { %v874_v63 = vmul.f32 %v5502_v62, %v873_v61  ;;  %v877_v20 = vsub.f32 1.0, %v5502_v62  ;;  %v883_v24 = vmul.f32 %v5502_v62, %v6016_v41  ;;  %v258_v41 = vadd.f32 %v257_v40, %v5930_v56 }
 0x8ad   :  { %v282_v62 = vadd.f32 %v281_v60, %v5930_v56 }
 0x8ae   :  { %v875_v1 = vadd.f32 %v874_v63, %v792_v0  ;;  %343 = vst.msk [vmem:[#allocation2 + $0x88] sm:$0xff] %vm80_vm0, %v258_v41  ;;  %v6154_v63 = vpop.f32.mrb[26].mxu0 }
 0x8af   :  { %351 = vst.msk [vmem:[#allocation2 + $0xc8] sm:$0xff] %vm80_vm0, %v282_v62  ;;  %v287_v0 = vpop.f32.mrb[27].mxu0 }
 0x8b0   :  { %5503 = vtanh.f32 %v875_v1  ;;  %v288_v1 = vadd.f32 %v287_v0, %v5930_v56  ;;  %v6161_v2 = vpop.f32.mrb[28].mxu0 }
 0x8b1   :  { %v293_v5 = vpop.f32.mrb[29].mxu0 }
 0x8b2   :  { %353 = vst.msk [vmem:[#allocation2 + $0xd8] sm:$0xff] %vm80_vm0, %v288_v1  ;;  %v294_v6 = vadd.f32 %v293_v5, %v5930_v56 }
 0x8b4   :  { %355 = vst.msk [vmem:[#allocation2 + $0xe8] sm:$0xff] %vm80_vm0, %v294_v6 }
 0x8ba   :  { %v5504_v7 = vpop.eup %5503 }
 0x8bb   :  { %879 = vrot.lane.b32.xlu0 %v5504_v7, %s5719_s15  ;;  %v6167_v7 = vpop.f32.mrb[30].mxu0 }
 0x8bc   :  { %v299_v8 = vpop.f32.mrb[31].mxu0 }
 0x8bd   :  { %v300_v9 = vadd.f32 %v299_v8, %v5930_v56  ;;  %v6173_v10 = vpop.f32.mrb[32].mxu0 }
 0x8be   :  { %v305_v11 = vpop.f32.mrb[33].mxu0 }
 0x8bf   :  { %357 = vst.msk [vmem:[#allocation2 + $0xf8] sm:$0xff] %vm80_vm0, %v300_v9  ;;  %v306_v12 = vadd.f32 %v305_v11, %v5930_v56  ;;  %v6179_v13 = vpop.f32.mrb[34].mxu0 }
 0x8c0   :  { %v311_v14 = vpop.f32.mrb[35].mxu0 }
 0x8c1   :  { %359 = vst.msk [vmem:[#allocation2 + $0x108] sm:$0xff] %vm80_vm0, %v306_v12  ;;  %v312_v15 = vadd.f32 %v311_v14, %v5930_v56  ;;  %v6183_v16 = vpop.f32.mrb[36].mxu0  ;;  %v992_v12 = vld [vmem:[#allocation2 + $0x68] sm:$0xff] }
 0x8c2   :  { %v317_v17 = vpop.f32.mrb[37].mxu0 }
 0x8c3   :  { %361 = vst.msk [vmem:[#allocation2 + $0x118] sm:$0xff] %vm80_vm0, %v312_v15  ;;  %v318_v18 = vadd.f32 %v317_v17, %v5930_v56  ;;  %v6187_v19 = vpop.f32.mrb[38].mxu0 }
 0x8c5   :  { %363 = vst.msk [vmem:[#allocation2 + $0x128] sm:$0xff] %vm80_vm0, %v318_v18 }
 0x92d   :  { %v880_v22 = vpop.permute.xlu0 %879 }
 0x92e   :  { %v882_v25 = vmul.f32 %v880_v22, %v877_v20  ;;  %v323_v20 = vpop.f32.mrb[39].mxu0 }
 0x92f   :  { %v324_v22 = vadd.f32 %v323_v20, %v5930_v56 }
 0x930   :  { %v6114_v26 = vadd.f32 %v883_v24, %v882_v25  ;;  %v238_v24 = vadd.f32 %v6120_v27, %v5926_v55 }
 0x931   :  { %365 = vst.msk [vmem:[#allocation2 + $0x138] sm:$0xff] %vm80_vm0, %v324_v22 }
 0x932   :  { %886 = vrot.lane.b32.xlu1 %v6114_v26, %s5719_s15  ;;  %890 = vst.msk [vmem:[#allocation3 + $0x78] sm:$0xff] %vm489_vm1, %v6114_v26 }
 0x9a4   :  { %v887_v61 = vpop.permute.xlu1 %886 }
 0x9a5   :  { %889 = vst.msk [vmem:[#allocation3 + $0x20] sm:$0xff] %vm80_vm0, %v887_v61  ;;  %4715 = vmatmul.mubr.msk.f32.vlgmr.msra.gmra.mrb[40].mxu0 %vm80_vm0, %v887_v61 }
 0x9a6   :  { %4916 = vmatpush1.bf16.msra.mxu0 %v5822_v23  ;;  %1159 = vmatprep.mubr.f32.mxu0 %v5718_v3 }
 0x9a7   :  { %4918 = vmatprep.subr.bf16.mxu0 %v5847_v32 }
 0x9aa   :  { %4920 = vmatpush1.bf16.msra.mxu0 %v5849_v33 }
 0x9ab   :  { %4922 = vmatprep.subr.bf16.mxu0 %v5860_v38 }
 0x9ae   :  { %4924 = vmatpush1.bf16.msra.mxu0 %v5876_v44 }
 0x9af   :  { %4926 = vmatprep.subr.bf16.mxu0 %v5879_v45 }
 0x9b2   :  { %4928 = vmatpush1.bf16.msra.mxu0 %v5891_v49 }
 0x9b3   :  { %4946 = vmatprep.subr.bf16.mxu0 %v5817_v21 }
 0xa78   :  { %v961_v25 = vpop.f32.mrb[40].mxu0 }
 0xa79   :  { %v966_v28 = vadd.f32 %v961_v25, %v238_v24  ;;  %v963_v29 = vpop.f32.mrb[41].mxu0  ;;  %v250_v25 = vadd.f32 %v6128_v35, %v5926_v55 }
 0xa7a   :  { %v973_v37 = vadd.f32 %v5938_v4, %v963_v29 }
 0xa7b   :  { %v4716_v31 = vmul.f32 -1.442695, %v966_v28 }
 0xa7d   :  { %5505 = vpow2.f32 %v4716_v31 }
 0xa87   :  { %v5506_v34 = vpop.eup %5505 }
 0xa88   :  { %v970_v36 = vadd.f32 1.0, %v5506_v34 }
 0xa8a   :  { %5507 = vrcp.f32 %v970_v36 }
 0xa94   :  { %v5508_v40 = vpop.eup %5507 }
 0xa95   :  { %v974_v41 = vmul.f32 %v5508_v40, %v973_v37  ;;  %v977_v48 = vsub.f32 1.0, %v5508_v40  ;;  %v983_v50 = vmul.f32 %v5508_v40, %v6114_v26  ;;  %v244_v26 = vadd.f32 %v6124_v30, %v5926_v55 }
 0xa97   :  { %v975_v46 = vadd.f32 %v974_v41, %v892_v43 }
 0xa99   :  { %5509 = vtanh.f32 %v975_v46  ;;  %v1092_v46 = vld [vmem:[#allocation2 + $0x78] sm:$0xff] }
 0xaa3   :  { %v5510_v56 = vpop.eup %5509 }
 0xaa4   :  { %979 = vrot.lane.b32.xlu0 %v5510_v56, %s5719_s15 }
 0xb16   :  { %v980_v27 = vpop.permute.xlu0 %979 }
 0xb17   :  { %v982_v57 = vmul.f32 %v980_v27, %v977_v48 }
 0xb19   :  { %v984_v58 = vadd.f32 %v983_v50, %v982_v57 }
 0xb1b   :  { %986 = vrot.lane.b32.xlu1 %v984_v58, %s5719_s15  ;;  %990 = vst.msk [vmem:[#allocation3 + $0x70] sm:$0xff] %vm489_vm1, %v984_v58 }
 0xb8d   :  { %v987_v60 = vpop.permute.xlu1 %986 }
 0xb8e   :  { %989 = vst.msk [vmem:[#allocation3 + $0x28] sm:$0xff] %vm80_vm0, %v987_v60  ;;  %4717 = vmatmul.mubr.msk.f32.vlgmr.msra.gmra.mrb[10].mxu1 %vm80_vm0, %v987_v60 }
 0xb8f   :  { %4932 = vmatpush1.bf16.msra.mxu1 %v5822_v23  ;;  %1259 = vmatprep.mubr.f32.mxu1 %v5718_v3 }
 0xb90   :  { %4934 = vmatprep.subr.bf16.mxu1 %v5847_v32 }
 0xb93   :  { %4936 = vmatpush1.bf16.msra.mxu1 %v5849_v33 }
 0xb94   :  { %4938 = vmatprep.subr.bf16.mxu1 %v5860_v38 }
 0xb97   :  { %4940 = vmatpush1.bf16.msra.mxu1 %v5876_v44 }
 0xb98   :  { %4942 = vmatprep.subr.bf16.mxu1 %v5879_v45 }
 0xb9b   :  { %4944 = vmatpush1.bf16.msra.mxu1 %v5891_v49 }
 0xb9c   :  { %4962 = vmatprep.subr.bf16.mxu1 %v5817_v21 }
 0xc61   :  { %v1061_v61 = vpop.f32.mrb[10].mxu1 }
 0xc62   :  { %v1066_v62 = vadd.f32 %v1061_v61, %v244_v26  ;;  %v1063_v0 = vpop.f32.mrb[11].mxu1  ;;  %v256_v26 = vadd.f32 %v6132_v39, %v5926_v55 }
 0xc63   :  { %v1073_v8 = vadd.f32 %v5938_v4, %v1063_v0 }
 0xc64   :  { %v4718_v1 = vmul.f32 -1.442695, %v1066_v62 }
 0xc66   :  { %5511 = vpow2.f32 %v4718_v1 }
 0xc70   :  { %v5512_v5 = vpop.eup %5511 }
 0xc71   :  { %v1070_v6 = vadd.f32 1.0, %v5512_v5 }
 0xc73   :  { %5513 = vrcp.f32 %v1070_v6 }
 0xc7d   :  { %v5514_v9 = vpop.eup %5513 }
 0xc7e   :  { %v1074_v11 = vmul.f32 %v5514_v9, %v1073_v8  ;;  %v1077_v17 = vsub.f32 1.0, %v5514_v9  ;;  %v1083_v18 = vmul.f32 %v5514_v9, %v984_v58 }
 0xc80   :  { %v1075_v14 = vadd.f32 %v1074_v11, %v992_v12  ;;  %v1192_v12 = vld [vmem:[#allocation2 + $0x88] sm:$0xff] }
 0xc82   :  { %5515 = vtanh.f32 %v1075_v14 }
 0xc8c   :  { %v5516_v15 = vpop.eup %5515 }
 0xc8d   :  { %1079 = vrot.lane.b32.xlu0 %v5516_v15, %s5719_s15 }
 0xcff   :  { %v1080_v30 = vpop.permute.xlu0 %1079 }
 0xd00   :  { %v1082_v20 = vmul.f32 %v1080_v30, %v1077_v17 }
 0xd02   :  { %v1084_v22 = vadd.f32 %v1083_v18, %v1082_v20 }
 0xd04   :  { %1086 = vrot.lane.b32.xlu1 %v1084_v22, %s5719_s15  ;;  %1090 = vst.msk [vmem:[#allocation3 + $0x68] sm:$0xff] %vm489_vm1, %v1084_v22 }
 0xd76   :  { %v1087_v24 = vpop.permute.xlu1 %1086 }
 0xd77   :  { %1089 = vst.msk [vmem:[#allocation3 + $0x30] sm:$0xff] %vm80_vm0, %v1087_v24  ;;  %4719 = vmatmul.mubr.msk.f32.vlgmr.msra.gmra.mrb[42].mxu0 %vm80_vm0, %v1087_v24  ;;  %v262_v24 = vadd.f32 %v6136_v42, %v5926_v55 }
 0xd78   :  { %4948 = vmatpush1.bf16.msra.mxu0 %v5822_v23  ;;  %1359 = vmatprep.mubr.f32.mxu0 %v5718_v3 }
 0xd79   :  { %4950 = vmatprep.subr.bf16.mxu0 %v5847_v32 }
 0xd7c   :  { %4952 = vmatpush1.bf16.msra.mxu0 %v5849_v33 }
 0xd7d   :  { %4954 = vmatprep.subr.bf16.mxu0 %v5860_v38 }
 0xd80   :  { %4956 = vmatpush1.bf16.msra.mxu0 %v5876_v44 }
 0xd81   :  { %4958 = vmatprep.subr.bf16.mxu0 %v5879_v45 }
 0xd84   :  { %4960 = vmatpush1.bf16.msra.mxu0 %v5891_v49 }
 0xd85   :  { %4978 = vmatprep.subr.bf16.mxu0 %v5817_v21 }
 0xe4a   :  { %v1161_v28 = vpop.f32.mrb[42].mxu0 }
 0xe4b   :  { %v1166_v29 = vadd.f32 %v1161_v28, %v250_v25  ;;  %v1163_v31 = vpop.f32.mrb[43].mxu0 }
 0xe4c   :  { %v1173_v40 = vadd.f32 %v5938_v4, %v1163_v31 }
 0xe4d   :  { %v4720_v34 = vmul.f32 -1.442695, %v1166_v29 }
 0xe4f   :  { %5517 = vpow2.f32 %v4720_v34 }
 0xe59   :  { %v5518_v36 = vpop.eup %5517 }
 0xe5a   :  { %v1170_v37 = vadd.f32 1.0, %v5518_v36 }
 0xe5c   :  { %5519 = vrcp.f32 %v1170_v37 }
 0xe66   :  { %v5520_v41 = vpop.eup %5519 }
 0xe67   :  { %v1174_v43 = vmul.f32 %v5520_v41, %v1173_v40  ;;  %v1177_v27 = vsub.f32 1.0, %v5520_v41  ;;  %v1183_v50 = vmul.f32 %v5520_v41, %v1084_v22 }
 0xe69   :  { %v1175_v56 = vadd.f32 %v1174_v43, %v1092_v46  ;;  %v1292_v43 = vld [vmem:[#allocation2 + $0x98] sm:$0xff] }
 0xe6b   :  { %5521 = vtanh.f32 %v1175_v56 }
 0xe75   :  { %v5522_v48 = vpop.eup %5521 }
 0xe76   :  { %1179 = vrot.lane.b32.xlu0 %v5522_v48, %s5719_s15 }
 0xee8   :  { %v1180_v35 = vpop.permute.xlu0 %1179 }
 0xee9   :  { %v1182_v57 = vmul.f32 %v1180_v35, %v1177_v27 }
 0xeeb   :  { %v1184_v58 = vadd.f32 %v1183_v50, %v1182_v57 }
 0xeed   :  { %1186 = vrot.lane.b32.xlu1 %v1184_v58, %s5719_s15  ;;  %1190 = vst.msk [vmem:[#allocation3 + $0x60] sm:$0xff] %vm489_vm1, %v1184_v58 }
 0xf5f   :  { %v1187_v60 = vpop.permute.xlu1 %1186 }
 0xf60   :  { %1189 = vst.msk [vmem:[#allocation3 + $0x38] sm:$0xff] %vm80_vm0, %v1187_v60  ;;  %4721 = vmatmul.mubr.msk.f32.vlgmr.msra.gmra.mrb[12].mxu1 %vm80_vm0, %v1187_v60 }
 0xf61   :  { %4964 = vmatpush1.bf16.msra.mxu1 %v5822_v23  ;;  %1459 = vmatprep.mubr.f32.mxu1 %v5718_v3 }
 0xf62   :  { %4966 = vmatprep.subr.bf16.mxu1 %v5847_v32 }
 0xf65   :  { %4968 = vmatpush1.bf16.msra.mxu1 %v5849_v33 }
 0xf66   :  { %4970 = vmatprep.subr.bf16.mxu1 %v5860_v38 }
 0xf69   :  { %4972 = vmatpush1.bf16.msra.mxu1 %v5876_v44 }
 0xf6a   :  { %4974 = vmatprep.subr.bf16.mxu1 %v5879_v45 }
 0xf6d   :  { %4976 = vmatpush1.bf16.msra.mxu1 %v5891_v49 }
 0xf6e   :  { %4994 = vmatprep.subr.bf16.mxu1 %v5817_v21 }
0x1033   :  { %v1261_v61 = vpop.f32.mrb[12].mxu1 }
0x1034   :  { %v1266_v62 = vadd.f32 %v1261_v61, %v256_v26  ;;  %v1263_v0 = vpop.f32.mrb[13].mxu1 }
0x1035   :  { %v1273_v8 = vadd.f32 %v5938_v4, %v1263_v0 }
0x1036   :  { %v4722_v1 = vmul.f32 -1.442695, %v1266_v62 }
0x1038   :  { %5523 = vpow2.f32 %v4722_v1 }
0x1042   :  { %v5524_v5 = vpop.eup %5523 }
0x1043   :  { %v1270_v6 = vadd.f32 1.0, %v5524_v5 }
0x1045   :  { %5525 = vrcp.f32 %v1270_v6 }
0x104f   :  { %v5526_v9 = vpop.eup %5525 }
0x1050   :  { %v1274_v11 = vmul.f32 %v5526_v9, %v1273_v8  ;;  %v1277_v17 = vsub.f32 1.0, %v5526_v9  ;;  %v1283_v30 = vmul.f32 %v5526_v9, %v1184_v58  ;;  %v268_v58 = vadd.f32 %v6140_v47, %v5926_v55  ;;  %v1392_v9 = vld [vmem:[#allocation2 + $0xa8] sm:$0xff] }
0x1052   :  { %v1275_v14 = vadd.f32 %v1274_v11, %v1192_v12 }
0x1054   :  { %5527 = vtanh.f32 %v1275_v14 }
0x105e   :  { %v5528_v15 = vpop.eup %5527 }
0x105f   :  { %1279 = vrot.lane.b32.xlu0 %v5528_v15, %s5719_s15 }
0x10d1   :  { %v1280_v39 = vpop.permute.xlu0 %1279 }
0x10d2   :  { %v1282_v18 = vmul.f32 %v1280_v39, %v1277_v17 }
0x10d4   :  { %v1284_v20 = vadd.f32 %v1283_v30, %v1282_v18 }
0x10d6   :  { %1286 = vrot.lane.b32.xlu1 %v1284_v20, %s5719_s15  ;;  %1290 = vst.msk [vmem:[#allocation3 + $0x58] sm:$0xff] %vm489_vm1, %v1284_v20 }
0x1148   :  { %v1287_v22 = vpop.permute.xlu1 %1286 }
0x1149   :  { %1289 = vst.msk [vmem:[#allocation3 + $0x40] sm:$0xff] %vm80_vm0, %v1287_v22  ;;  %4723 = vmatmul.mubr.msk.f32.vlgmr.msra.gmra.mrb[44].mxu0 %vm80_vm0, %v1287_v22 }
0x114a   :  { %4980 = vmatpush1.bf16.msra.mxu0 %v5822_v23  ;;  %1559 = vmatprep.mubr.f32.mxu0 %v5718_v3 }
0x114b   :  { %4982 = vmatprep.subr.bf16.mxu0 %v5847_v32 }
0x114e   :  { %4984 = vmatpush1.bf16.msra.mxu0 %v5849_v33 }
0x114f   :  { %4986 = vmatprep.subr.bf16.mxu0 %v5860_v38 }
0x1152   :  { %4988 = vmatpush1.bf16.msra.mxu0 %v5876_v44 }
0x1153   :  { %4990 = vmatprep.subr.bf16.mxu0 %v5879_v45 }
0x1156   :  { %4992 = vmatpush1.bf16.msra.mxu0 %v5891_v49 }
0x1157   :  { %5010 = vmatprep.subr.bf16.mxu0 %v5817_v21 }
0x121c   :  { %v1361_v25 = vpop.f32.mrb[44].mxu0 }
0x121d   :  { %v1366_v28 = vadd.f32 %v1361_v25, %v262_v24  ;;  %v1363_v29 = vpop.f32.mrb[45].mxu0 }
0x121e   :  { %v1373_v37 = vadd.f32 %v5938_v4, %v1363_v29  ;;  %v6299_v29 = vld [vmem:[%s7091_s4] ss:$0 sm:$0xff] }
0x121f   :  { %v4724_v31 = vmul.f32 -1.442695, %v1366_v28 }
0x1221   :  { %5529 = vpow2.f32 %v4724_v31 }
0x122b   :  { %v5530_v34 = vpop.eup %5529 }
0x122c   :  { %v1370_v36 = vadd.f32 1.0, %v5530_v34 }
0x122e   :  { %5531 = vrcp.f32 %v1370_v36 }
0x1238   :  { %v5532_v40 = vpop.eup %5531 }
0x1239   :  { %v1374_v41 = vmul.f32 %v5532_v40, %v1373_v37  ;;  %v1377_v48 = vsub.f32 1.0, %v5532_v40  ;;  %v1383_v27 = vmul.f32 %v5532_v40, %v1284_v20  ;;  %v1492_v37 = vld [vmem:[#allocation2 + $0xb8] sm:$0xff] }
0x123b   :  { %v1375_v46 = vadd.f32 %v1374_v41, %v1292_v43 }
0x123d   :  { %5533 = vtanh.f32 %v1375_v46 }
0x1247   :  { %v5534_v56 = vpop.eup %5533 }
0x1248   :  { %1379 = vrot.lane.b32.xlu0 %v5534_v56, %s5719_s15 }
0x12ba   :  { %v1380_v42 = vpop.permute.xlu0 %1379 }
0x12bb   :  { %v1382_v35 = vmul.f32 %v1380_v42, %v1377_v48 }
0x12bd   :  { %v1384_v50 = vadd.f32 %v1383_v27, %v1382_v35  ;;  %v280_v27 = vadd.f32 %v6148_v59, %v5926_v55 }
0x12bf   :  { %1386 = vrot.lane.b32.xlu1 %v1384_v50, %s5719_s15  ;;  %1390 = vst.msk [vmem:[#allocation3 + $0x50] sm:$0xff] %vm489_vm1, %v1384_v50 }
0x1331   :  { %v1387_v57 = vpop.permute.xlu1 %1386 }
0x1332   :  { %1389 = vst.msk [vmem:[#allocation3 + $0x48] sm:$0xff] %vm80_vm0, %v1387_v57  ;;  %4725 = vmatmul.mubr.msk.f32.vlgmr.msra.gmra.mrb[14].mxu1 %vm80_vm0, %v1387_v57 }
0x1333   :  { %4996 = vmatpush1.bf16.msra.mxu1 %v5822_v23  ;;  %1659 = vmatprep.mubr.f32.mxu1 %v5718_v3 }
0x1334   :  { %4998 = vmatprep.subr.bf16.mxu1 %v5847_v32 }
0x1337   :  { %5000 = vmatpush1.bf16.msra.mxu1 %v5849_v33 }
0x1338   :  { %5002 = vmatprep.subr.bf16.mxu1 %v5860_v38 }
0x133b   :  { %5004 = vmatpush1.bf16.msra.mxu1 %v5876_v44 }
0x133c   :  { %5006 = vmatprep.subr.bf16.mxu1 %v5879_v45 }
0x133f   :  { %5008 = vmatpush1.bf16.msra.mxu1 %v5891_v49 }
0x1340   :  { %5026 = vmatprep.subr.bf16.mxu1 %v5817_v21 }
0x1405   :  { %v1461_v60 = vpop.f32.mrb[14].mxu1 }
0x1406   :  { %v1466_v26 = vadd.f32 %v1461_v60, %v268_v58  ;;  %v1463_v61 = vpop.f32.mrb[15].mxu1 }
0x1407   :  { %v1473_v5 = vadd.f32 %v5938_v4, %v1463_v61  ;;  %v274_v4 = vadd.f32 %v6144_v53, %v5926_v55 }
0x1408   :  { %v4726_v62 = vmul.f32 -1.442695, %v1466_v26 }
0x140a   :  { %5535 = vpow2.f32 %v4726_v62 }
0x1414   :  { %v5536_v0 = vpop.eup %5535 }
0x1415   :  { %v1470_v1 = vadd.f32 1.0, %v5536_v0 }
0x1417   :  { %5537 = vrcp.f32 %v1470_v1  ;;  %v1592_v1 = vld [vmem:[#allocation2 + $0xc8] sm:$0xff] }
0x1421   :  { %v5538_v6 = vpop.eup %5537 }
0x1422   :  { %v1474_v8 = vmul.f32 %v5538_v6, %v1473_v5  ;;  %v1477_v14 = vsub.f32 1.0, %v5538_v6  ;;  %v1483_v15 = vmul.f32 %v5538_v6, %v1384_v50 }
0x1424   :  { %v1475_v11 = vadd.f32 %v1474_v8, %v1392_v9 }
0x1426   :  { %5539 = vtanh.f32 %v1475_v11 }
0x1430   :  { %v5540_v12 = vpop.eup %5539 }
0x1431   :  { %1479 = vrot.lane.b32.xlu0 %v5540_v12, %s5719_s15 }
0x14a3   :  { %v1480_v47 = vpop.permute.xlu0 %1479 }
0x14a4   :  { %v1482_v17 = vmul.f32 %v1480_v47, %v1477_v14  ;;  %v286_v47 = vadd.f32 %v6154_v63, %v5926_v55 }
0x14a6   :  { %v1484_v39 = vadd.f32 %v1483_v15, %v1482_v17 }
0x14a8   :  { %1490 = vst.msk [vmem:[#allocation3 + $0x48] sm:$0xff] %vm489_vm1, %v1484_v39  ;;  %1486 = vrot.lane.b32.xlu1 %v1484_v39, %s5719_s15 }
0x151a   :  { %v1487_v30 = vpop.permute.xlu1 %1486 }
0x151b   :  { %1489 = vst.msk [vmem:[#allocation3 + $0x50] sm:$0xff] %vm80_vm0, %v1487_v30  ;;  %4727 = vmatmul.mubr.msk.f32.vlgmr.msra.gmra.mrb[46].mxu0 %vm80_vm0, %v1487_v30 }
0x151c   :  { %5012 = vmatpush1.bf16.msra.mxu0 %v5822_v23  ;;  %1759 = vmatprep.mubr.f32.mxu0 %v5718_v3 }
0x151d   :  { %5014 = vmatprep.subr.bf16.mxu0 %v5847_v32 }
0x1520   :  { %5016 = vmatpush1.bf16.msra.mxu0 %v5849_v33 }
0x1521   :  { %5018 = vmatprep.subr.bf16.mxu0 %v5860_v38 }
0x1524   :  { %5020 = vmatpush1.bf16.msra.mxu0 %v5876_v44 }
0x1525   :  { %5022 = vmatprep.subr.bf16.mxu0 %v5879_v45 }
0x1528   :  { %5024 = vmatpush1.bf16.msra.mxu0 %v5891_v49 }
0x1529   :  { %5042 = vmatprep.subr.bf16.mxu0 %v5817_v21 }
0x15ee   :  { %v1561_v18 = vpop.f32.mrb[46].mxu0 }
0x15ef   :  { %v1566_v20 = vadd.f32 %v1561_v18, %v274_v4  ;;  %v1563_v22 = vpop.f32.mrb[47].mxu0 }
0x15f0   :  { %v1573_v31 = vadd.f32 %v6299_v29, %v1563_v22 }
0x15f1   :  { %v4728_v24 = vmul.f32 -1.442695, %v1566_v20 }
0x15f3   :  { %5541 = vpow2.f32 %v4728_v24 }
0x15fd   :  { %v5542_v25 = vpop.eup %5541 }
0x15fe   :  { %v1570_v28 = vadd.f32 1.0, %v5542_v25  ;;  %v1692_v25 = vld [vmem:[#allocation2 + $0xd8] sm:$0xff] }
0x1600   :  { %5543 = vrcp.f32 %v1570_v28 }
0x160a   :  { %v5544_v34 = vpop.eup %5543 }
0x160b   :  { %v1574_v36 = vmul.f32 %v5544_v34, %v1573_v31  ;;  %v1577_v41 = vsub.f32 1.0, %v5544_v34  ;;  %v1583_v46 = vmul.f32 %v5544_v34, %v1484_v39 }
0x160d   :  { %v1575_v40 = vadd.f32 %v1574_v36, %v1492_v37 }
0x160f   :  { %5545 = vtanh.f32 %v1575_v40 }
0x1619   :  { %v5546_v53 = vpop.eup %5545 }
0x161a   :  { %1579 = vrot.lane.b32.xlu0 %v5546_v53, %s5719_s15 }
0x168c   :  { %v1580_v43 = vpop.permute.xlu0 %1579 }
0x168d   :  { %v1582_v56 = vmul.f32 %v1580_v43, %v1577_v41  ;;  %v292_v41 = vadd.f32 %v6161_v2, %v5926_v55 }
0x168f   :  { %v1584_v48 = vadd.f32 %v1583_v46, %v1582_v56 }
0x1691   :  { %1590 = vst.msk [vmem:[#allocation3 + $0x40] sm:$0xff] %vm489_vm1, %v1584_v48  ;;  %1586 = vrot.lane.b32.xlu1 %v1584_v48, %s5719_s15 }
0x1703   :  { %v1587_v42 = vpop.permute.xlu1 %1586 }
0x1704   :  { %1589 = vst.msk [vmem:[#allocation3 + $0x58] sm:$0xff] %vm80_vm0, %v1587_v42  ;;  %4729 = vmatmul.mubr.msk.f32.vlgmr.msra.gmra.mrb[16].mxu1 %vm80_vm0, %v1587_v42 }
0x1705   :  { %5028 = vmatpush1.bf16.msra.mxu1 %v5822_v23  ;;  %1859 = vmatprep.mubr.f32.mxu1 %v5718_v3 }
0x1706   :  { %5030 = vmatprep.subr.bf16.mxu1 %v5847_v32 }
0x1709   :  { %5032 = vmatpush1.bf16.msra.mxu1 %v5849_v33 }
0x170a   :  { %5034 = vmatprep.subr.bf16.mxu1 %v5860_v38 }
0x170d   :  { %5036 = vmatpush1.bf16.msra.mxu1 %v5876_v44 }
0x170e   :  { %5038 = vmatprep.subr.bf16.mxu1 %v5879_v45 }
0x1711   :  { %5040 = vmatpush1.bf16.msra.mxu1 %v5891_v49 }
0x1712   :  { %5058 = vmatprep.subr.bf16.mxu1 %v5817_v21 }
0x17d7   :  { %v1661_v35 = vpop.f32.mrb[16].mxu1 }
0x17d8   :  { %v1666_v50 = vadd.f32 %v1661_v35, %v280_v27  ;;  %v1663_v57 = vpop.f32.mrb[17].mxu1 }
0x17d9   :  { %v1673_v61 = vadd.f32 %v6299_v29, %v1663_v57 }
0x17da   :  { %v4730_v58 = vmul.f32 -1.442695, %v1666_v50 }
0x17dc   :  { %5547 = vpow2.f32 %v4730_v58  ;;  %v1792_v58 = vld [vmem:[#allocation2 + $0xe8] sm:$0xff] }
0x17e6   :  { %v5548_v60 = vpop.eup %5547 }
0x17e7   :  { %v1670_v26 = vadd.f32 1.0, %v5548_v60 }
0x17e9   :  { %5549 = vrcp.f32 %v1670_v26 }
0x17f3   :  { %v5550_v62 = vpop.eup %5549 }
0x17f4   :  { %v1674_v0 = vmul.f32 %v5550_v62, %v1673_v61  ;;  %v1677_v8 = vsub.f32 1.0, %v5550_v62  ;;  %v1683_v9 = vmul.f32 %v5550_v62, %v1584_v48 }
0x17f6   :  { %v1675_v5 = vadd.f32 %v1674_v0, %v1592_v1 }
0x17f8   :  { %5551 = vtanh.f32 %v1675_v5 }
0x1802   :  { %v5552_v6 = vpop.eup %5551 }
0x1803   :  { %1679 = vrot.lane.b32.xlu0 %v5552_v6, %s5719_s15  ;;  %v298_v6 = vadd.f32 %v6167_v7, %v5926_v55 }
0x1875   :  { %v1680_v59 = vpop.permute.xlu0 %1679 }
0x1876   :  { %v1682_v11 = vmul.f32 %v1680_v59, %v1677_v8 }
0x1878   :  { %v1684_v12 = vadd.f32 %v1683_v9, %v1682_v11 }
0x187a   :  { %1690 = vst.msk [vmem:[#allocation3 + $0x38] sm:$0xff] %vm489_vm1, %v1684_v12  ;;  %1686 = vrot.lane.b32.xlu1 %v1684_v12, %s5719_s15 }
0x18ec   :  { %v1687_v14 = vpop.permute.xlu1 %1686 }
0x18ed   :  { %1689 = vst.msk [vmem:[#allocation3 + $0x60] sm:$0xff] %vm80_vm0, %v1687_v14  ;;  %4731 = vmatmul.mubr.msk.f32.vlgmr.msra.gmra.mrb[48].mxu0 %vm80_vm0, %v1687_v14 }
0x18ee   :  { %5044 = vmatpush1.bf16.msra.mxu0 %v5822_v23  ;;  %1959 = vmatprep.mubr.f32.mxu0 %v5718_v3 }
0x18ef   :  { %5046 = vmatprep.subr.bf16.mxu0 %v5847_v32 }
0x18f2   :  { %5048 = vmatpush1.bf16.msra.mxu0 %v5849_v33 }
0x18f3   :  { %5050 = vmatprep.subr.bf16.mxu0 %v5860_v38 }
0x18f6   :  { %5052 = vmatpush1.bf16.msra.mxu0 %v5876_v44 }
0x18f7   :  { %5054 = vmatprep.subr.bf16.mxu0 %v5879_v45 }
0x18fa   :  { %5056 = vmatpush1.bf16.msra.mxu0 %v5891_v49 }
0x18fb   :  { %5074 = vmatprep.subr.bf16.mxu0 %v5817_v21 }
0x19c0   :  { %v1761_v15 = vpop.f32.mrb[48].mxu0 }
0x19c1   :  { %v1766_v17 = vadd.f32 %v1761_v15, %v286_v47  ;;  %v1763_v39 = vpop.f32.mrb[49].mxu0 }
0x19c2   :  { %v1773_v20 = vadd.f32 %v6299_v29, %v1763_v39  ;;  %v1892_v39 = vld [vmem:[#allocation2 + $0xf8] sm:$0xff] }
0x19c3   :  { %v4732_v30 = vmul.f32 -1.442695, %v1766_v17 }
0x19c5   :  { %5553 = vpow2.f32 %v4732_v30 }
0x19cf   :  { %v5554_v4 = vpop.eup %5553 }
0x19d0   :  { %v1770_v18 = vadd.f32 1.0, %v5554_v4 }
0x19d2   :  { %5555 = vrcp.f32 %v1770_v18 }
0x19dc   :  { %v5556_v22 = vpop.eup %5555 }
0x19dd   :  { %v1774_v24 = vmul.f32 %v5556_v22, %v1773_v20  ;;  %v1777_v34 = vsub.f32 1.0, %v5556_v22  ;;  %v1783_v36 = vmul.f32 %v5556_v22, %v1684_v12 }
0x19df   :  { %v1775_v28 = vadd.f32 %v1774_v24, %v1692_v25  ;;  %v304_v25 = vadd.f32 %v6173_v10, %v5926_v55 }
0x19e1   :  { %5557 = vtanh.f32 %v1775_v28 }
0x19eb   :  { %v5558_v31 = vpop.eup %5557 }
0x19ec   :  { %1779 = vrot.lane.b32.xlu0 %v5558_v31, %s5719_s15 }
0x1a5e   :  { %v1780_v63 = vpop.permute.xlu0 %1779 }
0x1a5f   :  { %v1782_v37 = vmul.f32 %v1780_v63, %v1777_v34 }
0x1a61   :  { %v1784_v40 = vadd.f32 %v1783_v36, %v1782_v37 }
0x1a63   :  { %1790 = vst.msk [vmem:[#allocation3 + $0x30] sm:$0xff] %vm489_vm1, %v1784_v40  ;;  %1786 = vrot.lane.b32.xlu1 %v1784_v40, %s5719_s15 }
0x1ad5   :  { %v1787_v53 = vpop.permute.xlu1 %1786 }
0x1ad6   :  { %1789 = vst.msk [vmem:[#allocation3 + $0x68] sm:$0xff] %vm80_vm0, %v1787_v53  ;;  %4733 = vmatmul.mubr.msk.f32.vlgmr.msra.gmra.mrb[18].mxu1 %vm80_vm0, %v1787_v53 }
0x1ad7   :  { %5060 = vmatpush1.bf16.msra.mxu1 %v5822_v23  ;;  %2059 = vmatprep.mubr.f32.mxu1 %v5718_v3 }
0x1ad8   :  { %5062 = vmatprep.subr.bf16.mxu1 %v5847_v32 }
0x1adb   :  { %5064 = vmatpush1.bf16.msra.mxu1 %v5849_v33 }
0x1adc   :  { %5066 = vmatprep.subr.bf16.mxu1 %v5860_v38 }
0x1adf   :  { %5068 = vmatpush1.bf16.msra.mxu1 %v5876_v44 }
0x1ae0   :  { %5070 = vmatprep.subr.bf16.mxu1 %v5879_v45 }
0x1ae3   :  { %5072 = vmatpush1.bf16.msra.mxu1 %v5891_v49 }
0x1ae4   :  { %5090 = vmatprep.subr.bf16.mxu1 %v5817_v21 }
0x1ba9   :  { %v1861_v43 = vpop.f32.mrb[18].mxu1 }
0x1baa   :  { %v1866_v46 = vadd.f32 %v1861_v43, %v292_v41  ;;  %v1863_v56 = vpop.f32.mrb[19].mxu1  ;;  %v1992_v43 = vld [vmem:[#allocation2 + $0x108] sm:$0xff] }
0x1bab   :  { %v1873_v35 = vadd.f32 %v6299_v29, %v1863_v56 }
0x1bac   :  { %v4734_v48 = vmul.f32 -1.442695, %v1866_v46 }
0x1bae   :  { %5559 = vpow2.f32 %v4734_v48 }
0x1bb8   :  { %v5560_v42 = vpop.eup %5559 }
0x1bb9   :  { %v1870_v27 = vadd.f32 1.0, %v5560_v42 }
0x1bbb   :  { %5561 = vrcp.f32 %v1870_v27 }
0x1bc5   :  { %v5562_v50 = vpop.eup %5561 }
0x1bc6   :  { %v1874_v57 = vmul.f32 %v5562_v50, %v1873_v35  ;;  %v1877_v61 = vsub.f32 1.0, %v5562_v50  ;;  %v1883_v62 = vmul.f32 %v5562_v50, %v1784_v40 }
0x1bc8   :  { %v1875_v60 = vadd.f32 %v1874_v57, %v1792_v58  ;;  %v310_v57 = vadd.f32 %v6179_v13, %v5926_v55 }
0x1bca   :  { %5563 = vtanh.f32 %v1875_v60 }
0x1bd4   :  { %v5564_v26 = vpop.eup %5563 }
0x1bd5   :  { %1879 = vrot.lane.b32.xlu0 %v5564_v26, %s5719_s15 }
0x1c47   :  { %v1880_v2 = vpop.permute.xlu0 %1879 }
0x1c48   :  { %v1882_v0 = vmul.f32 %v1880_v2, %v1877_v61 }
0x1c4a   :  { %v1884_v1 = vadd.f32 %v1883_v62, %v1882_v0 }
0x1c4c   :  { %1890 = vst.msk [vmem:[#allocation3 + $0x28] sm:$0xff] %vm489_vm1, %v1884_v1  ;;  %1886 = vrot.lane.b32.xlu1 %v1884_v1, %s5719_s15 }
0x1cbe   :  { %v1887_v5 = vpop.permute.xlu1 %1886 }
0x1cbf   :  { %1889 = vst.msk [vmem:[#allocation3 + $0x70] sm:$0xff] %vm80_vm0, %v1887_v5  ;;  %4735 = vmatmul.mubr.msk.f32.vlgmr.msra.gmra.mrb[50].mxu0 %vm80_vm0, %v1887_v5 }
0x1cc0   :  { %5076 = vmatpush1.bf16.msra.mxu0 %v5822_v23  ;;  %2159 = vmatprep.mubr.f32.mxu0 %v5718_v3 }
0x1cc1   :  { %5078 = vmatprep.subr.bf16.mxu0 %v5847_v32 }
0x1cc4   :  { %5080 = vmatpush1.bf16.msra.mxu0 %v5849_v33 }
0x1cc5   :  { %5082 = vmatprep.subr.bf16.mxu0 %v5860_v38 }
0x1cc8   :  { %5084 = vmatpush1.bf16.msra.mxu0 %v5876_v44 }
0x1cc9   :  { %5086 = vmatprep.subr.bf16.mxu0 %v5879_v45 }
0x1ccc   :  { %5088 = vmatpush1.bf16.msra.mxu0 %v5891_v49 }
0x1ccd   :  { %5106 = vmatprep.subr.bf16.mxu0 %v5817_v21 }
0x1d92   :  { %v1961_v8 = vpop.f32.mrb[50].mxu0 }
0x1d93   :  { %v1966_v59 = vadd.f32 %v1961_v8, %v298_v6  ;;  %v1963_v9 = vpop.f32.mrb[51].mxu0  ;;  %v316_v8 = vadd.f32 %v6183_v16, %v5926_v55 }
0x1d94   :  { %v1973_v47 = vadd.f32 %v6299_v29, %v1963_v9 }
0x1d95   :  { %v4736_v11 = vmul.f32 -1.442695, %v1966_v59 }
0x1d97   :  { %5565 = vpow2.f32 %v4736_v11 }
0x1da1   :  { %v5566_v12 = vpop.eup %5565 }
0x1da2   :  { %v1970_v14 = vadd.f32 1.0, %v5566_v12 }
0x1da4   :  { %5567 = vrcp.f32 %v1970_v14 }
0x1dae   :  { %v5568_v15 = vpop.eup %5567 }
0x1daf   :  { %v1974_v17 = vmul.f32 %v5568_v15, %v1973_v47  ;;  %v1977_v21 = vsub.f32 1.0, %v5568_v15  ;;  %v1983_v18 = vmul.f32 %v5568_v15, %v1884_v1 }
0x1db1   :  { %v1975_v30 = vadd.f32 %v1974_v17, %v1892_v39 }
0x1db3   :  { %5569 = vtanh.f32 %v1975_v30  ;;  %v2192_v30 = vld [vmem:[#allocation2 + $0x128] sm:$0xff] }
0x1dbd   :  { %v5570_v4 = vpop.eup %5569 }
0x1dbe   :  { %1979 = vrot.lane.b32.xlu0 %v5570_v4, %s5719_s15 }
0x1e30   :  { %v1980_v7 = vpop.permute.xlu0 %1979 }
0x1e31   :  { %v1982_v20 = vmul.f32 %v1980_v7, %v1977_v21 }
0x1e33   :  { %v1984_v22 = vadd.f32 %v1983_v18, %v1982_v20 }
0x1e35   :  { %1990 = vst.msk [vmem:[#allocation3 + $0x20] sm:$0xff] %vm489_vm1, %v1984_v22  ;;  %1986 = vrot.lane.b32.xlu1 %v1984_v22, %s5719_s15 }
0x1ea7   :  { %v1987_v24 = vpop.permute.xlu1 %1986 }
0x1ea8   :  { %1989 = vst.msk [vmem:[#allocation3 + $0x78] sm:$0xff] %vm80_vm0, %v1987_v24  ;;  %4737 = vmatmul.mubr.msk.f32.vlgmr.msra.gmra.mrb[20].mxu1 %vm80_vm0, %v1987_v24 }
0x1ea9   :  { %5092 = vmatpush1.bf16.msra.mxu1 %v5822_v23  ;;  %2259 = vmatprep.mubr.f32.mxu1 %v5718_v3 }
0x1eaa   :  { %5094 = vmatprep.subr.bf16.mxu1 %v5847_v32 }
0x1ead   :  { %5096 = vmatpush1.bf16.msra.mxu1 %v5849_v33 }
0x1eae   :  { %5098 = vmatprep.subr.bf16.mxu1 %v5860_v38 }
0x1eb1   :  { %5100 = vmatpush1.bf16.msra.mxu1 %v5876_v44 }
0x1eb2   :  { %5102 = vmatprep.subr.bf16.mxu1 %v5879_v45 }
0x1eb5   :  { %5104 = vmatpush1.bf16.msra.mxu1 %v5891_v49 }
0x1f7b   :  { %v2061_v28 = vpop.f32.mrb[20].mxu1 }
0x1f7c   :  { %v2066_v31 = vadd.f32 %v2061_v28, %v304_v25  ;;  %v2063_v34 = vpop.f32.mrb[21].mxu1  ;;  %v2412_v25 = vld [vmem:[%s7092_s5 + $0x8] sm:$0xff]  ;;  %v2414_v28 = vld [vmem:[%s7092_s5 + $0x18] sm:$0xff] }
0x1f7d   :  { %v2073_v40 = vadd.f32 %v6299_v29, %v2063_v34  ;;  %v5121_v34 = vpack.c.bf16 %v2414_v28, %v2412_v25  ;;  %v2436_v28 = vld [vmem:[%s7092_s5 + $0xc8] sm:$0xff] }
0x1f7e   :  { %v4738_v63 = vmul.f32 -1.442695, %v2066_v31  ;;  %v2411_v31 = vld [vmem:[%s7092_s5] sm:$0xff] }
0x1f7f   :  { %5122 = vmatprep.subr.bf16.mxu1 %v5121_v34 }
0x1f80   :  { %5571 = vpow2.f32 %v4738_v63  ;;  %v2413_v63 = vld [vmem:[%s7092_s5 + $0x10] sm:$0xff] }
0x1f8a   :  { %v5572_v36 = vpop.eup %5571 }
0x1f8b   :  { %v2070_v37 = vadd.f32 1.0, %v5572_v36  ;;  %v2416_v36 = vld [vmem:[%s7092_s5 + $0x28] sm:$0xff] }
0x1f8d   :  { %5573 = vrcp.f32 %v2070_v37  ;;  %v2418_v37 = vld [vmem:[%s7092_s5 + $0x38] sm:$0xff] }
0x1f97   :  { %v5574_v53 = vpop.eup %5573 }
0x1f98   :  { %v2074_v41 = vmul.f32 %v5574_v53, %v2073_v40  ;;  %v2077_v48 = vsub.f32 1.0, %v5574_v53  ;;  %v2083_v42 = vmul.f32 %v5574_v53, %v1984_v22  ;;  %v5123_v40 = vpack.c.bf16 %v2413_v63, %v2411_v31  ;;  %v2438_v31 = vld [vmem:[%s7092_s5 + $0xd8] sm:$0xff]  ;;  %v2435_v63 = vld [vmem:[%s7092_s5 + $0xc0] sm:$0xff] }
0x1f99   :  { %v5125_v53 = vpack.c.bf16 %v2418_v37, %v2416_v36  ;;  %v5145_v34 = vpack.c.bf16 %v2438_v31, %v2436_v28  ;;  %v2437_v36 = vld [vmem:[%s7092_s5 + $0xd0] sm:$0xff]  ;;  %v2689_v37 = vld [vmem:[%s7093_s7 + $0x48] sm:$0xff] }
0x1f9a   :  { %v2075_v46 = vadd.f32 %v2074_v41, %v1992_v43  ;;  %v2415_v41 = vld [vmem:[%s7092_s5 + $0x20] sm:$0xff]  ;;  %v2417_v43 = vld [vmem:[%s7092_s5 + $0x30] sm:$0xff] }
0x1f9c   :  { %5575 = vtanh.f32 %v2075_v46  ;;  %v2420_v46 = vld [vmem:[%s7092_s5 + $0x48] sm:$0xff] }
0x1fa6   :  { %v5576_v56 = vpop.eup %5575 }
0x1fa7   :  { %2079 = vrot.lane.b32.xlu0 %v5576_v56, %s5719_s15  ;;  %v2422_v56 = vld [vmem:[%s7092_s5 + $0x58] sm:$0xff] }
0x2019   :  { %v2080_v10 = vpop.permute.xlu0 %2079 }
0x201a   :  { %v2082_v27 = vmul.f32 %v2080_v10, %v2077_v48  ;;  %v5127_v48 = vpack.c.bf16 %v2417_v43, %v2415_v41  ;;  %v5129_v10 = vpack.c.bf16 %v2422_v56, %v2420_v46  ;;  %v2442_v41 = vld [vmem:[%s7092_s5 + $0xf8] sm:$0xff]  ;;  %v2439_v43 = vld [vmem:[%s7092_s5 + $0xe0] sm:$0xff]  ;;  %v2441_v56 = vld [vmem:[%s7092_s5 + $0xf0] sm:$0xff] }
0x201c   :  { %v2084_v35 = vadd.f32 %v2083_v42, %v2082_v27  ;;  %v2419_v42 = vld [vmem:[%s7092_s5 + $0x40] sm:$0xff]  ;;  %v2421_v27 = vld [vmem:[%s7092_s5 + $0x50] sm:$0xff] }
0x201e   :  { %2090 = vst.msk [vmem:[#allocation3 + $0x18] sm:$0xff] %vm489_vm1, %v2084_v35  ;;  %2086 = vrot.lane.b32.xlu1 %v2084_v35, %s5719_s15 }
0x2090   :  { %v2087_v50 = vpop.permute.xlu1 %2086 }
0x2091   :  { %2089 = vst.msk [vmem:[#allocation3 + $0x80] sm:$0xff] %vm80_vm0, %v2087_v50  ;;  %4739 = vmatmul.mubr.msk.f32.vlgmr.msra.gmra.mrb[52].mxu0 %vm80_vm0, %v2087_v50  ;;  %v2426_v50 = vld [vmem:[%s7092_s5 + $0x78] sm:$0xff] }
0x2092   :  { %5108 = vmatpush1.bf16.msra.mxu0 %v5822_v23  ;;  %2359 = vmatprep.mubr.f32.mxu0 %v5718_v3 }
0x2093   :  { %5110 = vmatprep.subr.bf16.mxu0 %v5847_v32 }
0x2096   :  { %5112 = vmatpush1.bf16.msra.mxu0 %v5849_v33 }
0x2097   :  { %5114 = vmatprep.subr.bf16.mxu0 %v5860_v38 }
0x209a   :  { %5116 = vmatpush1.bf16.msra.mxu0 %v5876_v44  ;;  %v2092_v44 = vld [vmem:[#allocation2 + $0x118] sm:$0xff] }
0x209b   :  { %5118 = vmatprep.subr.bf16.mxu0 %v5879_v45 }
0x209e   :  { %5120 = vmatpush1.bf16.msra.mxu0 %v5891_v49 }
0x2164   :  { %v2161_v58 = vpop.f32.mrb[52].mxu0 }
0x2165   :  { %v2166_v60 = vadd.f32 %v2161_v58, %v310_v57  ;;  %v2163_v23 = vpop.f32.mrb[53].mxu0  ;;  %v5131_v57 = vpack.c.bf16 %v2421_v27, %v2419_v42  ;;  %v5151_v42 = vpack.c.bf16 %v2441_v56, %v2439_v43 }
0x2166   :  { %v2173_v33 = vadd.f32 %v6299_v29, %v2163_v23  ;;  %v2425_v23 = vld [vmem:[%s7092_s5 + $0x70] sm:$0xff] }
0x2167   :  { %v4740_v26 = vmul.f32 -1.442695, %v2166_v60  ;;  %v2423_v60 = vld [vmem:[%s7092_s5 + $0x60] sm:$0xff] }
0x2169   :  { %5577 = vpow2.f32 %v4740_v26  ;;  %v2428_v26 = vld [vmem:[%s7092_s5 + $0x88] sm:$0xff] }
0x2173   :  { %v5578_v61 = vpop.eup %5577 }
0x2174   :  { %v2170_v32 = vadd.f32 1.0, %v5578_v61  ;;  %v2430_v61 = vld [vmem:[%s7092_s5 + $0x98] sm:$0xff] }
0x2176   :  { %5579 = vrcp.f32 %v2170_v32  ;;  %v5135_v32 = vpack.c.bf16 %v2425_v23, %v2423_v60  ;;  %v2692_v23 = vld [vmem:[%s7093_s7 + $0x60] sm:$0xff] }
0x2180   :  { %v5580_v38 = vpop.eup %5579 }
0x2181   :  { %v2174_v2 = vmul.f32 %v5580_v38, %v2173_v33  ;;  %v2177_v49 = vsub.f32 1.0, %v5580_v38  ;;  %v2183_v0 = vmul.f32 %v5580_v38, %v2084_v35  ;;  %v2424_v35 = vld [vmem:[%s7092_s5 + $0x68] sm:$0xff]  ;;  %v5137_v33 = vpack.c.bf16 %v2430_v61, %v2428_v26  ;;  %v2427_v38 = vld [vmem:[%s7092_s5 + $0x80] sm:$0xff]  ;;  %v2694_v26 = vld [vmem:[%s7093_s7 + $0x70] sm:$0xff] }
0x2182   :  { %v5133_v58 = vpack.c.bf16 %v2426_v50, %v2424_v35  ;;  %v2690_v35 = vld [vmem:[%s7093_s7 + $0x50] sm:$0xff]  ;;  %v6591_v61 = vpack.c.bf16 %v2694_v26, %v2692_v23 }
0x2183   :  { %v2175_v62 = vadd.f32 %v2174_v2, %v2092_v44  ;;  %v2429_v2 = vld [vmem:[%s7092_s5 + $0x90] sm:$0xff] }
0x2184   :  { %v5139_v44 = vpack.c.bf16 %v2429_v2, %v2427_v38 }
0x2185   :  { %5581 = vtanh.f32 %v2175_v62  ;;  %v322_v62 = vadd.f32 %v6187_v19, %v5926_v55  ;;  %v2680_v55 = vld [vmem:[%s7093_s7] sm:$0xff]  ;;  %v2682_v19 = vld [vmem:[%s7093_s7 + $0x10] sm:$0xff] }
0x218f   :  { %v5582_v45 = vpop.eup %5581 }
0x2190   :  { %2179 = vrot.lane.b32.xlu0 %v5582_v45, %s5719_s15 }
0x2202   :  { %v2180_v13 = vpop.permute.xlu0 %2179 }
0x2203   :  { %v2182_v1 = vmul.f32 %v2180_v13, %v2177_v49 }
0x2205   :  { %v2184_v5 = vadd.f32 %v2183_v0, %v2182_v1 }
0x2207   :  { %2190 = vst.msk [vmem:[#allocation3 + $0x10] sm:$0xff] %vm489_vm1, %v2184_v5  ;;  %2186 = vrot.lane.b32.xlu1 %v2184_v5, %s5719_s15 }
0x2279   :  { %v2187_v6 = vpop.permute.xlu1 %2186 }
0x227a   :  { %2189 = vst.msk [vmem:[#allocation3 + $0x88] sm:$0xff] %vm80_vm0, %v2187_v6  ;;  %4741 = vmatmul.mubr.msk.f32.vlgmr.msra.gmra.mrb[22].mxu1 %vm80_vm0, %v2187_v6  ;;  %v2681_v6 = vld [vmem:[%s7093_s7 + $0x8] sm:$0xff] }
0x227b   :  { %2519 = vmatprep.mubr.f32.mxu1 %v5718_v3  ;;  %5124 = vmatpush1.bf16.msra.mxu1 %v5123_v40  ;;  %v5147_v40 = vpack.c.bf16 %v2437_v36, %v2435_v63 }
0x227c   :  { %5126 = vmatprep.subr.bf16.mxu1 %v5125_v53  ;;  %v2440_v53 = vld [vmem:[%s7092_s5 + $0xe8] sm:$0xff] }
0x227d   :  { %v5149_v46 = vpack.c.bf16 %v2442_v41, %v2440_v53 }
0x227f   :  { %5128 = vmatpush1.bf16.msra.mxu1 %v5127_v48  ;;  %v2691_v48 = vld [vmem:[%s7093_s7 + $0x58] sm:$0xff] }
0x2280   :  { %5130 = vmatprep.subr.bf16.mxu1 %v5129_v10  ;;  %v2688_v10 = vld [vmem:[%s7093_s7 + $0x40] sm:$0xff]  ;;  %v6568_v27 = vpack.c.bf16 %v2691_v48, %v2689_v37 }
0x2281   :  { %v6573_v50 = vpack.c.bf16 %v2690_v35, %v2688_v10 }
0x2283   :  { %5132 = vmatpush1.bf16.msra.mxu1 %v5131_v57  ;;  %v2693_v57 = vld [vmem:[%s7093_s7 + $0x68] sm:$0xff] }
0x2284   :  { %5134 = vmatprep.subr.bf16.mxu1 %v5133_v58  ;;  %v2695_v58 = vld [vmem:[%s7093_s7 + $0x78] sm:$0xff] }
0x2285   :  { %v6582_v60 = vpack.c.bf16 %v2695_v58, %v2693_v57 }
0x2287   :  { %5136 = vmatpush1.bf16.msra.mxu1 %v5135_v32 }
0x2288   :  { %5138 = vmatprep.subr.bf16.mxu1 %v5137_v33 }
0x228b   :  { %5140 = vmatpush1.bf16.msra.mxu1 %v5139_v44 }
0x234d   :  { %v2261_v59 = vpop.f32.mrb[22].mxu1 }
0x234e   :  { %v2266_v9 = vadd.f32 %v2261_v59, %v316_v8  ;;  %v2263_v11 = vpop.f32.mrb[23].mxu1  ;;  %v2683_v8 = vld [vmem:[%s7093_s7 + $0x18] sm:$0xff] }
0x234f   :  { %v2273_v15 = vadd.f32 %v6299_v29, %v2263_v11 }
0x2350   :  { %v4742_v12 = vmul.f32 -1.442695, %v2266_v9  ;;  %v6490_v9 = vpack.c.bf16 %v2683_v8, %v2681_v6  ;;  %v2398_v6 = vld [vmem:[#allocation3 + $0x38] sm:$0xff]  ;;  %v2399_v8 = vld [vmem:[#allocation3 + $0x40] sm:$0xff] }
0x2352   :  { %5583 = vpow2.f32 %v4742_v12  ;;  %v6500_v12 = vpack.c.bf16 %v2682_v19, %v2680_v55  ;;  %5154 = vmatprep.subr.bf16.mxu0 %v6490_v9  ;;  %v2401_v55 = vld [vmem:[#allocation3 + $0x50] sm:$0xff]  ;;  %v2402_v19 = vld [vmem:[#allocation3 + $0x58] sm:$0xff] }
0x235c   :  { %v5584_v14 = vpop.eup %5583 }
0x235d   :  { %v2270_v47 = vadd.f32 1.0, %v5584_v14  ;;  %v2292_v14 = vld [vmem:[#allocation2 + $0x138] sm:$0xff] }
0x235f   :  { %5585 = vrcp.f32 %v2270_v47 }
0x2369   :  { %v5586_v17 = vpop.eup %5585 }
0x236a   :  { %v2274_v39 = vmul.f32 %v5586_v17, %v2273_v15  ;;  %v2277_v7 = vsub.f32 1.0, %v5586_v17  ;;  %v2283_v18 = vmul.f32 %v5586_v17, %v2184_v5  ;;  %v2434_v15 = vld [vmem:[%s7092_s5 + $0xb8] sm:$0xff] }
0x236c   :  { %v2275_v4 = vadd.f32 %v2274_v39, %v2192_v30  ;;  %v2431_v39 = vld [vmem:[%s7092_s5 + $0xa0] sm:$0xff]  ;;  %v2433_v30 = vld [vmem:[%s7092_s5 + $0xb0] sm:$0xff] }
0x236e   :  { %5587 = vtanh.f32 %v2275_v4  ;;  %v2685_v4 = vld [vmem:[%s7093_s7 + $0x28] sm:$0xff] }
0x2378   :  { %v5588_v21 = vpop.eup %5587 }
0x2379   :  { %2279 = vrot.lane.b32.xlu0 %v5588_v21, %s5719_s15 }
0x23eb   :  { %v2280_v16 = vpop.permute.xlu0 %2279 }
0x23ec   :  { %v2282_v20 = vmul.f32 %v2280_v16, %v2277_v7  ;;  %v5143_v7 = vpack.c.bf16 %v2433_v30, %v2431_v39  ;;  %v2687_v16 = vld [vmem:[%s7093_s7 + $0x38] sm:$0xff] }
0x23ee   :  { %v6412_v22 = vadd.f32 %v2283_v18, %v2282_v20  ;;  %v2684_v18 = vld [vmem:[%s7093_s7 + $0x20] sm:$0xff]  ;;  %v2686_v20 = vld [vmem:[%s7093_s7 + $0x30] sm:$0xff] }
0x23ef   :  { %v6531_v25 = vpack.c.bf16 %v2686_v20, %v2684_v18 }
0x23f0   :  { %2290 = vst.msk [vmem:[#allocation3 + $0x8] sm:$0xff] %vm489_vm1, %v6412_v22  ;;  %2286 = vrot.lane.b32.xlu1 %v6412_v22, %s5719_s15 }
0x2462   :  { %v2287_v24 = vpop.permute.xlu1 %2286 }
0x2463   :  { %2289 = vst.msk [vmem:[#allocation3 + $0x90] sm:$0xff] %vm80_vm0, %v2287_v24  ;;  %4743 = vmatmul.mubr.msk.f32.vlgmr.msra.gmra.mrb[54].mxu0 %vm80_vm0, %v2287_v24  ;;  %v6529_v24 = vpack.c.bf16 %v2687_v16, %v2685_v4 }
0x2464   :  { %2769 = vmatprep.mubr.f32.mxu0 %v5718_v3  ;;  %5156 = vmatpush1.bf16.msra.mxu0 %v6500_v12 }
0x2465   :  { %5158 = vmatprep.subr.bf16.mxu0 %v6529_v24 }
0x2468   :  { %5160 = vmatpush1.bf16.msra.mxu0 %v6531_v25 }
0x2469   :  { %5162 = vmatprep.subr.bf16.mxu0 %v6568_v27 }
0x246a   :  { %v2409_v39 = vld [vmem:[#allocation3 + $0x90] sm:$0xff] }
0x246c   :  { %5164 = vmatpush1.bf16.msra.mxu0 %v6573_v50 }
0x246d   :  { %5166 = vmatprep.subr.bf16.mxu0 %v6582_v60 }
0x2470   :  { %5168 = vmatpush1.bf16.msra.mxu0 %v6591_v61 }
0x2471   :  { %5170 = vmatprep.subr.bf16.mxu0 %v6490_v9 }
0x2473   :  { %2770 = vmatmul.mubr.f32.vlgmr.msra.gmra.mrb[56].mxu0 %v5718_v3 }
0x2474   :  { %5172 = vmatpush1.bf16.msra.mxu0 %v6500_v12  ;;  %2868 = vmatprep.mubr.f32.mxu0 %v5718_v3 }
0x2475   :  { %5174 = vmatprep.subr.bf16.mxu0 %v6529_v24 }
0x2478   :  { %5176 = vmatpush1.bf16.msra.mxu0 %v6531_v25 }
0x2479   :  { %5178 = vmatprep.subr.bf16.mxu0 %v6568_v27 }
0x247c   :  { %5180 = vmatpush1.bf16.msra.mxu0 %v6573_v50 }
0x247d   :  { %5182 = vmatprep.subr.bf16.mxu0 %v6582_v60 }
0x2480   :  { %5184 = vmatpush1.bf16.msra.mxu0 %v6591_v61 }
0x2481   :  { %5186 = vmatprep.subr.bf16.mxu0 %v6490_v9 }
0x2536   :  { %v2361_v45 = vpop.f32.mrb[54].mxu0 }
0x2537   :  { %v2366_v49 = vadd.f32 %v2361_v45, %v322_v62  ;;  %v2363_v13 = vpop.f32.mrb[55].mxu0 }
0x2538   :  { %v2373_v59 = vadd.f32 %v6299_v29, %v2363_v13  ;;  %v2432_v29 = vld [vmem:[%s7092_s5 + $0xa8] sm:$0xff]  ;;  %v2394_v13 = vld [vmem:[#allocation3 + $0x18] sm:$0xff] }
0x2539   :  { %v4744_v0 = vmul.f32 -1.442695, %v2366_v49  ;;  %v5141_v17 = vpack.c.bf16 %v2434_v15, %v2432_v29  ;;  %v2392_v49 = vld [vmem:[#allocation3 + $0x8] sm:$0xff]  ;;  %v2406_v29 = vld [vmem:[#allocation3 + $0x78] sm:$0xff]  ;;  %v2407_v15 = vld [vmem:[#allocation3 + $0x80] sm:$0xff] }
0x253b   :  { %5589 = vpow2.f32 %v4744_v0  ;;  %5142 = vmatprep.subr.bf16.mxu1 %v5141_v17  ;;  %v2395_v0 = vld [vmem:[#allocation3 + $0x20] sm:$0xff]  ;;  %v2408_v17 = vld [vmem:[#allocation3 + $0x88] sm:$0xff] }
0x253c   :  { %5144 = vmatpush1.bf16.msra.mxu1 %v5143_v7 }
0x253d   :  { %5146 = vmatprep.subr.bf16.mxu1 %v5145_v34 }
0x2540   :  { %5148 = vmatpush1.bf16.msra.mxu1 %v5147_v40 }
0x2541   :  { %5150 = vmatprep.subr.bf16.mxu1 %v5149_v46 }
0x2544   :  { %5152 = vmatpush1.bf16.msra.mxu1 %v5151_v42 }
0x2545   :  { %v5590_v1 = vpop.eup %5589  ;;  %5250 = vmatprep.subr.bf16.mxu1 %v6490_v9 }
0x2546   :  { %v2370_v5 = vadd.f32 1.0, %v5590_v1  ;;  %v2396_v1 = vld [vmem:[#allocation3 + $0x28] sm:$0xff]  ;;  %v2771_v30 = vpop.f32.mrb[56].mxu0 }
0x2547   :  { %v2773_v4 = vpop.f32.mrb[57].mxu0 }
0x2548   :  { %5591 = vrcp.f32 %v2370_v5  ;;  %v2397_v5 = vld [vmem:[#allocation3 + $0x30] sm:$0xff] }
0x2552   :  { %v6498_v11 = vpop.eup %5591 }
0x2553   :  { %v2374_v47 = vmul.f32 %v6498_v11, %v2373_v59  ;;  %v2377_v33 = vsub.f32 1.0, %v6498_v11  ;;  %v2383_v2 = vmul.f32 %v6498_v11, %v6412_v22  ;;  %v2393_v22 = vld [vmem:[#allocation3 + $0x10] sm:$0xff]  ;;  %v2400_v59 = vld [vmem:[#allocation3 + $0x48] sm:$0xff]  ;;  %v2403_v11 = vld [vmem:[#allocation3 + $0x60] sm:$0xff] }
0x2555   :  { %v2375_v21 = vadd.f32 %v2374_v47, %v2292_v14  ;;  %v2404_v14 = vld [vmem:[#allocation3 + $0x68] sm:$0xff]  ;;  %v2405_v47 = vld [vmem:[#allocation3 + $0x70] sm:$0xff] }
0x2557   :  { %5593 = vtanh.f32 %v2375_v21  ;;  %v2443_v21 = vld [vmem:[%s7094_s6] sm:$0x3] }
0x2558   :  { %v6647_v7 = vrot.slane %v2443_v21, %v72_v52  ;;  %v6651_v16 = vrot.slane %v2443_v21, %v76_v54 }
0x2561   :  { %v5594_v32 = vpop.eup %5593 }
0x2562   :  { %2379 = vrot.lane.b32.xlu0 %v5594_v32, %s5719_s15 }
0x25d4   :  { %v2380_v38 = vpop.permute.xlu0 %2379 }
0x25d5   :  { %v2382_v44 = vmul.f32 %v2380_v38, %v2377_v33 }
0x25d7   :  { %v6611_v62 = vadd.f32 %v2383_v2, %v2382_v44 }
0x25d9   :  { %2390 = vst.msk [vmem:[#allocation3] sm:$0xff] %vm489_vm1, %v6611_v62 }
0x25e0   :  { %v2391_v45 = vld [vmem:[#allocation3] sm:$0xff] }
0x25e1   :  { %2520 = vmatmul.mubr.f32.vlgmr.msra.gmra.mrb[24].mxu1 %v2391_v45 }
0x25e2   :  { %2525 = vmatprep.mubr.f32.mxu1 %v5718_v3  ;;  %5252 = vmatpush1.bf16.msra.mxu1 %v6500_v12 }
0x25e3   :  { %5254 = vmatprep.subr.bf16.mxu1 %v6529_v24 }
0x25e5   :  { %2526 = vmatmul.mubr.f32.gmra.mrb[26].mxu1 %v2392_v49  ;;  %v6687_v49 = vld [vmem:[%s7095_s8] ss:$0 sm:$0xff] }
0x25e6   :  { %2531 = vmatprep.mubr.f32.mxu1 %v5718_v3  ;;  %5256 = vmatpush1.bf16.msra.mxu1 %v6531_v25 }
0x25e7   :  { %5258 = vmatprep.subr.bf16.mxu1 %v6568_v27 }
0x25e9   :  { %2532 = vmatmul.mubr.f32.gmra.mrb[28].mxu1 %v2393_v22 }
0x25ea   :  { %2537 = vmatprep.mubr.f32.mxu1 %v5718_v3  ;;  %5260 = vmatpush1.bf16.msra.mxu1 %v6573_v50 }
0x25eb   :  { %5262 = vmatprep.subr.bf16.mxu1 %v6582_v60 }
0x25ed   :  { %2538 = vmatmul.mubr.f32.gmra.mrb[30].mxu1 %v2394_v13 }
0x25ee   :  { %2543 = vmatprep.mubr.f32.mxu1 %v5718_v3  ;;  %5264 = vmatpush1.bf16.msra.mxu1 %v6591_v61 }
0x25ef   :  { %5282 = vmatprep.subr.bf16.mxu1 %v6490_v9 }
0x25f1   :  { %2544 = vmatmul.mubr.f32.gmra.mrb[32].mxu1 %v2395_v0  ;;  %v2783_v0 = vadd.f32 %v6687_v49, %v2773_v4 }
0x25f2   :  { %2549 = vmatprep.mubr.f32.mxu1 %v5718_v3 }
0x25f5   :  { %2550 = vmatmul.mubr.f32.gmra.mrb[34].mxu1 %v2396_v1 }
0x25f6   :  { %2555 = vmatprep.mubr.f32.mxu1 %v5718_v3 }
0x25f9   :  { %2556 = vmatmul.mubr.f32.gmra.mrb[36].mxu1 %v2397_v5 }
0x25fa   :  { %2561 = vmatprep.mubr.f32.mxu1 %v5718_v3 }
0x25fd   :  { %2562 = vmatmul.mubr.f32.gmra.mrb[38].mxu1 %v2398_v6 }
0x25fe   :  { %2567 = vmatprep.mubr.f32.mxu1 %v5718_v3 }
0x2601   :  { %2568 = vmatmul.mubr.f32.gmra.mrb[40].mxu1 %v2399_v8 }
0x2602   :  { %2573 = vmatprep.mubr.f32.mxu1 %v5718_v3 }
0x2605   :  { %2574 = vmatmul.mubr.f32.gmra.mrb[42].mxu1 %v2400_v59 }
0x2606   :  { %2579 = vmatprep.mubr.f32.mxu1 %v5718_v3 }
0x2609   :  { %2580 = vmatmul.mubr.f32.gmra.mrb[44].mxu1 %v2401_v55 }
0x260a   :  { %2585 = vmatprep.mubr.f32.mxu1 %v5718_v3 }
0x260d   :  { %2586 = vmatmul.mubr.f32.gmra.mrb[46].mxu1 %v2402_v19 }
0x260e   :  { %2591 = vmatprep.mubr.f32.mxu1 %v5718_v3 }
0x2611   :  { %2592 = vmatmul.mubr.f32.gmra.mrb[48].mxu1 %v2403_v11 }
0x2612   :  { %2597 = vmatprep.mubr.f32.mxu1 %v5718_v3 }
0x2615   :  { %2598 = vmatmul.mubr.f32.gmra.mrb[50].mxu1 %v2404_v14 }
0x2616   :  { %2603 = vmatprep.mubr.f32.mxu1 %v5718_v3 }
0x2619   :  { %2604 = vmatmul.mubr.f32.gmra.mrb[52].mxu1 %v2405_v47 }
0x261a   :  { %2609 = vmatprep.mubr.f32.mxu1 %v5718_v3 }
0x261d   :  { %2610 = vmatmul.mubr.f32.gmra.mrb[54].mxu1 %v2406_v29 }
0x261e   :  { %2615 = vmatprep.mubr.f32.mxu1 %v5718_v3 }
0x2621   :  { %2616 = vmatmul.mubr.f32.gmra.mrb[56].mxu1 %v2407_v15 }
0x2622   :  { %2621 = vmatprep.mubr.f32.mxu1 %v5718_v3 }
0x2625   :  { %2622 = vmatmul.mubr.f32.gmra.mrb[58].mxu1 %v2408_v17 }
0x2626   :  { %2627 = vmatprep.mubr.f32.mxu1 %v5718_v3 }
0x2629   :  { %2628 = vmatmul.mubr.f32.gmra.mrb[60].mxu1 %v2409_v39 }
0x262a   :  { %2633 = vmatprep.mubr.f32.mxu1 %v5718_v3 }
0x26b4   :  { %v2521_v18 = vpop.f32.mrb[24].mxu1 }
0x26b5   :  { %v2522_v20 = vadd.f32 %v2521_v18, %v6647_v7  ;;  %v2523_v28 = vpop.f32.mrb[25].mxu1 }
0x26b6   :  { %v2524_v31 = vadd.f32 %v2523_v28, %v6651_v16 }
0x26b7   :  { %v2776_v34 = vadd.f32 %v2771_v30, %v2522_v20 }
0x26b8   :  { %2641 = vst.msk [vmem:[#allocation2 + $0x8] sm:$0xff] %vm80_vm0, %v2524_v31  ;;  %v2527_v63 = vpop.f32.mrb[26].mxu1 }
0x26b9   :  { %v6657_v36 = vadd.f32 %v2527_v63, %v6647_v7  ;;  %v2529_v37 = vpop.f32.mrb[27].mxu1  ;;  %v4746_v52 = vmul.f32 -1.442695, %v2776_v34 }
0x26ba   :  { %v2530_v40 = vadd.f32 %v2529_v37, %v6651_v16 }
0x26bb   :  { %5595 = vpow2.f32 %v4746_v52 }
0x26bc   :  { %2643 = vst.msk [vmem:[#allocation2 + $0x18] sm:$0xff] %vm80_vm0, %v2530_v40  ;;  %v2533_v51 = vpop.f32.mrb[28].mxu1 }
0x26bd   :  { %v6662_v54 = vadd.f32 %v2533_v51, %v6647_v7  ;;  %v2535_v53 = vpop.f32.mrb[29].mxu1 }
0x26be   :  { %v2536_v41 = vadd.f32 %v2535_v53, %v6651_v16 }
0x26bf   :  { %v2704_v55 = vld [vmem:[#allocation2 + $0x8] sm:$0xff] }
0x26c0   :  { %2645 = vst.msk [vmem:[#allocation2 + $0x28] sm:$0xff] %vm80_vm0, %v2536_v41  ;;  %v2539_v43 = vpop.f32.mrb[30].mxu1 }
0x26c1   :  { %v6667_v46 = vadd.f32 %v2539_v43, %v6647_v7  ;;  %v2541_v56 = vpop.f32.mrb[31].mxu1 }
0x26c2   :  { %v2542_v48 = vadd.f32 %v2541_v56, %v6651_v16 }
0x26c4   :  { %2647 = vst.msk [vmem:[#allocation2 + $0x38] sm:$0xff] %vm80_vm0, %v2542_v48  ;;  %v2545_v10 = vpop.f32.mrb[32].mxu1 }
0x26c5   :  { %v5596_v42 = vpop.eup %5595  ;;  %v6672_v35 = vadd.f32 %v2545_v10, %v6647_v7  ;;  %v2547_v57 = vpop.f32.mrb[33].mxu1 }
0x26c6   :  { %v2780_v58 = vadd.f32 1.0, %v5596_v42  ;;  %v2548_v23 = vadd.f32 %v2547_v57, %v6651_v16 }
0x26c8   :  { %5597 = vrcp.f32 %v2780_v58  ;;  %2649 = vst.msk [vmem:[#allocation2 + $0x48] sm:$0xff] %vm80_vm0, %v2548_v23  ;;  %v2551_v26 = vpop.f32.mrb[34].mxu1 }
0x26c9   :  { %v6677_v32 = vadd.f32 %v2551_v26, %v6647_v7  ;;  %v2553_v33 = vpop.f32.mrb[35].mxu1 }
0x26ca   :  { %v2554_v38 = vadd.f32 %v2553_v33, %v6651_v16 }
0x26cc   :  { %2651 = vst.msk [vmem:[#allocation2 + $0x58] sm:$0xff] %vm80_vm0, %v2554_v38  ;;  %v2557_v2 = vpop.f32.mrb[36].mxu1 }
0x26cd   :  { %v6682_v44 = vadd.f32 %v2557_v2, %v6647_v7  ;;  %v2559_v45 = vpop.f32.mrb[37].mxu1 }
0x26ce   :  { %v2560_v22 = vadd.f32 %v2559_v45, %v6651_v16 }
0x26d0   :  { %2653 = vst.msk [vmem:[#allocation2 + $0x68] sm:$0xff] %vm80_vm0, %v2560_v22  ;;  %v2563_v13 = vpop.f32.mrb[38].mxu1 }
0x26d1   :  { %v6693_v1 = vadd.f32 %v2563_v13, %v6647_v7  ;;  %v2565_v5 = vpop.f32.mrb[39].mxu1 }
0x26d2   :  { %v6695_v6 = vpop.eup %5597  ;;  %v2566_v8 = vadd.f32 %v2565_v5, %v6651_v16 }
0x26d3   :  { %v2784_v59 = vmul.f32 %v6695_v6, %v2783_v0 }
0x26d4   :  { %2655 = vst.msk [vmem:[#allocation2 + $0x78] sm:$0xff] %vm80_vm0, %v2566_v8  ;;  %v2569_v19 = vpop.f32.mrb[40].mxu1 }
0x26d5   :  { %v2785_v11 = vadd.f32 %v2784_v59, %v2704_v55  ;;  %v6701_v14 = vadd.f32 %v2569_v19, %v6647_v7  ;;  %v2571_v47 = vpop.f32.mrb[41].mxu1 }
0x26d6   :  { %v2572_v29 = vadd.f32 %v2571_v47, %v6651_v16 }
0x26d7   :  { %5599 = vtanh.f32 %v2785_v11 }
0x26d8   :  { %2657 = vst.msk [vmem:[#allocation2 + $0x88] sm:$0xff] %vm80_vm0, %v2572_v29  ;;  %v2575_v15 = vpop.f32.mrb[42].mxu1  ;;  %v2787_v29 = vsub.f32 1.0, %v6695_v6 }
0x26d9   :  { %v6706_v17 = vadd.f32 %v2575_v15, %v6647_v7  ;;  %v2577_v39 = vpop.f32.mrb[43].mxu1 }
0x26da   :  { %v2578_v30 = vadd.f32 %v2577_v39, %v6651_v16  ;;  %v2793_v39 = vmul.f32 0.0, %v6695_v6 }
0x26dc   :  { %2659 = vst.msk [vmem:[#allocation2 + $0x98] sm:$0xff] %vm80_vm0, %v2578_v30  ;;  %v2581_v4 = vpop.f32.mrb[44].mxu1 }
0x26dd   :  { %v6711_v21 = vadd.f32 %v2581_v4, %v6647_v7  ;;  %v2583_v18 = vpop.f32.mrb[45].mxu1 }
0x26de   :  { %v2584_v20 = vadd.f32 %v2583_v18, %v6651_v16 }
0x26e0   :  { %2661 = vst.msk [vmem:[#allocation2 + $0xa8] sm:$0xff] %vm80_vm0, %v2584_v20  ;;  %v2587_v28 = vpop.f32.mrb[46].mxu1 }
0x26e1   :  { %v5600_v31 = vpop.eup %5599  ;;  %v6716_v34 = vadd.f32 %v2587_v28, %v6647_v7  ;;  %v2589_v63 = vpop.f32.mrb[47].mxu1 }
0x26e2   :  { %v2590_v37 = vadd.f32 %v2589_v63, %v6651_v16  ;;  %2789 = vrot.lane.b32.xlu1 %v5600_v31, %s5719_s15 }
0x26e4   :  { %2663 = vst.msk [vmem:[#allocation2 + $0xb8] sm:$0xff] %vm80_vm0, %v2590_v37  ;;  %v2593_v52 = vpop.f32.mrb[48].mxu1 }
0x26e5   :  { %v6722_v40 = vadd.f32 %v2593_v52, %v6647_v7  ;;  %v2595_v51 = vpop.f32.mrb[49].mxu1 }
0x26e6   :  { %v2596_v53 = vadd.f32 %v2595_v51, %v6651_v16 }
0x26e8   :  { %2665 = vst.msk [vmem:[#allocation2 + $0xc8] sm:$0xff] %vm80_vm0, %v2596_v53  ;;  %v2599_v41 = vpop.f32.mrb[50].mxu1 }
0x26e9   :  { %v6727_v43 = vadd.f32 %v2599_v41, %v6647_v7  ;;  %v2601_v56 = vpop.f32.mrb[51].mxu1  ;;  %v2801_v41 = vld [vmem:[#allocation2 + $0x18] sm:$0xff] }
0x26ea   :  { %v2602_v48 = vadd.f32 %v2601_v56, %v6651_v16 }
0x26ec   :  { %2667 = vst.msk [vmem:[#allocation2 + $0xd8] sm:$0xff] %vm80_vm0, %v2602_v48  ;;  %v2605_v10 = vpop.f32.mrb[52].mxu1 }
0x26ed   :  { %v6732_v42 = vadd.f32 %v2605_v10, %v6647_v7  ;;  %v2607_v57 = vpop.f32.mrb[53].mxu1 }
0x26ee   :  { %v2608_v58 = vadd.f32 %v2607_v57, %v6651_v16 }
0x26f0   :  { %2669 = vst.msk [vmem:[#allocation2 + $0xe8] sm:$0xff] %vm80_vm0, %v2608_v58  ;;  %v2611_v23 = vpop.f32.mrb[54].mxu1 }
0x26f1   :  { %v2612_v26 = vadd.f32 %v2611_v23, %v6647_v7  ;;  %v2613_v33 = vpop.f32.mrb[55].mxu1 }
0x26f2   :  { %v2614_v38 = vadd.f32 %v2613_v33, %v6651_v16 }
0x26f3   :  { %2670 = vst [vmem:[#allocation2 + $0xf0] sm:$0xff] %v2612_v26 }
0x26f4   :  { %2671 = vst.msk [vmem:[#allocation2 + $0xf8] sm:$0xff] %vm80_vm0, %v2614_v38  ;;  %v2617_v2 = vpop.f32.mrb[56].mxu1 }
0x26f5   :  { %v2618_v45 = vadd.f32 %v2617_v2, %v6647_v7  ;;  %v2619_v22 = vpop.f32.mrb[57].mxu1 }
0x26f6   :  { %v2620_v13 = vadd.f32 %v2619_v22, %v6651_v16 }
0x26f7   :  { %2672 = vst [vmem:[#allocation2 + $0x100] sm:$0xff] %v2618_v45 }
0x26f8   :  { %2673 = vst.msk [vmem:[#allocation2 + $0x108] sm:$0xff] %vm80_vm0, %v2620_v13  ;;  %v2623_v0 = vpop.f32.mrb[58].mxu1 }
0x26f9   :  { %v2624_v5 = vadd.f32 %v2623_v0, %v6647_v7  ;;  %v2625_v8 = vpop.f32.mrb[59].mxu1 }
0x26fa   :  { %v2626_v59 = vadd.f32 %v2625_v8, %v6651_v16 }
0x26fb   :  { %2674 = vst [vmem:[#allocation2 + $0x110] sm:$0xff] %v2624_v5 }
0x26fc   :  { %2675 = vst.msk [vmem:[#allocation2 + $0x118] sm:$0xff] %vm80_vm0, %v2626_v59  ;;  %v2629_v55 = vpop.f32.mrb[60].mxu1  ;;  %v2900_v59 = vld [vmem:[#allocation2 + $0x28] sm:$0xff] }
0x26fd   :  { %v2630_v19 = vadd.f32 %v2629_v55, %v6647_v7  ;;  %v2631_v11 = vpop.f32.mrb[61].mxu1 }
0x26fe   :  { %v2632_v47 = vadd.f32 %v2631_v11, %v6651_v16 }
0x26ff   :  { %2676 = vst [vmem:[#allocation2 + $0x120] sm:$0xff] %v2630_v19 }
0x2700   :  { %2677 = vst.msk [vmem:[#allocation2 + $0x128] sm:$0xff] %vm80_vm0, %v2632_v47 }
0x2754   :  { %v2790_v15 = vpop.permute.xlu1 %2789 }
0x2755   :  { %v2792_v30 = vmul.f32 %v2790_v15, %v2787_v29 }
0x2757   :  { %v2794_v4 = vadd.f32 %v2793_v39, %v2792_v30 }
0x2759   :  { %2796 = vrot.lane.b32.xlu0 %v2794_v4, %s5719_s15 }
0x27cb   :  { %v2797_v18 = vpop.permute.xlu0 %2796 }
0x27cc   :  { %2799 = vst.msk [vmem:[%s7096_s9] sm:$0xff] %vm80_vm0, %v2797_v18  ;;  %4747 = vmatmul.mubr.msk.f32.vlgmr.msra.gmra.mrb[58].mxu0 %vm80_vm0, %v2797_v18 }
0x27cd   :  { %5188 = vmatpush1.bf16.msra.mxu0 %v6500_v12  ;;  %2967 = vmatprep.mubr.f32.mxu0 %v5718_v3 }
0x27ce   :  { %5190 = vmatprep.subr.bf16.mxu0 %v6529_v24 }
0x27d1   :  { %5192 = vmatpush1.bf16.msra.mxu0 %v6531_v25 }
0x27d2   :  { %5194 = vmatprep.subr.bf16.mxu0 %v6568_v27 }
0x27d5   :  { %5196 = vmatpush1.bf16.msra.mxu0 %v6573_v50 }
0x27d6   :  { %5198 = vmatprep.subr.bf16.mxu0 %v6582_v60 }
0x27d9   :  { %5200 = vmatpush1.bf16.msra.mxu0 %v6591_v61 }
0x27da   :  { %5202 = vmatprep.subr.bf16.mxu0 %v6490_v9 }
0x289f   :  { %v2870_v6 = vpop.f32.mrb[58].mxu0 }
0x28a0   :  { %v2875_v20 = vadd.f32 %v2870_v6, %v6657_v36  ;;  %v2872_v28 = vpop.f32.mrb[59].mxu0 }
0x28a1   :  { %v2882_v52 = vadd.f32 %v6687_v49, %v2872_v28 }
0x28a2   :  { %v4748_v31 = vmul.f32 -1.442695, %v2875_v20 }
0x28a4   :  { %5601 = vpow2.f32 %v4748_v31 }
0x28ae   :  { %v5602_v63 = vpop.eup %5601 }
0x28af   :  { %v2879_v37 = vadd.f32 1.0, %v5602_v63 }
0x28b1   :  { %5603 = vrcp.f32 %v2879_v37 }
0x28bb   :  { %v5604_v51 = vpop.eup %5603 }
0x28bc   :  { %v2883_v53 = vmul.f32 %v5604_v51, %v2882_v52  ;;  %v2886_v10 = vsub.f32 1.0, %v5604_v51  ;;  %v2892_v58 = vmul.f32 %v5604_v51, %v2794_v4  ;;  %v2999_v52 = vld [vmem:[#allocation2 + $0x38] sm:$0xff] }
0x28be   :  { %v2884_v56 = vadd.f32 %v2883_v53, %v2801_v41 }
0x28c0   :  { %5605 = vtanh.f32 %v2884_v56 }
0x28ca   :  { %v5606_v48 = vpop.eup %5605 }
0x28cb   :  { %2888 = vrot.lane.b32.xlu1 %v5606_v48, %s5719_s15 }
0x293d   :  { %v2889_v57 = vpop.permute.xlu1 %2888 }
0x293e   :  { %v2891_v36 = vmul.f32 %v2889_v57, %v2886_v10 }
0x2940   :  { %v2893_v23 = vadd.f32 %v2892_v58, %v2891_v36 }
0x2942   :  { %2895 = vrot.lane.b32.xlu0 %v2893_v23, %s5719_s15 }
0x29b4   :  { %v2896_v26 = vpop.permute.xlu0 %2895 }
0x29b5   :  { %2898 = vst.msk [vmem:[%s7096_s9 + $0x8] sm:$0xff] %vm80_vm0, %v2896_v26  ;;  %4749 = vmatmul.mubr.msk.f32.vlgmr.msra.gmra.mrb[60].mxu0 %vm80_vm0, %v2896_v26 }
0x29b6   :  { %5204 = vmatpush1.bf16.msra.mxu0 %v6500_v12  ;;  %3066 = vmatprep.mubr.f32.mxu0 %v5718_v3 }
0x29b7   :  { %5206 = vmatprep.subr.bf16.mxu0 %v6529_v24 }
0x29ba   :  { %5208 = vmatpush1.bf16.msra.mxu0 %v6531_v25 }
0x29bb   :  { %5210 = vmatprep.subr.bf16.mxu0 %v6568_v27 }
0x29be   :  { %5212 = vmatpush1.bf16.msra.mxu0 %v6573_v50 }
0x29bf   :  { %5214 = vmatprep.subr.bf16.mxu0 %v6582_v60 }
0x29c2   :  { %5216 = vmatpush1.bf16.msra.mxu0 %v6591_v61 }
0x29c3   :  { %5218 = vmatprep.subr.bf16.mxu0 %v6490_v9 }
0x2a88   :  { %v2969_v33 = vpop.f32.mrb[60].mxu0 }
0x2a89   :  { %v2974_v38 = vadd.f32 %v2969_v33, %v6662_v54  ;;  %v2971_v2 = vpop.f32.mrb[61].mxu0 }
0x2a8a   :  { %v2981_v0 = vadd.f32 %v6687_v49, %v2971_v2 }
0x2a8b   :  { %v4750_v45 = vmul.f32 -1.442695, %v2974_v38 }
0x2a8d   :  { %5607 = vpow2.f32 %v4750_v45 }
0x2a97   :  { %v5608_v22 = vpop.eup %5607 }
0x2a98   :  { %v2978_v13 = vadd.f32 1.0, %v5608_v22 }
0x2a9a   :  { %5609 = vrcp.f32 %v2978_v13  ;;  %v3098_v13 = vld [vmem:[#allocation2 + $0x48] sm:$0xff] }
0x2aa4   :  { %v5610_v5 = vpop.eup %5609 }
0x2aa5   :  { %v2982_v8 = vmul.f32 %v5610_v5, %v2981_v0  ;;  %v2985_v11 = vsub.f32 1.0, %v5610_v5  ;;  %v2991_v29 = vmul.f32 %v5610_v5, %v2893_v23 }
0x2aa7   :  { %v2983_v55 = vadd.f32 %v2982_v8, %v2900_v59 }
0x2aa9   :  { %5611 = vtanh.f32 %v2983_v55 }
0x2ab3   :  { %v5612_v19 = vpop.eup %5611 }
0x2ab4   :  { %2987 = vrot.lane.b32.xlu1 %v5612_v19, %s5719_s15 }
0x2b26   :  { %v2988_v47 = vpop.permute.xlu1 %2987 }
0x2b27   :  { %v2990_v54 = vmul.f32 %v2988_v47, %v2985_v11 }
0x2b29   :  { %v2992_v15 = vadd.f32 %v2991_v29, %v2990_v54 }
0x2b2b   :  { %2994 = vrot.lane.b32.xlu0 %v2992_v15, %s5719_s15 }
0x2b9d   :  { %v2995_v39 = vpop.permute.xlu0 %2994 }
0x2b9e   :  { %2997 = vst.msk [vmem:[%s7096_s9 + $0x10] sm:$0xff] %vm80_vm0, %v2995_v39  ;;  %4751 = vmatmul.mubr.msk.f32.vlgmr.msra.gmra.mrb[62].mxu0 %vm80_vm0, %v2995_v39 }
0x2b9f   :  { %5220 = vmatpush1.bf16.msra.mxu0 %v6500_v12  ;;  %3165 = vmatprep.mubr.f32.mxu0 %v5718_v3 }
0x2ba0   :  { %5222 = vmatprep.subr.bf16.mxu0 %v6529_v24 }
0x2ba3   :  { %5224 = vmatpush1.bf16.msra.mxu0 %v6531_v25 }
0x2ba4   :  { %5226 = vmatprep.subr.bf16.mxu0 %v6568_v27 }
0x2ba7   :  { %5228 = vmatpush1.bf16.msra.mxu0 %v6573_v50 }
0x2ba8   :  { %5230 = vmatprep.subr.bf16.mxu0 %v6582_v60 }
0x2bab   :  { %5232 = vmatpush1.bf16.msra.mxu0 %v6591_v61 }
0x2bac   :  { %5234 = vmatprep.subr.bf16.mxu0 %v6490_v9 }
0x2c71   :  { %v3068_v30 = vpop.f32.mrb[62].mxu0 }
0x2c72   :  { %v3073_v4 = vadd.f32 %v3068_v30, %v6667_v46  ;;  %v3070_v18 = vpop.f32.mrb[63].mxu0 }
0x2c73   :  { %v3080_v31 = vadd.f32 %v6687_v49, %v3070_v18 }
0x2c74   :  { %v4752_v6 = vmul.f32 -1.442695, %v3073_v4 }
0x2c76   :  { %5613 = vpow2.f32 %v4752_v6 }
0x2c80   :  { %v5614_v20 = vpop.eup %5613 }
0x2c81   :  { %v3077_v28 = vadd.f32 1.0, %v5614_v20 }
0x2c83   :  { %5615 = vrcp.f32 %v3077_v28 }
0x2c8d   :  { %v5616_v63 = vpop.eup %5615 }
0x2c8e   :  { %v3081_v37 = vmul.f32 %v5616_v63, %v3080_v31  ;;  %v3084_v41 = vsub.f32 1.0, %v5616_v63  ;;  %v3090_v48 = vmul.f32 %v5616_v63, %v2992_v15 }
0x2c90   :  { %v3082_v51 = vadd.f32 %v3081_v37, %v2999_v52 }
0x2c92   :  { %5617 = vtanh.f32 %v3082_v51 }
0x2c9c   :  { %v5618_v53 = vpop.eup %5617 }
0x2c9d   :  { %3086 = vrot.lane.b32.xlu1 %v5618_v53, %s5719_s15 }
0x2d0f   :  { %v3087_v56 = vpop.permute.xlu1 %3086 }
0x2d10   :  { %v3089_v46 = vmul.f32 %v3087_v56, %v3084_v41 }
0x2d12   :  { %v3091_v10 = vadd.f32 %v3090_v48, %v3089_v46 }
0x2d14   :  { %3093 = vrot.lane.b32.xlu0 %v3091_v10, %s5719_s15 }
0x2d86   :  { %v3094_v57 = vpop.permute.xlu0 %3093 }
0x2d87   :  { %3096 = vst.msk [vmem:[%s7096_s9 + $0x18] sm:$0xff] %vm80_vm0, %v3094_v57  ;;  %4753 = vmatmul.mubr.msk.f32.vlgmr.msra.gmra.mrb[64].mxu0 %vm80_vm0, %v3094_v57 }
0x2d88   :  { %5236 = vmatpush1.bf16.msra.mxu0 %v6500_v12  ;;  %3264 = vmatprep.mubr.f32.mxu0 %v5718_v3 }
0x2d89   :  { %5238 = vmatprep.subr.bf16.mxu0 %v6529_v24 }
0x2d8c   :  { %5240 = vmatpush1.bf16.msra.mxu0 %v6531_v25 }
0x2d8d   :  { %5242 = vmatprep.subr.bf16.mxu0 %v6568_v27 }
0x2d90   :  { %5244 = vmatpush1.bf16.msra.mxu0 %v6573_v50 }
0x2d91   :  { %5246 = vmatprep.subr.bf16.mxu0 %v6582_v60 }
0x2d94   :  { %5248 = vmatpush1.bf16.msra.mxu0 %v6591_v61 }
0x2d95   :  { %5266 = vmatprep.subr.bf16.mxu0 %v6490_v9 }
0x2e5a   :  { %v3167_v58 = vpop.f32.mrb[64].mxu0 }
0x2e5b   :  { %v3172_v36 = vadd.f32 %v3167_v58, %v6672_v35  ;;  %v3169_v23 = vpop.f32.mrb[65].mxu0 }
0x2e5c   :  { %v3179_v2 = vadd.f32 %v6687_v49, %v3169_v23 }
0x2e5d   :  { %v4754_v26 = vmul.f32 -1.442695, %v3172_v36 }
0x2e5f   :  { %5619 = vpow2.f32 %v4754_v26 }
0x2e69   :  { %v5620_v33 = vpop.eup %5619 }
0x2e6a   :  { %v3176_v38 = vadd.f32 1.0, %v5620_v33 }
0x2e6c   :  { %5621 = vrcp.f32 %v3176_v38 }
0x2e76   :  { %v5622_v45 = vpop.eup %5621 }
0x2e77   :  { %v3180_v22 = vmul.f32 %v5622_v45, %v3179_v2  ;;  %v3183_v8 = vsub.f32 1.0, %v5622_v45  ;;  %v3189_v55 = vmul.f32 %v5622_v45, %v3091_v10  ;;  %v3296_v2 = vld [vmem:[#allocation2 + $0x68] sm:$0xff] }
0x2e79   :  { %v3181_v0 = vadd.f32 %v3180_v22, %v3098_v13 }
0x2e7b   :  { %5623 = vtanh.f32 %v3181_v0 }
0x2e85   :  { %v5624_v5 = vpop.eup %5623 }
0x2e86   :  { %3185 = vrot.lane.b32.xlu1 %v5624_v5, %s5719_s15 }
0x2ef8   :  { %v3186_v59 = vpop.permute.xlu1 %3185 }
0x2ef9   :  { %v3188_v35 = vmul.f32 %v3186_v59, %v3183_v8 }
0x2efb   :  { %v3190_v19 = vadd.f32 %v3189_v55, %v3188_v35 }
0x2efd   :  { %3192 = vrot.lane.b32.xlu0 %v3190_v19, %s5719_s15 }
0x2f01   :  { %2386 = vrot.lane.b32.xlu0 %v6611_v62, %s5719_s15 }
0x2f6f   :  { %v3193_v11 = vpop.permute.xlu0 %3192 }
0x2f70   :  { %3195 = vst.msk [vmem:[%s7096_s9 + $0x20] sm:$0xff] %vm80_vm0, %v3193_v11  ;;  %4755 = vmatmul.mubr.msk.f32.vlgmr.msra.gmra.mrb[66].mxu0 %vm80_vm0, %v3193_v11 }
0x2f71   :  { %5268 = vmatpush1.bf16.msra.mxu0 %v6500_v12  ;;  %3462 = vmatprep.mubr.f32.mxu0 %v5718_v3 }
0x2f72   :  { %5270 = vmatprep.subr.bf16.mxu0 %v6529_v24 }
0x2f73   :  { %v2387_v47 = vpop.permute.xlu0 %2386 }
0x2f74   :  { %2389 = vst.msk [vmem:[#allocation3 + $0x98] sm:$0xff] %vm80_vm0, %v2387_v47 }
0x2f75   :  { %5272 = vmatpush1.bf16.msra.mxu0 %v6531_v25 }
0x2f76   :  { %5274 = vmatprep.subr.bf16.mxu0 %v6568_v27 }
0x2f79   :  { %5276 = vmatpush1.bf16.msra.mxu0 %v6573_v50 }
0x2f7a   :  { %5278 = vmatprep.subr.bf16.mxu0 %v6582_v60 }
0x2f7b   :  { %v2410_v62 = vld [vmem:[#allocation3 + $0x98] sm:$0xff] }
0x2f7c   :  { %2634 = vmatmul.mubr.f32.gmra.mrb[62].mxu1 %v2410_v62 }
0x2f7d   :  { %3363 = vmatprep.mubr.f32.mxu1 %v5718_v3  ;;  %5280 = vmatpush1.bf16.msra.mxu0 %v6591_v61 }
0x2f7e   :  { %5298 = vmatprep.subr.bf16.mxu0 %v6490_v9 }
0x3043   :  { %v3266_v29 = vpop.f32.mrb[66].mxu0 }
0x3044   :  { %v3271_v54 = vadd.f32 %v3266_v29, %v6677_v32  ;;  %v3268_v15 = vpop.f32.mrb[67].mxu0  ;;  %v3197_v32 = vld [vmem:[#allocation2 + $0x58] sm:$0xff] }
0x3045   :  { %v3278_v31 = vadd.f32 %v6687_v49, %v3268_v15 }
0x3046   :  { %v4756_v39 = vmul.f32 -1.442695, %v3271_v54 }
0x3048   :  { %5625 = vpow2.f32 %v4756_v39  ;;  %v3395_v39 = vld [vmem:[#allocation2 + $0x78] sm:$0xff] }
0x304f   :  { %v2635_v30 = vpop.f32.mrb[62].mxu1 }
0x3050   :  { %v6843_v4 = vadd.f32 %v2635_v30, %v6647_v7  ;;  %v2637_v18 = vpop.f32.mrb[63].mxu1 }
0x3051   :  { %v2638_v6 = vadd.f32 %v2637_v18, %v6651_v16 }
0x3052   :  { %v5626_v20 = vpop.eup %5625 }
0x3053   :  { %v3275_v28 = vadd.f32 1.0, %v5626_v20  ;;  %2679 = vst.msk [vmem:[#allocation2 + $0x138] sm:$0xff] %vm80_vm0, %v2638_v6 }
0x3055   :  { %5627 = vrcp.f32 %v3275_v28 }
0x305f   :  { %v5628_v63 = vpop.eup %5627 }
0x3060   :  { %v3279_v37 = vmul.f32 %v5628_v63, %v3278_v31  ;;  %v3282_v7 = vsub.f32 1.0, %v5628_v63  ;;  %v3288_v41 = vmul.f32 %v5628_v63, %v3190_v19 }
0x3062   :  { %v3280_v52 = vadd.f32 %v3279_v37, %v3197_v32 }
0x3064   :  { %5629 = vtanh.f32 %v3280_v52 }
0x306e   :  { %v5630_v51 = vpop.eup %5629 }
0x306f   :  { %3284 = vrot.lane.b32.xlu1 %v5630_v51, %s5719_s15 }
0x30e1   :  { %v3285_v53 = vpop.permute.xlu1 %3284 }
0x30e2   :  { %v3287_v56 = vmul.f32 %v3285_v53, %v3282_v7 }
0x30e4   :  { %v3289_v16 = vadd.f32 %v3288_v41, %v3287_v56 }
0x30e6   :  { %3291 = vrot.lane.b32.xlu1 %v3289_v16, %s5719_s15 }
0x3158   :  { %v3292_v48 = vpop.permute.xlu1 %3291 }
0x3159   :  { %3294 = vst.msk [vmem:[%s7096_s9 + $0x28] sm:$0xff] %vm80_vm0, %v3292_v48  ;;  %4757 = vmatmul.mubr.msk.f32.vlgmr.msra.gmra.mrb[64].mxu1 %vm80_vm0, %v3292_v48  ;;  %v3494_v48 = vld [vmem:[#allocation2 + $0x88] sm:$0xff] }
0x315a   :  { %5284 = vmatpush1.bf16.msra.mxu1 %v6500_v12  ;;  %3561 = vmatprep.mubr.f32.mxu1 %v5718_v3 }
0x315b   :  { %5286 = vmatprep.subr.bf16.mxu1 %v6529_v24 }
0x315e   :  { %5288 = vmatpush1.bf16.msra.mxu1 %v6531_v25 }
0x315f   :  { %5290 = vmatprep.subr.bf16.mxu1 %v6568_v27 }
0x3162   :  { %5292 = vmatpush1.bf16.msra.mxu1 %v6573_v50 }
0x3163   :  { %5294 = vmatprep.subr.bf16.mxu1 %v6582_v60 }
0x3166   :  { %5296 = vmatpush1.bf16.msra.mxu1 %v6591_v61 }
0x3167   :  { %5314 = vmatprep.subr.bf16.mxu1 %v6490_v9 }
0x322c   :  { %v3365_v46 = vpop.f32.mrb[64].mxu1 }
0x322d   :  { %v3370_v10 = vadd.f32 %v3365_v46, %v6682_v44  ;;  %v3367_v57 = vpop.f32.mrb[65].mxu1 }
0x322e   :  { %v3377_v26 = vadd.f32 %v6687_v49, %v3367_v57 }
0x322f   :  { %v4758_v58 = vmul.f32 -1.442695, %v3370_v10 }
0x3231   :  { %5631 = vpow2.f32 %v4758_v58 }
0x323b   :  { %v5632_v36 = vpop.eup %5631 }
0x323c   :  { %v3374_v23 = vadd.f32 1.0, %v5632_v36 }
0x323e   :  { %5633 = vrcp.f32 %v3374_v23 }
0x3248   :  { %v5634_v33 = vpop.eup %5633 }
0x3249   :  { %v3378_v38 = vmul.f32 %v5634_v33, %v3377_v26  ;;  %v3381_v13 = vsub.f32 1.0, %v5634_v33  ;;  %v3387_v5 = vmul.f32 %v5634_v33, %v3289_v16 }
0x324b   :  { %v3379_v45 = vadd.f32 %v3378_v38, %v3296_v2 }
0x324d   :  { %5635 = vtanh.f32 %v3379_v45 }
0x3257   :  { %v5636_v22 = vpop.eup %5635 }
0x3258   :  { %3383 = vrot.lane.b32.xlu0 %v5636_v22, %s5719_s15 }
0x32ca   :  { %v3384_v0 = vpop.permute.xlu0 %3383 }
0x32cb   :  { %v3386_v44 = vmul.f32 %v3384_v0, %v3381_v13 }
0x32cd   :  { %v3388_v8 = vadd.f32 %v3387_v5, %v3386_v44 }
0x32cf   :  { %3390 = vrot.lane.b32.xlu1 %v3388_v8, %s5719_s15 }
0x3341   :  { %v3391_v59 = vpop.permute.xlu1 %3390 }
0x3342   :  { %3393 = vst.msk [vmem:[%s7096_s9 + $0x30] sm:$0xff] %vm80_vm0, %v3391_v59  ;;  %4759 = vmatmul.mubr.msk.f32.vlgmr.msra.gmra.mrb[68].mxu0 %vm80_vm0, %v3391_v59 }
0x3343   :  { %5300 = vmatpush1.bf16.msra.mxu0 %v6500_v12  ;;  %3660 = vmatprep.mubr.f32.mxu0 %v5718_v3 }
0x3344   :  { %5302 = vmatprep.subr.bf16.mxu0 %v6529_v24 }
0x3347   :  { %5304 = vmatpush1.bf16.msra.mxu0 %v6531_v25 }
0x3348   :  { %5306 = vmatprep.subr.bf16.mxu0 %v6568_v27 }
0x334b   :  { %5308 = vmatpush1.bf16.msra.mxu0 %v6573_v50 }
0x334c   :  { %5310 = vmatprep.subr.bf16.mxu0 %v6582_v60 }
0x334f   :  { %5312 = vmatpush1.bf16.msra.mxu0 %v6591_v61 }
0x3350   :  { %5330 = vmatprep.subr.bf16.mxu0 %v6490_v9 }
0x3415   :  { %v3464_v55 = vpop.f32.mrb[68].mxu0 }
0x3416   :  { %v3469_v35 = vadd.f32 %v3464_v55, %v6693_v1  ;;  %v3466_v19 = vpop.f32.mrb[69].mxu0 }
0x3417   :  { %v3476_v29 = vadd.f32 %v6687_v49, %v3466_v19 }
0x3418   :  { %v4760_v11 = vmul.f32 -1.442695, %v3469_v35 }
0x341a   :  { %5637 = vpow2.f32 %v4760_v11 }
0x3424   :  { %v5638_v47 = vpop.eup %5637 }
0x3425   :  { %v3473_v62 = vadd.f32 1.0, %v5638_v47 }
0x3427   :  { %5639 = vrcp.f32 %v3473_v62 }
0x3431   :  { %v5640_v54 = vpop.eup %5639 }
0x3432   :  { %v3477_v15 = vmul.f32 %v5640_v54, %v3476_v29  ;;  %v3480_v6 = vsub.f32 1.0, %v5640_v54  ;;  %v3486_v28 = vmul.f32 %v5640_v54, %v3388_v8  ;;  %v3593_v8 = vld [vmem:[#allocation2 + $0x98] sm:$0xff] }
0x3434   :  { %v3478_v30 = vadd.f32 %v3477_v15, %v3395_v39 }
0x3436   :  { %5641 = vtanh.f32 %v3478_v30 }
0x3440   :  { %v5642_v18 = vpop.eup %5641 }
0x3441   :  { %3482 = vrot.lane.b32.xlu0 %v5642_v18, %s5719_s15 }
0x34b3   :  { %v3483_v20 = vpop.permute.xlu0 %3482 }
0x34b4   :  { %v3485_v1 = vmul.f32 %v3483_v20, %v3480_v6 }
0x34b6   :  { %v3487_v31 = vadd.f32 %v3486_v28, %v3485_v1  ;;  %v3692_v1 = vld [vmem:[#allocation2 + $0xa8] sm:$0xff] }
0x34b8   :  { %3489 = vrot.lane.b32.xlu1 %v3487_v31, %s5719_s15 }
0x352a   :  { %v3490_v63 = vpop.permute.xlu1 %3489 }
0x352b   :  { %3492 = vst.msk [vmem:[%s7096_s9 + $0x38] sm:$0xff] %vm80_vm0, %v3490_v63  ;;  %4761 = vmatmul.mubr.msk.f32.vlgmr.msra.gmra.mrb[66].mxu1 %vm80_vm0, %v3490_v63 }
0x352c   :  { %5316 = vmatpush1.bf16.msra.mxu1 %v6500_v12  ;;  %3759 = vmatprep.mubr.f32.mxu1 %v5718_v3 }
0x352d   :  { %5318 = vmatprep.subr.bf16.mxu1 %v6529_v24 }
0x3530   :  { %5320 = vmatpush1.bf16.msra.mxu1 %v6531_v25 }
0x3531   :  { %5322 = vmatprep.subr.bf16.mxu1 %v6568_v27 }
0x3534   :  { %5324 = vmatpush1.bf16.msra.mxu1 %v6573_v50 }
0x3535   :  { %5326 = vmatprep.subr.bf16.mxu1 %v6582_v60 }
0x3538   :  { %5328 = vmatpush1.bf16.msra.mxu1 %v6591_v61 }
0x3539   :  { %5346 = vmatprep.subr.bf16.mxu1 %v6490_v9 }
0x35fe   :  { %v3563_v37 = vpop.f32.mrb[66].mxu1 }
0x35ff   :  { %v3568_v32 = vadd.f32 %v3563_v37, %v6701_v14  ;;  %v3565_v52 = vpop.f32.mrb[67].mxu1 }
0x3600   :  { %v3575_v41 = vadd.f32 %v6687_v49, %v3565_v52 }
0x3601   :  { %v4762_v51 = vmul.f32 -1.442695, %v3568_v32 }
0x3603   :  { %5643 = vpow2.f32 %v4762_v51 }
0x360d   :  { %v5644_v7 = vpop.eup %5643 }
0x360e   :  { %v3572_v53 = vadd.f32 1.0, %v5644_v7 }
0x3610   :  { %5645 = vrcp.f32 %v3572_v53 }
0x361a   :  { %v5646_v56 = vpop.eup %5645 }
0x361b   :  { %v3576_v16 = vmul.f32 %v5646_v56, %v3575_v41  ;;  %v3579_v57 = vsub.f32 1.0, %v5646_v56  ;;  %v3585_v36 = vmul.f32 %v5646_v56, %v3487_v31 }
0x361d   :  { %v3577_v46 = vadd.f32 %v3576_v16, %v3494_v48 }
0x361f   :  { %5647 = vtanh.f32 %v3577_v46 }
0x3629   :  { %v5648_v10 = vpop.eup %5647 }
0x362a   :  { %3581 = vrot.lane.b32.xlu0 %v5648_v10, %s5719_s15 }
0x369c   :  { %v3582_v58 = vpop.permute.xlu0 %3581 }
0x369d   :  { %v3584_v14 = vmul.f32 %v3582_v58, %v3579_v57 }
0x369f   :  { %v3586_v23 = vadd.f32 %v3585_v36, %v3584_v14  ;;  %v3791_v36 = vld [vmem:[#allocation2 + $0xb8] sm:$0xff] }
0x36a1   :  { %3588 = vrot.lane.b32.xlu1 %v3586_v23, %s5719_s15 }
0x3713   :  { %v3589_v26 = vpop.permute.xlu1 %3588 }
0x3714   :  { %3591 = vst.msk [vmem:[%s7096_s9 + $0x40] sm:$0xff] %vm80_vm0, %v3589_v26  ;;  %4763 = vmatmul.mubr.msk.f32.vlgmr.msra.gmra.mrb[70].mxu0 %vm80_vm0, %v3589_v26 }
0x3715   :  { %5332 = vmatpush1.bf16.msra.mxu0 %v6500_v12  ;;  %3858 = vmatprep.mubr.f32.mxu0 %v5718_v3 }
0x3716   :  { %5334 = vmatprep.subr.bf16.mxu0 %v6529_v24 }
0x3719   :  { %5336 = vmatpush1.bf16.msra.mxu0 %v6531_v25 }
0x371a   :  { %5338 = vmatprep.subr.bf16.mxu0 %v6568_v27 }
0x371d   :  { %5340 = vmatpush1.bf16.msra.mxu0 %v6573_v50 }
0x371e   :  { %5342 = vmatprep.subr.bf16.mxu0 %v6582_v60 }
0x3721   :  { %5344 = vmatpush1.bf16.msra.mxu0 %v6591_v61 }
0x3722   :  { %5362 = vmatprep.subr.bf16.mxu0 %v6490_v9 }
0x37e7   :  { %v3662_v33 = vpop.f32.mrb[70].mxu0 }
0x37e8   :  { %v3667_v38 = vadd.f32 %v3662_v33, %v6706_v17  ;;  %v3664_v2 = vpop.f32.mrb[71].mxu0 }
0x37e9   :  { %v3674_v0 = vadd.f32 %v6687_v49, %v3664_v2 }
0x37ea   :  { %v4764_v45 = vmul.f32 -1.442695, %v3667_v38 }
0x37ec   :  { %5649 = vpow2.f32 %v4764_v45 }
0x37f6   :  { %v5650_v22 = vpop.eup %5649 }
0x37f7   :  { %v3671_v13 = vadd.f32 1.0, %v5650_v22 }
0x37f9   :  { %5651 = vrcp.f32 %v3671_v13 }
0x3803   :  { %v5652_v5 = vpop.eup %5651 }
0x3804   :  { %v3675_v44 = vmul.f32 %v5652_v5, %v3674_v0  ;;  %v3678_v35 = vsub.f32 1.0, %v5652_v5  ;;  %v3684_v11 = vmul.f32 %v5652_v5, %v3586_v23 }
0x3806   :  { %v3676_v59 = vadd.f32 %v3675_v44, %v3593_v8 }
0x3808   :  { %5653 = vtanh.f32 %v3676_v59 }
0x3812   :  { %v5654_v55 = vpop.eup %5653 }
0x3813   :  { %3680 = vrot.lane.b32.xlu0 %v5654_v55, %s5719_s15 }
0x3885   :  { %v3681_v19 = vpop.permute.xlu0 %3680 }
0x3886   :  { %v3683_v17 = vmul.f32 %v3681_v19, %v3678_v35  ;;  %v3890_v19 = vld [vmem:[#allocation2 + $0xc8] sm:$0xff] }
0x3888   :  { %v3685_v47 = vadd.f32 %v3684_v11, %v3683_v17 }
0x388a   :  { %3687 = vrot.lane.b32.xlu1 %v3685_v47, %s5719_s15 }
0x38fc   :  { %v3688_v62 = vpop.permute.xlu1 %3687 }
0x38fd   :  { %3690 = vst.msk [vmem:[%s7096_s9 + $0x48] sm:$0xff] %vm80_vm0, %v3688_v62  ;;  %4765 = vmatmul.mubr.msk.f32.vlgmr.msra.gmra.mrb[68].mxu1 %vm80_vm0, %v3688_v62 }
0x38fe   :  { %5348 = vmatpush1.bf16.msra.mxu1 %v6500_v12  ;;  %3957 = vmatprep.mubr.f32.mxu1 %v5718_v3 }
0x38ff   :  { %5350 = vmatprep.subr.bf16.mxu1 %v6529_v24 }
0x3902   :  { %5352 = vmatpush1.bf16.msra.mxu1 %v6531_v25 }
0x3903   :  { %5354 = vmatprep.subr.bf16.mxu1 %v6568_v27 }
0x3906   :  { %5356 = vmatpush1.bf16.msra.mxu1 %v6573_v50 }
0x3907   :  { %5358 = vmatprep.subr.bf16.mxu1 %v6582_v60 }
0x390a   :  { %5360 = vmatpush1.bf16.msra.mxu1 %v6591_v61 }
0x390b   :  { %5378 = vmatprep.subr.bf16.mxu1 %v6490_v9 }
0x39d0   :  { %v3761_v29 = vpop.f32.mrb[68].mxu1 }
0x39d1   :  { %v3766_v54 = vadd.f32 %v3761_v29, %v6711_v21  ;;  %v3763_v15 = vpop.f32.mrb[69].mxu1 }
0x39d2   :  { %v3773_v6 = vadd.f32 %v6687_v49, %v3763_v15 }
0x39d3   :  { %v4766_v39 = vmul.f32 -1.442695, %v3766_v54 }
0x39d5   :  { %5655 = vpow2.f32 %v4766_v39 }
0x39df   :  { %v5656_v30 = vpop.eup %5655 }
0x39e0   :  { %v3770_v18 = vadd.f32 1.0, %v5656_v30 }
0x39e2   :  { %5657 = vrcp.f32 %v3770_v18 }
0x39ec   :  { %v5658_v20 = vpop.eup %5657 }
0x39ed   :  { %v3774_v28 = vmul.f32 %v5658_v20, %v3773_v6  ;;  %v3777_v37 = vsub.f32 1.0, %v5658_v20  ;;  %v3783_v52 = vmul.f32 %v5658_v20, %v3685_v47 }
0x39ef   :  { %v3775_v31 = vadd.f32 %v3774_v28, %v3692_v1  ;;  %v6994_v28 = vld [vmem:[%s7095_s8] ss:$0 sm:$0xff] }
0x39f1   :  { %5659 = vtanh.f32 %v3775_v31 }
0x39fb   :  { %v5660_v63 = vpop.eup %5659 }
0x39fc   :  { %3779 = vrot.lane.b32.xlu0 %v5660_v63, %s5719_s15 }
0x3a6e   :  { %v3780_v32 = vpop.permute.xlu0 %3779 }
0x3a6f   :  { %v3782_v21 = vmul.f32 %v3780_v32, %v3777_v37  ;;  %v3989_v37 = vld [vmem:[#allocation2 + $0xd8] sm:$0xff] }
0x3a71   :  { %v3784_v51 = vadd.f32 %v3783_v52, %v3782_v21 }
0x3a73   :  { %3786 = vrot.lane.b32.xlu1 %v3784_v51, %s5719_s15 }
0x3ae5   :  { %v3787_v7 = vpop.permute.xlu1 %3786 }
0x3ae6   :  { %3789 = vst.msk [vmem:[%s7096_s9 + $0x50] sm:$0xff] %vm80_vm0, %v3787_v7  ;;  %4767 = vmatmul.mubr.msk.f32.vlgmr.msra.gmra.mrb[72].mxu0 %vm80_vm0, %v3787_v7 }
0x3ae7   :  { %5364 = vmatpush1.bf16.msra.mxu0 %v6500_v12  ;;  %4056 = vmatprep.mubr.f32.mxu0 %v5718_v3 }
0x3ae8   :  { %5366 = vmatprep.subr.bf16.mxu0 %v6529_v24 }
0x3aeb   :  { %5368 = vmatpush1.bf16.msra.mxu0 %v6531_v25 }
0x3aec   :  { %5370 = vmatprep.subr.bf16.mxu0 %v6568_v27 }
0x3aef   :  { %5372 = vmatpush1.bf16.msra.mxu0 %v6573_v50 }
0x3af0   :  { %5374 = vmatprep.subr.bf16.mxu0 %v6582_v60 }
0x3af3   :  { %5376 = vmatpush1.bf16.msra.mxu0 %v6591_v61 }
0x3af4   :  { %5394 = vmatprep.subr.bf16.mxu0 %v6490_v9 }
0x3bb9   :  { %v3860_v53 = vpop.f32.mrb[72].mxu0 }
0x3bba   :  { %v3865_v41 = vadd.f32 %v3860_v53, %v6716_v34  ;;  %v3862_v56 = vpop.f32.mrb[73].mxu0 }
0x3bbb   :  { %v3872_v10 = vadd.f32 %v6687_v49, %v3862_v56 }
0x3bbc   :  { %v4768_v16 = vmul.f32 -1.442695, %v3865_v41 }
0x3bbe   :  { %5661 = vpow2.f32 %v4768_v16 }
0x3bc8   :  { %v5662_v48 = vpop.eup %5661 }
0x3bc9   :  { %v3869_v46 = vadd.f32 1.0, %v5662_v48 }
0x3bcb   :  { %5663 = vrcp.f32 %v3869_v46 }
0x3bd5   :  { %v5664_v57 = vpop.eup %5663 }
0x3bd6   :  { %v3873_v58 = vmul.f32 %v5664_v57, %v3872_v10  ;;  %v3876_v26 = vsub.f32 1.0, %v5664_v57  ;;  %v3882_v38 = vmul.f32 %v5664_v57, %v3784_v51 }
0x3bd8   :  { %v3874_v14 = vadd.f32 %v3873_v58, %v3791_v36 }
0x3bda   :  { %5665 = vtanh.f32 %v3874_v14 }
0x3be4   :  { %v5666_v23 = vpop.eup %5665 }
0x3be5   :  { %3878 = vrot.lane.b32.xlu0 %v5666_v23, %s5719_s15  ;;  %v4088_v23 = vld [vmem:[#allocation2 + $0xe8] sm:$0xff] }
0x3c57   :  { %v3879_v33 = vpop.permute.xlu0 %3878 }
0x3c58   :  { %v3881_v34 = vmul.f32 %v3879_v33, %v3876_v26 }
0x3c5a   :  { %v3883_v2 = vadd.f32 %v3882_v38, %v3881_v34 }
0x3c5c   :  { %3885 = vrot.lane.b32.xlu1 %v3883_v2, %s5719_s15 }
0x3cce   :  { %v3886_v45 = vpop.permute.xlu1 %3885 }
0x3ccf   :  { %3888 = vst.msk [vmem:[%s7096_s9 + $0x58] sm:$0xff] %vm80_vm0, %v3886_v45  ;;  %4769 = vmatmul.mubr.msk.f32.vlgmr.msra.gmra.mrb[70].mxu1 %vm80_vm0, %v3886_v45 }
0x3cd0   :  { %5380 = vmatpush1.bf16.msra.mxu1 %v6500_v12  ;;  %4155 = vmatprep.mubr.f32.mxu1 %v5718_v3 }
0x3cd1   :  { %5382 = vmatprep.subr.bf16.mxu1 %v6529_v24 }
0x3cd4   :  { %5384 = vmatpush1.bf16.msra.mxu1 %v6531_v25 }
0x3cd5   :  { %5386 = vmatprep.subr.bf16.mxu1 %v6568_v27 }
0x3cd8   :  { %5388 = vmatpush1.bf16.msra.mxu1 %v6573_v50 }
0x3cd9   :  { %5390 = vmatprep.subr.bf16.mxu1 %v6582_v60 }
0x3cdc   :  { %5392 = vmatpush1.bf16.msra.mxu1 %v6591_v61 }
0x3cdd   :  { %5410 = vmatprep.subr.bf16.mxu1 %v6490_v9 }
0x3da2   :  { %v3959_v22 = vpop.f32.mrb[70].mxu1 }
0x3da3   :  { %v3964_v13 = vadd.f32 %v3959_v22, %v6722_v40  ;;  %v3961_v0 = vpop.f32.mrb[71].mxu1 }
0x3da4   :  { %v3971_v59 = vadd.f32 %v6687_v49, %v3961_v0  ;;  %v5717_v0 = vld [vmem:[#allocation2 + $0xf0] sm:$0xff] }
0x3da5   :  { %v4770_v5 = vmul.f32 -1.442695, %v3964_v13 }
0x3da7   :  { %5667 = vpow2.f32 %v4770_v5 }
0x3db1   :  { %v5668_v44 = vpop.eup %5667 }
0x3db2   :  { %v3968_v8 = vadd.f32 1.0, %v5668_v44 }
0x3db4   :  { %5669 = vrcp.f32 %v3968_v8 }
0x3dbe   :  { %v5670_v55 = vpop.eup %5669 }
0x3dbf   :  { %v3972_v35 = vmul.f32 %v5670_v55, %v3971_v59  ;;  %v3975_v47 = vsub.f32 1.0, %v5670_v55  ;;  %v3981_v29 = vmul.f32 %v5670_v55, %v3883_v2 }
0x3dc1   :  { %v3973_v11 = vadd.f32 %v3972_v35, %v3890_v19 }
0x3dc3   :  { %5671 = vtanh.f32 %v3973_v11 }
0x3dcd   :  { %v5672_v17 = vpop.eup %5671 }
0x3dce   :  { %3977 = vrot.lane.b32.xlu0 %v5672_v17, %s5719_s15  ;;  %v4187_v17 = vld [vmem:[#allocation2 + $0xf8] sm:$0xff] }
0x3e40   :  { %v3978_v62 = vpop.permute.xlu0 %3977 }
0x3e41   :  { %v3980_v40 = vmul.f32 %v3978_v62, %v3975_v47 }
0x3e43   :  { %v3982_v54 = vadd.f32 %v3981_v29, %v3980_v40 }
0x3e45   :  { %3984 = vrot.lane.b32.xlu1 %v3982_v54, %s5719_s15 }
0x3eb7   :  { %v3985_v15 = vpop.permute.xlu1 %3984 }
0x3eb8   :  { %3987 = vst.msk [vmem:[%s7096_s9 + $0x60] sm:$0xff] %vm80_vm0, %v3985_v15  ;;  %4771 = vmatmul.mubr.msk.f32.vlgmr.msra.gmra.mrb[74].mxu0 %vm80_vm0, %v3985_v15 }
0x3eb9   :  { %5396 = vmatpush1.bf16.msra.mxu0 %v6500_v12  ;;  %4254 = vmatprep.mubr.f32.mxu0 %v5718_v3 }
0x3eba   :  { %5398 = vmatprep.subr.bf16.mxu0 %v6529_v24 }
0x3ebd   :  { %5400 = vmatpush1.bf16.msra.mxu0 %v6531_v25 }
0x3ebe   :  { %5402 = vmatprep.subr.bf16.mxu0 %v6568_v27 }
0x3ec1   :  { %5404 = vmatpush1.bf16.msra.mxu0 %v6573_v50 }
0x3ec2   :  { %5406 = vmatprep.subr.bf16.mxu0 %v6582_v60 }
0x3ec5   :  { %5408 = vmatpush1.bf16.msra.mxu0 %v6591_v61 }
0x3ec6   :  { %5426 = vmatprep.subr.bf16.mxu0 %v6490_v9 }
0x3f8b   :  { %v4058_v49 = vpop.f32.mrb[74].mxu0 }
0x3f8c   :  { %v4063_v39 = vadd.f32 %v4058_v49, %v6727_v43  ;;  %v4060_v30 = vpop.f32.mrb[75].mxu0 }
0x3f8d   :  { %v4070_v1 = vadd.f32 %v6994_v28, %v4060_v30 }
0x3f8e   :  { %v4772_v18 = vmul.f32 -1.442695, %v4063_v39  ;;  %v4285_v39 = vld [vmem:[#allocation2 + $0x100] sm:$0xff] }
0x3f90   :  { %5673 = vpow2.f32 %v4772_v18 }
0x3f9a   :  { %v5674_v6 = vpop.eup %5673 }
0x3f9b   :  { %v4067_v20 = vadd.f32 1.0, %v5674_v6 }
0x3f9d   :  { %5675 = vrcp.f32 %v4067_v20 }
0x3fa7   :  { %v5676_v31 = vpop.eup %5675 }
0x3fa8   :  { %v4071_v63 = vmul.f32 %v5676_v31, %v4070_v1  ;;  %v4074_v43 = vsub.f32 1.0, %v5676_v31  ;;  %v4080_v51 = vmul.f32 %v5676_v31, %v3982_v54 }
0x3faa   :  { %v4072_v32 = vadd.f32 %v4071_v63, %v3989_v37 }
0x3fac   :  { %5677 = vtanh.f32 %v4072_v32 }
0x3fb6   :  { %v5678_v52 = vpop.eup %5677 }
0x3fb7   :  { %4076 = vrot.lane.b32.xlu0 %v5678_v52, %s5719_s15  ;;  %v4286_v52 = vld [vmem:[#allocation2 + $0x108] sm:$0xff] }
0x4029   :  { %v4077_v21 = vpop.permute.xlu0 %4076 }
0x402a   :  { %v4079_v7 = vmul.f32 %v4077_v21, %v4074_v43 }
0x402c   :  { %v4081_v53 = vadd.f32 %v4080_v51, %v4079_v7 }
0x402e   :  { %4083 = vrot.lane.b32.xlu1 %v4081_v53, %s5719_s15 }
0x40a0   :  { %v4084_v41 = vpop.permute.xlu1 %4083 }
0x40a1   :  { %4086 = vst.msk [vmem:[%s7096_s9 + $0x68] sm:$0xff] %vm80_vm0, %v4084_v41  ;;  %4773 = vmatmul.mubr.msk.f32.vlgmr.msra.gmra.mrb[72].mxu1 %vm80_vm0, %v4084_v41 }
0x40a2   :  { %5412 = vmatpush1.bf16.msra.mxu1 %v6500_v12  ;;  %4353 = vmatprep.mubr.f32.mxu1 %v5718_v3 }
0x40a3   :  { %5414 = vmatprep.subr.bf16.mxu1 %v6529_v24 }
0x40a6   :  { %5416 = vmatpush1.bf16.msra.mxu1 %v6531_v25 }
0x40a7   :  { %5418 = vmatprep.subr.bf16.mxu1 %v6568_v27 }
0x40aa   :  { %5420 = vmatpush1.bf16.msra.mxu1 %v6573_v50 }
0x40ab   :  { %5422 = vmatprep.subr.bf16.mxu1 %v6582_v60 }
0x40ae   :  { %5424 = vmatpush1.bf16.msra.mxu1 %v6591_v61 }
0x40af   :  { %5442 = vmatprep.subr.bf16.mxu1 %v6490_v9 }
0x4174   :  { %v4157_v56 = vpop.f32.mrb[72].mxu1 }
0x4175   :  { %v4162_v16 = vadd.f32 %v4157_v56, %v6732_v42  ;;  %v4159_v48 = vpop.f32.mrb[73].mxu1 }
0x4176   :  { %v4169_v58 = vadd.f32 %v6994_v28, %v4159_v48  ;;  %v4384_v48 = vld [vmem:[#allocation2 + $0x110] sm:$0xff] }
0x4177   :  { %v4774_v46 = vmul.f32 -1.442695, %v4162_v16 }
0x4179   :  { %5679 = vpow2.f32 %v4774_v46 }
0x4183   :  { %v5680_v10 = vpop.eup %5679 }
0x4184   :  { %v4166_v57 = vadd.f32 1.0, %v5680_v10 }
0x4186   :  { %5681 = vrcp.f32 %v4166_v57 }
0x4190   :  { %v5682_v36 = vpop.eup %5681 }
0x4191   :  { %v4170_v14 = vmul.f32 %v5682_v36, %v4169_v58  ;;  %v4173_v38 = vsub.f32 1.0, %v5682_v36  ;;  %v4179_v2 = vmul.f32 %v5682_v36, %v4081_v53 }
0x4193   :  { %v4171_v26 = vadd.f32 %v4170_v14, %v4088_v23 }
0x4195   :  { %5683 = vtanh.f32 %v4171_v26 }
0x419f   :  { %v5684_v33 = vpop.eup %5683 }
0x41a0   :  { %4175 = vrot.lane.b32.xlu0 %v5684_v33, %s5719_s15 }
0x4212   :  { %v4176_v34 = vpop.permute.xlu0 %4175 }
0x4213   :  { %v4178_v42 = vmul.f32 %v4176_v34, %v4173_v38  ;;  %v4483_v34 = vld [vmem:[#allocation2 + $0x120] sm:$0xff] }
0x4215   :  { %v4180_v45 = vadd.f32 %v4179_v2, %v4178_v42 }
0x4217   :  { %4182 = vrot.lane.b32.xlu1 %v4180_v45, %s5719_s15 }
0x4289   :  { %v4183_v22 = vpop.permute.xlu1 %4182 }
0x428a   :  { %4185 = vst.msk [vmem:[%s7096_s9 + $0x70] sm:$0xff] %vm80_vm0, %v4183_v22  ;;  %4775 = vmatmul.mubr.msk.f32.vlgmr.msra.gmra.mrb[76].mxu0 %vm80_vm0, %v4183_v22 }
0x428b   :  { %5428 = vmatpush1.bf16.msra.mxu0 %v6500_v12  ;;  %4452 = vmatprep.mubr.f32.mxu0 %v5718_v3 }
0x428c   :  { %5430 = vmatprep.subr.bf16.mxu0 %v6529_v24 }
0x428f   :  { %5432 = vmatpush1.bf16.msra.mxu0 %v6531_v25 }
0x4290   :  { %5434 = vmatprep.subr.bf16.mxu0 %v6568_v27 }
0x4293   :  { %5436 = vmatpush1.bf16.msra.mxu0 %v6573_v50 }
0x4294   :  { %5438 = vmatprep.subr.bf16.mxu0 %v6582_v60 }
0x4297   :  { %5440 = vmatpush1.bf16.msra.mxu0 %v6591_v61 }
0x4298   :  { %5458 = vmatprep.subr.bf16.mxu0 %v6490_v9 }
0x435d   :  { %v4256_v13 = vpop.f32.mrb[76].mxu0 }
0x435e   :  { %v4261_v5 = vadd.f32 %v5717_v0, %v4256_v13  ;;  %v4258_v44 = vpop.f32.mrb[77].mxu0 }
0x435f   :  { %v4268_v35 = vadd.f32 %v6994_v28, %v4258_v44 }
0x4360   :  { %v4776_v8 = vmul.f32 -1.442695, %v4261_v5 }
0x4362   :  { %5685 = vpow2.f32 %v4776_v8 }
0x436c   :  { %v5686_v59 = vpop.eup %5685 }
0x436d   :  { %v4265_v55 = vadd.f32 1.0, %v5686_v59  ;;  %v4484_v59 = vld [vmem:[#allocation2 + $0x128] sm:$0xff] }
0x436f   :  { %5687 = vrcp.f32 %v4265_v55 }
0x4379   :  { %v5688_v19 = vpop.eup %5687 }
0x437a   :  { %v4269_v11 = vmul.f32 %v5688_v19, %v4268_v35  ;;  %v4272_v9 = vsub.f32 1.0, %v5688_v19  ;;  %v4278_v40 = vmul.f32 %v5688_v19, %v4180_v45 }
0x437c   :  { %v4270_v47 = vadd.f32 %v4269_v11, %v4187_v17 }
0x437e   :  { %5689 = vtanh.f32 %v4270_v47 }
0x4388   :  { %v5690_v62 = vpop.eup %5689 }
0x4389   :  { %4274 = vrot.lane.b32.xlu0 %v5690_v62, %s5719_s15 }
0x43fb   :  { %v4275_v29 = vpop.permute.xlu0 %4274 }
0x43fc   :  { %v4277_v54 = vmul.f32 %v4275_v29, %v4272_v9 }
0x43fe   :  { %v4279_v15 = vadd.f32 %v4278_v40, %v4277_v54 }
0x4400   :  { %4281 = vrot.lane.b32.xlu1 %v4279_v15, %s5719_s15 }
0x4472   :  { %v4282_v49 = vpop.permute.xlu1 %4281 }
0x4473   :  { %4284 = vst.msk [vmem:[%s7096_s9 + $0x78] sm:$0xff] %vm80_vm0, %v4282_v49  ;;  %4777 = vmatmul.mubr.msk.f32.vlgmr.msra.gmra.mrb[74].mxu1 %vm80_vm0, %v4282_v49 }
0x4474   :  { %5444 = vmatpush1.bf16.msra.mxu1 %v6500_v12  ;;  %4551 = vmatprep.mubr.f32.mxu1 %v5718_v3 }
0x4475   :  { %5446 = vmatprep.subr.bf16.mxu1 %v6529_v24 }
0x4478   :  { %5448 = vmatpush1.bf16.msra.mxu1 %v6531_v25 }
0x4479   :  { %5450 = vmatprep.subr.bf16.mxu1 %v6568_v27 }
0x447c   :  { %5452 = vmatpush1.bf16.msra.mxu1 %v6573_v50 }
0x447d   :  { %5454 = vmatprep.subr.bf16.mxu1 %v6582_v60 }
0x4480   :  { %5456 = vmatpush1.bf16.msra.mxu1 %v6591_v61 }
0x4546   :  { %v4355_v30 = vpop.f32.mrb[74].mxu1 }
0x4547   :  { %v4360_v18 = vadd.f32 %v4355_v30, %v4285_v39  ;;  %v4357_v6 = vpop.f32.mrb[75].mxu1 }
0x4548   :  { %v4367_v63 = vadd.f32 %v6994_v28, %v4357_v6 }
0x4549   :  { %v4778_v20 = vmul.f32 -1.442695, %v4360_v18 }
0x454b   :  { %5691 = vpow2.f32 %v4778_v20  ;;  %v4583_v20 = vld [vmem:[#allocation2 + $0x138] sm:$0xff] }
0x4555   :  { %v5692_v1 = vpop.eup %5691 }
0x4556   :  { %v4364_v31 = vadd.f32 1.0, %v5692_v1 }
0x4558   :  { %5693 = vrcp.f32 %v4364_v31 }
0x4562   :  { %v5694_v37 = vpop.eup %5693 }
0x4563   :  { %v4368_v32 = vmul.f32 %v5694_v37, %v4367_v63  ;;  %v4371_v51 = vsub.f32 1.0, %v5694_v37  ;;  %v4377_v53 = vmul.f32 %v5694_v37, %v4279_v15 }
0x4565   :  { %v4369_v43 = vadd.f32 %v4368_v32, %v4286_v52 }
0x4567   :  { %5695 = vtanh.f32 %v4369_v43 }
0x4571   :  { %v5696_v21 = vpop.eup %5695 }
0x4572   :  { %4373 = vrot.lane.b32.xlu0 %v5696_v21, %s5719_s15 }
0x45e4   :  { %v4374_v7 = vpop.permute.xlu0 %4373 }
0x45e5   :  { %v4376_v41 = vmul.f32 %v4374_v7, %v4371_v51 }
0x45e7   :  { %v4378_v56 = vadd.f32 %v4377_v53, %v4376_v41 }
0x45e9   :  { %4380 = vrot.lane.b32.xlu1 %v4378_v56, %s5719_s15 }
0x465b   :  { %v4381_v16 = vpop.permute.xlu1 %4380 }
0x465c   :  { %4383 = vst.msk [vmem:[%s7096_s9 + $0x80] sm:$0xff] %vm80_vm0, %v4381_v16  ;;  %4779 = vmatmul.mubr.msk.f32.vlgmr.msra.gmra.mrb[78].mxu0 %vm80_vm0, %v4381_v16 }
0x465d   :  { %5460 = vmatpush1.bf16.msra.mxu0 %v6500_v12  ;;  %4650 = vmatprep.mubr.f32.mxu0 %v5718_v3 }
0x465e   :  { %5462 = vmatprep.subr.bf16.mxu0 %v6529_v24 }
0x4661   :  { %5464 = vmatpush1.bf16.msra.mxu0 %v6531_v25 }
0x4662   :  { %5466 = vmatprep.subr.bf16.mxu0 %v6568_v27  ;;  %v4385_v27 = vld [vmem:[#allocation2 + $0x118] sm:$0xff] }
0x4665   :  { %5468 = vmatpush1.bf16.msra.mxu0 %v6573_v50 }
0x4666   :  { %5470 = vmatprep.subr.bf16.mxu0 %v6582_v60 }
0x4669   :  { %5472 = vmatpush1.bf16.msra.mxu0 %v6591_v61 }
0x472f   :  { %v4454_v46 = vpop.f32.mrb[78].mxu0 }
0x4730   :  { %v4459_v10 = vadd.f32 %v4454_v46, %v4384_v48  ;;  %v4456_v57 = vpop.f32.mrb[79].mxu0 }
0x4731   :  { %v4466_v24 = vadd.f32 %v6994_v28, %v4456_v57 }
0x4732   :  { %v4780_v58 = vmul.f32 -1.442695, %v4459_v10 }
0x4734   :  { %5697 = vpow2.f32 %v4780_v58 }
0x473e   :  { %v5698_v12 = vpop.eup %5697 }
0x473f   :  { %v4463_v3 = vadd.f32 1.0, %v5698_v12 }
0x4741   :  { %5699 = vrcp.f32 %v4463_v3 }
0x474b   :  { %v5700_v25 = vpop.eup %5699 }
0x474c   :  { %v4467_v36 = vmul.f32 %v5700_v25, %v4466_v24  ;;  %v4470_v60 = vsub.f32 1.0, %v5700_v25  ;;  %v4476_v23 = vmul.f32 %v5700_v25, %v4378_v56 }
0x474e   :  { %v4468_v14 = vadd.f32 %v4467_v36, %v4385_v27 }
0x4750   :  { %5701 = vtanh.f32 %v4468_v14 }
0x475a   :  { %v5702_v50 = vpop.eup %5701 }
0x475b   :  { %4472 = vrot.lane.b32.xlu0 %v5702_v50, %s5719_s15 }
0x47cd   :  { %v4473_v61 = vpop.permute.xlu0 %4472 }
0x47ce   :  { %v4475_v26 = vmul.f32 %v4473_v61, %v4470_v60 }
0x47d0   :  { %v4477_v33 = vadd.f32 %v4476_v23, %v4475_v26 }
0x47d2   :  { %4479 = vrot.lane.b32.xlu1 %v4477_v33, %s5719_s15 }
0x4844   :  { %v4480_v38 = vpop.permute.xlu1 %4479 }
0x4845   :  { %4482 = vst.msk [vmem:[%s7096_s9 + $0x88] sm:$0xff] %vm80_vm0, %v4480_v38  ;;  %4781 = vmatmul.mubr.msk.f32.vlgmr.msra.gmra.mrb[76].mxu1 %vm80_vm0, %v4480_v38 }
0x4918   :  { %v4553_v2 = vpop.f32.mrb[76].mxu1 }
0x4919   :  { %v4558_v42 = vadd.f32 %v4553_v2, %v4483_v34  ;;  %v4555_v45 = vpop.f32.mrb[77].mxu1 }
0x491a   :  { %v4565_v5 = vadd.f32 %v6994_v28, %v4555_v45 }
0x491b   :  { %v4782_v22 = vmul.f32 -1.442695, %v4558_v42 }
0x491d   :  { %5703 = vpow2.f32 %v4782_v22 }
0x4927   :  { %v5704_v13 = vpop.eup %5703 }
0x4928   :  { %v4562_v0 = vadd.f32 1.0, %v5704_v13 }
0x492a   :  { %5705 = vrcp.f32 %v4562_v0 }
0x4934   :  { %v5706_v44 = vpop.eup %5705 }
0x4935   :  { %v4566_v8 = vmul.f32 %v5706_v44, %v4565_v5  ;;  %v4569_v19 = vsub.f32 1.0, %v5706_v44  ;;  %v4575_v17 = vmul.f32 %v5706_v44, %v4477_v33 }
0x4937   :  { %v4567_v55 = vadd.f32 %v4566_v8, %v4484_v59 }
0x4939   :  { %5707 = vtanh.f32 %v4567_v55 }
0x4943   :  { %v5708_v35 = vpop.eup %5707 }
0x4944   :  { %4571 = vrot.lane.b32.xlu0 %v5708_v35, %s5719_s15 }
0x49b6   :  { %v4572_v11 = vpop.permute.xlu0 %4571 }
0x49b7   :  { %v4574_v47 = vmul.f32 %v4572_v11, %v4569_v19 }
0x49b9   :  { %v4576_v62 = vadd.f32 %v4575_v17, %v4574_v47 }
0x49bb   :  { %4578 = vrot.lane.b32.xlu1 %v4576_v62, %s5719_s15 }
0x4a2d   :  { %v4579_v9 = vpop.permute.xlu1 %4578 }
0x4a2e   :  { %4581 = vst.msk [vmem:[%s7096_s9 + $0x90] sm:$0xff] %vm80_vm0, %v4579_v9  ;;  %4783 = vmatmul.mubr.msk.f32.vlgmr.msra.gmra.mrb[80].mxu0 %vm80_vm0, %v4579_v9 }
0x4b01   :  { %v4652_v29 = vpop.f32.mrb[80].mxu0 }
0x4b02   :  { %v4657_v40 = vadd.f32 %v4652_v29, %v6843_v4  ;;  %v4654_v54 = vpop.f32.mrb[81].mxu0 }
0x4b03   :  { %v4664_v30 = vadd.f32 %v6994_v28, %v4654_v54 }
0x4b04   :  { %v4784_v15 = vmul.f32 -1.442695, %v4657_v40 }
0x4b06   :  { %5709 = vpow2.f32 %v4784_v15 }
0x4b10   :  { %v5710_v49 = vpop.eup %5709 }
0x4b11   :  { %v4661_v39 = vadd.f32 1.0, %v5710_v49 }
0x4b13   :  { %5711 = vrcp.f32 %v4661_v39 }
0x4b1d   :  { %v5712_v18 = vpop.eup %5711 }
0x4b1e   :  { %v4665_v6 = vmul.f32 %v5712_v18, %v4664_v30  ;;  %v4668_v63 = vsub.f32 1.0, %v5712_v18  ;;  %v4674_v32 = vmul.f32 %v5712_v18, %v4576_v62 }
0x4b20   :  { %v4666_v1 = vadd.f32 %v4665_v6, %v4583_v20 }
0x4b22   :  { %5713 = vtanh.f32 %v4666_v1 }
0x4b2c   :  { %v5714_v31 = vpop.eup %5713 }
0x4b2d   :  { %4670 = vrot.lane.b32.xlu0 %v5714_v31, %s5719_s15 }
0x4b9f   :  { %v4671_v37 = vpop.permute.xlu0 %4670 }
0x4ba0   :  { %v4673_v4 = vmul.f32 %v4671_v37, %v4668_v63 }
0x4ba2   :  { %v4675_v52 = vadd.f32 %v4674_v32, %v4673_v4 }
0x4ba4   :  { %4677 = vrot.lane.b32.xlu1 %v4675_v52, %s5719_s15 }
0x4c16   :  { %v4678_v43 = vpop.permute.xlu1 %4677 }
0x4c17   :  { %4680 = vst.msk [vmem:[%s7096_s9 + $0x98] sm:$0xff] %vm80_vm0, %v4678_v43 }

</bundles_post_ra>
